<compile_context>
chip_gen: v7x
topology: tpu7x:2x2x1
jax: 0.10.0
libtpu: 0.0.40
codegen_flags: <defaults>
</compile_context>

<pallas_src>
import functools

import jax
import jax.numpy as jnp
from jax.experimental import pallas as pl
from jax.experimental.pallas import tpu as pltpu

LEAKY_SLOPE = 0.2
BN_EPS = 0.8                       # nn.BatchNorm1d(out_features, 0.8): 2nd positional arg is eps
HIDDEN_DIMS = (128, 256, 512, 1024)


def _leaky_relu(x):
    return jnp.where(x > 0, x, LEAKY_SLOPE * x)


def generator_kernel(
    z_ref,
    w1_ref, b1_ref,
    w2_ref, b2_ref, g2_ref, be2_ref,
    w3_ref, b3_ref, g3_ref, be3_ref,
    w4_ref, b4_ref, g4_ref, be4_ref,
    w5_ref, b5_ref,
    out_ref,
):
    """One grid step computes a (B, TN) column slab of the final layer.

    Layers 1..4 only touch small VMEM-resident weights (constant index_maps),
    so recomputing them per step is cheap and keeps the grid axis safely
    `parallel` (no cross-step carry). Only w5/b5/out are tiled & pipelined.
    """

    def mm(a, w_ref):
        # bf16 x bf16 MXU matmul with f32 accumulation.
        return jnp.dot(a.astype(jnp.bfloat16), w_ref[...],
                       preferred_element_type=jnp.float32)

    # --- block 1: Linear + LeakyReLU (no norm) ---------------------------
    h = _leaky_relu(mm(z_ref[...], w1_ref) + b1_ref[...])

    # --- blocks 2..4: Linear + BatchNorm1d(train, eps=0.8) + LeakyReLU ----
    def lin_bn_lrelu(a, w_ref, b_ref, g_ref, be_ref):
        y = mm(a, w_ref) + b_ref[...]
        mean = jnp.mean(y, axis=0, keepdims=True)
        var = jnp.mean((y - mean) * (y - mean), axis=0, keepdims=True)  # biased
        y = (y - mean) * jax.lax.rsqrt(var + BN_EPS)                    # EUP rsqrt
        return _leaky_relu(y * g_ref[...] + be_ref[...])

    h = lin_bn_lrelu(h, w2_ref, b2_ref, g2_ref, be2_ref)
    h = lin_bn_lrelu(h, w3_ref, b3_ref, g3_ref, be3_ref)
    h = lin_bn_lrelu(h, w4_ref, b4_ref, g4_ref, be4_ref)

    # --- final: Linear (column tile) + Tanh -------------------------------
    out_ref[...] = jnp.tanh(mm(h, w5_ref) + b5_ref[...])


def _pick_tile_n(out_dim, max_tn=2048, min_steps=2):
    """Largest multiple-of-128 divisor of out_dim that is <= max_tn, preferring
    at least `min_steps` grid steps so the w5 DMA pipelines / megacore-shards."""
    if out_dim % 128 != 0:
        return out_dim                       # fallback: single full-width block
    divisors = [t for t in range(128, out_dim + 1, 128) if out_dim % t == 0]
    pipelined = [t for t in divisors if t <= max_tn and out_dim // t >= min_steps]
    if pipelined:
        return max(pipelined)
    bounded = [t for t in divisors if t <= max_tn]
    return max(bounded) if bounded else out_dim


def _vmem_limit_bytes(batch, latent, tn):
    """Rough footprint: resident params/activations + double-buffered w5/b5/out
    tiles + slack; clamped to 32 MiB so it is valid on v7x (64 MiB physical)."""
    resident = batch * latent * 2                          # z (bf16)
    prev = latent
    for d in HIDDEN_DIMS:
        resident += prev * d * 2                           # bf16 weight
        resident += 3 * d * 4                              # bias + gamma + beta (f32)
        resident += batch * d * 4                          # f32 activation
        prev = d
    tiled = 2 * (HIDDEN_DIMS[-1] * tn * 2 + tn * 4 + batch * tn * 4)
    est = resident + tiled + (4 << 20)                     # + compiler scratch slack
    return int(min(32 << 20, max(16 << 20, est)))


def init_generator_params(key, latent_dim, channel, height, width,
                          weight_dtype=jnp.bfloat16):
    """Deterministic synthetic parameters (shapes match the PyTorch module).

    Weights are stored bf16 (HBM-traffic bound; MXU is natively bf16);
    biases / BatchNorm affine params stay f32.
    """
    dims = [latent_dim, *HIDDEN_DIMS, channel * height * width]
    params = {}
    keys = jax.random.split(key, len(dims) - 1)
    for i, (d_in, d_out) in enumerate(zip(dims[:-1], dims[1:]), start=1):
        bound = 1.0 / float(d_in) ** 0.5
        w = jax.random.uniform(keys[i - 1], (d_in, d_out), jnp.float32, -bound, bound)
        params[f"w{i}"] = w.astype(weight_dtype)
        params[f"b{i}"] = jnp.zeros((1, d_out), jnp.float32)
    for i, d in zip((2, 3, 4), HIDDEN_DIMS[1:]):
        params[f"g{i}"] = jnp.ones((1, d), jnp.float32)
        params[f"be{i}"] = jnp.zeros((1, d), jnp.float32)
    return params


@functools.partial(jax.jit, static_argnames=("channel", "height", "width"))
def generator_forward(z, params, *, channel, height, width):
    batch, latent = z.shape
    out_dim = channel * height * width
    d5 = params["w5"].shape[0]                 # 1024
    tn = _pick_tile_n(out_dim)
    grid = (out_dim // tn,)

    def resident(p):                           # DMA'd once, VMEM-resident
        return pl.BlockSpec(p.shape, lambda j: (0, 0))

    args = (
        z.astype(jnp.bfloat16),                # cast once here, not per grid step
        params["w1"], params["b1"],
        params["w2"], params["b2"], params["g2"], params["be2"],
        params["w3"], params["b3"], params["g3"], params["be3"],
        params["w4"], params["b4"], params["g4"], params["be4"],
        params["w5"], params["b5"],
    )
    in_specs = [resident(a) for a in args[:-2]] + [
        pl.BlockSpec((d5, tn), lambda j: (0, j)),   # w5 column tile (pipelined)
        pl.BlockSpec((1, tn), lambda j: (0, j)),    # b5 column tile
    ]
    out_specs = pl.BlockSpec((batch, tn), lambda j: (0, j))  # lane-dense slab

    flat = pl.pallas_call(
        generator_kernel,
        out_shape=jax.ShapeDtypeStruct((batch, out_dim), jnp.float32),
        grid_spec=pltpu.PrefetchScalarGridSpec(
            num_scalar_prefetch=0,
            grid=grid,
            in_specs=in_specs,
            out_specs=out_specs,
        ),
        compiler_params=pltpu.CompilerParams(
            # Column tiles are independent -> shard across both v7x TensorCores.
            dimension_semantics=("parallel",),
            # Tight, generation-safe limit (v7x has only 64 MiB physical VMEM).
            vmem_limit_bytes=_vmem_limit_bytes(batch, latent, tn),
        ),
    )(*args)

    # PyTorch: result.view(B, C, H, W). Kept in the wrapper so the kernel's
    # stores stay full-width / lane-dense (W=16 < 128 would force masked vst).
    return flat.reshape(batch, channel, height, width)


def generator_ref(z, params):
    """Pure-JAX f32 reference (same bf16-stored weights, promoted to f32)."""
    def lrelu(x):
        return jnp.where(x > 0, x, LEAKY_SLOPE * x)

    w = lambda i: params[f"w{i}"].astype(jnp.float32)
    h = lrelu(z @ w(1) + params["b1"])
    for i in (2, 3, 4):
        y = h @ w(i) + params[f"b{i}"]
        mean = jnp.mean(y, axis=0, keepdims=True)
        var = jnp.mean((y - mean) ** 2, axis=0, keepdims=True)
        y = (y - mean) / jnp.sqrt(var + BN_EPS)
        h = lrelu(y * params[f"g{i}"] + params[f"be{i}"])
    return jnp.tanh(h @ w(5) + params["b5"])


if __name__ == "__main__":
    # Small shapes: batch=2, channel=4, height=16, width=16, latent_dim=32
    B, C, H, W, LATENT = 2, 4, 16, 16, 32

    key = jax.random.PRNGKey(0)
    k_params, k_z = jax.random.split(key)
    params = init_generator_params(k_params, LATENT, C, H, W)
    z = jax.random.normal(k_z, (B, LATENT), jnp.float32)

    out = generator_forward(z, params, channel=C, height=H, width=W)
    out = jax.block_until_ready(out)

    assert out.shape == (B, C, H, W), out.shape

    ref = generator_ref(z, params).reshape(B, C, H, W)
    max_err = float(jnp.max(jnp.abs(out - ref)))
    # bf16 matmul operands (f32 accumulation) vs f32 reference -> relaxed tol.
    assert jnp.allclose(out, ref, atol=2e-2, rtol=2e-2), max_err

    print("KERNEL_OK")
</pallas_src>

<mosaic_0001>
module attributes {stable_mosaic.version = 11 : i64} {
  func.func @generator_kernel(%arg0: i32, %arg1: memref<2x32xbf16, #tpu.memory_space<vmem>>, %arg2: memref<32x128xbf16, #tpu.memory_space<vmem>>, %arg3: memref<1x128xf32, #tpu.memory_space<vmem>>, %arg4: memref<128x256xbf16, #tpu.memory_space<vmem>>, %arg5: memref<1x256xf32, #tpu.memory_space<vmem>>, %arg6: memref<1x256xf32, #tpu.memory_space<vmem>>, %arg7: memref<1x256xf32, #tpu.memory_space<vmem>>, %arg8: memref<256x512xbf16, #tpu.memory_space<vmem>>, %arg9: memref<1x512xf32, #tpu.memory_space<vmem>>, %arg10: memref<1x512xf32, #tpu.memory_space<vmem>>, %arg11: memref<1x512xf32, #tpu.memory_space<vmem>>, %arg12: memref<512x1024xbf16, #tpu.memory_space<vmem>>, %arg13: memref<1x1024xf32, #tpu.memory_space<vmem>>, %arg14: memref<1x1024xf32, #tpu.memory_space<vmem>>, %arg15: memref<1x1024xf32, #tpu.memory_space<vmem>>, %arg16: memref<1024x512xbf16, #tpu.memory_space<vmem>>, %arg17: memref<1x512xf32, #tpu.memory_space<vmem>>, %arg18: memref<2x512xf32, #tpu.memory_space<vmem>>) attributes {dimension_semantics = [#tpu.dimension_semantics<parallel>], iteration_bounds = array<i64: 2>, scalar_prefetch = 0 : i64, scratch_operands = 0 : i64, tpu.core_type = #tpu.core_type<tc>, window_params = [{pipeline_mode = #tpu.pipeline_mode<synchronous>, transform_indices = @transform_0, window_bounds = array<i64: 2, 32>}, {pipeline_mode = #tpu.pipeline_mode<synchronous>, transform_indices = @transform_1, window_bounds = array<i64: 32, 128>}, {pipeline_mode = #tpu.pipeline_mode<synchronous>, transform_indices = @transform_2, window_bounds = array<i64: 1, 128>}, {pipeline_mode = #tpu.pipeline_mode<synchronous>, transform_indices = @transform_3, window_bounds = array<i64: 128, 256>}, {pipeline_mode = #tpu.pipeline_mode<synchronous>, transform_indices = @transform_4, window_bounds = array<i64: 1, 256>}, {pipeline_mode = #tpu.pipeline_mode<synchronous>, transform_indices = @transform_5, window_bounds = array<i64: 1, 256>}, {pipeline_mode = #tpu.pipeline_mode<synchronous>, transform_indices = @transform_6, window_bounds = array<i64: 1, 256>}, {pipeline_mode = #tpu.pipeline_mode<synchronous>, transform_indices = @transform_7, window_bounds = array<i64: 256, 512>}, {pipeline_mode = #tpu.pipeline_mode<synchronous>, transform_indices = @transform_8, window_bounds = array<i64: 1, 512>}, {pipeline_mode = #tpu.pipeline_mode<synchronous>, transform_indices = @transform_9, window_bounds = array<i64: 1, 512>}, {pipeline_mode = #tpu.pipeline_mode<synchronous>, transform_indices = @transform_10, window_bounds = array<i64: 1, 512>}, {pipeline_mode = #tpu.pipeline_mode<synchronous>, transform_indices = @transform_11, window_bounds = array<i64: 512, 1024>}, {pipeline_mode = #tpu.pipeline_mode<synchronous>, transform_indices = @transform_12, window_bounds = array<i64: 1, 1024>}, {pipeline_mode = #tpu.pipeline_mode<synchronous>, transform_indices = @transform_13, window_bounds = array<i64: 1, 1024>}, {pipeline_mode = #tpu.pipeline_mode<synchronous>, transform_indices = @transform_14, window_bounds = array<i64: 1, 1024>}, {transform_indices = @transform_15, window_bounds = array<i64: 1024, 512>}, {transform_indices = @transform_16, window_bounds = array<i64: 1, 512>}, {transform_indices = @transform_17, window_bounds = array<i64: 2, 512>}]} {
    %c0 = arith.constant 0 : index
    %c0_0 = arith.constant 0 : index
    %0 = vector.load %arg1[%c0, %c0_0] : memref<2x32xbf16, #tpu.memory_space<vmem>>, vector<2x32xbf16>
    %c0_1 = arith.constant 0 : index
    %c0_2 = arith.constant 0 : index
    %1 = vector.load %arg2[%c0_1, %c0_2] : memref<32x128xbf16, #tpu.memory_space<vmem>>, vector<32x128xbf16>
    %cst = arith.constant dense<0.000000e+00> : vector<2x128xf32>
    %2 = tpu.matmul %0, %1, %cst {dimension_numbers = #tpu.dot_dimension_numbers<[1], [0], [0], [1], [0, 0, 1, 1], [], []>} : vector<2x32xbf16>, vector<32x128xbf16>, vector<2x128xf32> -> vector<2x128xf32>
    %c0_3 = arith.constant 0 : index
    %c0_4 = arith.constant 0 : index
    %3 = vector.load %arg3[%c0_3, %c0_4] : memref<1x128xf32, #tpu.memory_space<vmem>>, vector<1x128xf32>
    %4 = vector.broadcast %3 : vector<1x128xf32> to vector<2x128xf32>
    %5 = arith.addf %2, %4 : vector<2x128xf32>
    %cst_5 = arith.constant 0.000000e+00 : f32
    %6 = vector.broadcast %cst_5 : f32 to vector<2x128xf32>
    %7 = arith.cmpf ogt, %5, %6 : vector<2x128xf32>
    %cst_6 = arith.constant 2.000000e-01 : f32
    %8 = vector.broadcast %cst_6 : f32 to vector<2x128xf32>
    %9 = arith.mulf %8, %5 : vector<2x128xf32>
    %10 = arith.select %7, %5, %9 : vector<2x128xi1>, vector<2x128xf32>
    %11 = arith.truncf %10 : vector<2x128xf32> to vector<2x128xbf16>
    %c0_7 = arith.constant 0 : index
    %c0_8 = arith.constant 0 : index
    %12 = vector.load %arg4[%c0_7, %c0_8] : memref<128x256xbf16, #tpu.memory_space<vmem>>, vector<128x256xbf16>
    %cst_9 = arith.constant dense<0.000000e+00> : vector<2x256xf32>
    %13 = tpu.matmul %11, %12, %cst_9 {dimension_numbers = #tpu.dot_dimension_numbers<[1], [0], [0], [1], [0, 0, 1, 1], [], []>} : vector<2x128xbf16>, vector<128x256xbf16>, vector<2x256xf32> -> vector<2x256xf32>
    %c0_10 = arith.constant 0 : index
    %c0_11 = arith.constant 0 : index
    %14 = vector.load %arg5[%c0_10, %c0_11] : memref<1x256xf32, #tpu.memory_space<vmem>>, vector<1x256xf32>
    %15 = vector.broadcast %14 : vector<1x256xf32> to vector<2x256xf32>
    %16 = arith.addf %13, %15 : vector<2x256xf32>
    %cst_12 = arith.constant dense<0.000000e+00> : vector<256xf32>
    %17 = vector.multi_reduction <add>, %16, %cst_12 [0] : vector<2x256xf32> to vector<256xf32>
    %18 = vector.shape_cast %17 : vector<256xf32> to vector<1x256xf32>
    %cst_13 = arith.constant 2.000000e+00 : f32
    %19 = vector.broadcast %cst_13 : f32 to vector<1x256xf32>
    %20 = arith.divf %18, %19 : vector<1x256xf32>
    %21 = vector.broadcast %20 : vector<1x256xf32> to vector<2x256xf32>
    %22 = arith.subf %16, %21 : vector<2x256xf32>
    %23 = vector.broadcast %20 : vector<1x256xf32> to vector<2x256xf32>
    %24 = arith.subf %16, %23 : vector<2x256xf32>
    %25 = arith.mulf %22, %24 : vector<2x256xf32>
    %cst_14 = arith.constant dense<0.000000e+00> : vector<256xf32>
    %26 = vector.multi_reduction <add>, %25, %cst_14 [0] : vector<2x256xf32> to vector<256xf32>
    %27 = vector.shape_cast %26 : vector<256xf32> to vector<1x256xf32>
    %cst_15 = arith.constant 2.000000e+00 : f32
    %28 = vector.broadcast %cst_15 : f32 to vector<1x256xf32>
    %29 = arith.divf %27, %28 : vector<1x256xf32>
    %30 = vector.broadcast %20 : vector<1x256xf32> to vector<2x256xf32>
    %31 = arith.subf %16, %30 : vector<2x256xf32>
    %cst_16 = arith.constant 8.000000e-01 : f32
    %32 = vector.broadcast %cst_16 : f32 to vector<1x256xf32>
    %33 = arith.addf %29, %32 : vector<1x256xf32>
    %34 = math.rsqrt %33 : vector<1x256xf32>
    %35 = vector.broadcast %34 : vector<1x256xf32> to vector<2x256xf32>
    %36 = arith.mulf %31, %35 : vector<2x256xf32>
    %c0_17 = arith.constant 0 : index
    %c0_18 = arith.constant 0 : index
    %37 = vector.load %arg6[%c0_17, %c0_18] : memref<1x256xf32, #tpu.memory_space<vmem>>, vector<1x256xf32>
    %38 = vector.broadcast %37 : vector<1x256xf32> to vector<2x256xf32>
    %39 = arith.mulf %36, %38 : vector<2x256xf32>
    %c0_19 = arith.constant 0 : index
    %c0_20 = arith.constant 0 : index
    %40 = vector.load %arg7[%c0_19, %c0_20] : memref<1x256xf32, #tpu.memory_space<vmem>>, vector<1x256xf32>
    %41 = vector.broadcast %40 : vector<1x256xf32> to vector<2x256xf32>
    %42 = arith.addf %39, %41 : vector<2x256xf32>
    %cst_21 = arith.constant 0.000000e+00 : f32
    %43 = vector.broadcast %cst_21 : f32 to vector<2x256xf32>
    %44 = arith.cmpf ogt, %42, %43 : vector<2x256xf32>
    %cst_22 = arith.constant 2.000000e-01 : f32
    %45 = vector.broadcast %cst_22 : f32 to vector<2x256xf32>
    %46 = arith.mulf %45, %42 : vector<2x256xf32>
    %47 = arith.select %44, %42, %46 : vector<2x256xi1>, vector<2x256xf32>
    %48 = arith.truncf %47 : vector<2x256xf32> to vector<2x256xbf16>
    %c0_23 = arith.constant 0 : index
    %c0_24 = arith.constant 0 : index
    %49 = vector.load %arg8[%c0_23, %c0_24] : memref<256x512xbf16, #tpu.memory_space<vmem>>, vector<256x512xbf16>
    %cst_25 = arith.constant dense<0.000000e+00> : vector<2x512xf32>
    %50 = tpu.matmul %48, %49, %cst_25 {dimension_numbers = #tpu.dot_dimension_numbers<[1], [0], [0], [1], [0, 0, 1, 1], [], []>} : vector<2x256xbf16>, vector<256x512xbf16>, vector<2x512xf32> -> vector<2x512xf32>
    %c0_26 = arith.constant 0 : index
    %c0_27 = arith.constant 0 : index
    %51 = vector.load %arg9[%c0_26, %c0_27] : memref<1x512xf32, #tpu.memory_space<vmem>>, vector<1x512xf32>
    %52 = vector.broadcast %51 : vector<1x512xf32> to vector<2x512xf32>
    %53 = arith.addf %50, %52 : vector<2x512xf32>
    %cst_28 = arith.constant dense<0.000000e+00> : vector<512xf32>
    %54 = vector.multi_reduction <add>, %53, %cst_28 [0] : vector<2x512xf32> to vector<512xf32>
    %55 = vector.shape_cast %54 : vector<512xf32> to vector<1x512xf32>
    %cst_29 = arith.constant 2.000000e+00 : f32
    %56 = vector.broadcast %cst_29 : f32 to vector<1x512xf32>
    %57 = arith.divf %55, %56 : vector<1x512xf32>
    %58 = vector.broadcast %57 : vector<1x512xf32> to vector<2x512xf32>
    %59 = arith.subf %53, %58 : vector<2x512xf32>
    %60 = vector.broadcast %57 : vector<1x512xf32> to vector<2x512xf32>
    %61 = arith.subf %53, %60 : vector<2x512xf32>
    %62 = arith.mulf %59, %61 : vector<2x512xf32>
    %cst_30 = arith.constant dense<0.000000e+00> : vector<512xf32>
    %63 = vector.multi_reduction <add>, %62, %cst_30 [0] : vector<2x512xf32> to vector<512xf32>
    %64 = vector.shape_cast %63 : vector<512xf32> to vector<1x512xf32>
    %cst_31 = arith.constant 2.000000e+00 : f32
    %65 = vector.broadcast %cst_31 : f32 to vector<1x512xf32>
    %66 = arith.divf %64, %65 : vector<1x512xf32>
    %67 = vector.broadcast %57 : vector<1x512xf32> to vector<2x512xf32>
    %68 = arith.subf %53, %67 : vector<2x512xf32>
    %cst_32 = arith.constant 8.000000e-01 : f32
    %69 = vector.broadcast %cst_32 : f32 to vector<1x512xf32>
    %70 = arith.addf %66, %69 : vector<1x512xf32>
    %71 = math.rsqrt %70 : vector<1x512xf32>
    %72 = vector.broadcast %71 : vector<1x512xf32> to vector<2x512xf32>
    %73 = arith.mulf %68, %72 : vector<2x512xf32>
    %c0_33 = arith.constant 0 : index
    %c0_34 = arith.constant 0 : index
    %74 = vector.load %arg10[%c0_33, %c0_34] : memref<1x512xf32, #tpu.memory_space<vmem>>, vector<1x512xf32>
    %75 = vector.broadcast %74 : vector<1x512xf32> to vector<2x512xf32>
    %76 = arith.mulf %73, %75 : vector<2x512xf32>
    %c0_35 = arith.constant 0 : index
    %c0_36 = arith.constant 0 : index
    %77 = vector.load %arg11[%c0_35, %c0_36] : memref<1x512xf32, #tpu.memory_space<vmem>>, vector<1x512xf32>
    %78 = vector.broadcast %77 : vector<1x512xf32> to vector<2x512xf32>
    %79 = arith.addf %76, %78 : vector<2x512xf32>
    %cst_37 = arith.constant 0.000000e+00 : f32
    %80 = vector.broadcast %cst_37 : f32 to vector<2x512xf32>
    %81 = arith.cmpf ogt, %79, %80 : vector<2x512xf32>
    %cst_38 = arith.constant 2.000000e-01 : f32
    %82 = vector.broadcast %cst_38 : f32 to vector<2x512xf32>
    %83 = arith.mulf %82, %79 : vector<2x512xf32>
    %84 = arith.select %81, %79, %83 : vector<2x512xi1>, vector<2x512xf32>
    %85 = arith.truncf %84 : vector<2x512xf32> to vector<2x512xbf16>
    %c0_39 = arith.constant 0 : index
    %c0_40 = arith.constant 0 : index
    %86 = vector.load %arg12[%c0_39, %c0_40] : memref<512x1024xbf16, #tpu.memory_space<vmem>>, vector<512x1024xbf16>
    %cst_41 = arith.constant dense<0.000000e+00> : vector<2x1024xf32>
    %87 = tpu.matmul %85, %86, %cst_41 {dimension_numbers = #tpu.dot_dimension_numbers<[1], [0], [0], [1], [0, 0, 1, 1], [], []>} : vector<2x512xbf16>, vector<512x1024xbf16>, vector<2x1024xf32> -> vector<2x1024xf32>
    %c0_42 = arith.constant 0 : index
    %c0_43 = arith.constant 0 : index
    %88 = vector.load %arg13[%c0_42, %c0_43] : memref<1x1024xf32, #tpu.memory_space<vmem>>, vector<1x1024xf32>
    %89 = vector.broadcast %88 : vector<1x1024xf32> to vector<2x1024xf32>
    %90 = arith.addf %87, %89 : vector<2x1024xf32>
    %cst_44 = arith.constant dense<0.000000e+00> : vector<1024xf32>
    %91 = vector.multi_reduction <add>, %90, %cst_44 [0] : vector<2x1024xf32> to vector<1024xf32>
    %92 = vector.shape_cast %91 : vector<1024xf32> to vector<1x1024xf32>
    %cst_45 = arith.constant 2.000000e+00 : f32
    %93 = vector.broadcast %cst_45 : f32 to vector<1x1024xf32>
    %94 = arith.divf %92, %93 : vector<1x1024xf32>
    %95 = vector.broadcast %94 : vector<1x1024xf32> to vector<2x1024xf32>
    %96 = arith.subf %90, %95 : vector<2x1024xf32>
    %97 = vector.broadcast %94 : vector<1x1024xf32> to vector<2x1024xf32>
    %98 = arith.subf %90, %97 : vector<2x1024xf32>
    %99 = arith.mulf %96, %98 : vector<2x1024xf32>
    %cst_46 = arith.constant dense<0.000000e+00> : vector<1024xf32>
    %100 = vector.multi_reduction <add>, %99, %cst_46 [0] : vector<2x1024xf32> to vector<1024xf32>
    %101 = vector.shape_cast %100 : vector<1024xf32> to vector<1x1024xf32>
    %cst_47 = arith.constant 2.000000e+00 : f32
    %102 = vector.broadcast %cst_47 : f32 to vector<1x1024xf32>
    %103 = arith.divf %101, %102 : vector<1x1024xf32>
    %104 = vector.broadcast %94 : vector<1x1024xf32> to vector<2x1024xf32>
    %105 = arith.subf %90, %104 : vector<2x1024xf32>
    %cst_48 = arith.constant 8.000000e-01 : f32
    %106 = vector.broadcast %cst_48 : f32 to vector<1x1024xf32>
    %107 = arith.addf %103, %106 : vector<1x1024xf32>
    %108 = math.rsqrt %107 : vector<1x1024xf32>
    %109 = vector.broadcast %108 : vector<1x1024xf32> to vector<2x1024xf32>
    %110 = arith.mulf %105, %109 : vector<2x1024xf32>
    %c0_49 = arith.constant 0 : index
    %c0_50 = arith.constant 0 : index
    %111 = vector.load %arg14[%c0_49, %c0_50] : memref<1x1024xf32, #tpu.memory_space<vmem>>, vector<1x1024xf32>
    %112 = vector.broadcast %111 : vector<1x1024xf32> to vector<2x1024xf32>
    %113 = arith.mulf %110, %112 : vector<2x1024xf32>
    %c0_51 = arith.constant 0 : index
    %c0_52 = arith.constant 0 : index
    %114 = vector.load %arg15[%c0_51, %c0_52] : memref<1x1024xf32, #tpu.memory_space<vmem>>, vector<1x1024xf32>
    %115 = vector.broadcast %114 : vector<1x1024xf32> to vector<2x1024xf32>
    %116 = arith.addf %113, %115 : vector<2x1024xf32>
    %cst_53 = arith.constant 0.000000e+00 : f32
    %117 = vector.broadcast %cst_53 : f32 to vector<2x1024xf32>
    %118 = arith.cmpf ogt, %116, %117 : vector<2x1024xf32>
    %cst_54 = arith.constant 2.000000e-01 : f32
    %119 = vector.broadcast %cst_54 : f32 to vector<2x1024xf32>
    %120 = arith.mulf %119, %116 : vector<2x1024xf32>
    %121 = arith.select %118, %116, %120 : vector<2x1024xi1>, vector<2x1024xf32>
    %122 = arith.truncf %121 : vector<2x1024xf32> to vector<2x1024xbf16>
    %c0_55 = arith.constant 0 : index
    %c0_56 = arith.constant 0 : index
    %123 = vector.load %arg16[%c0_55, %c0_56] : memref<1024x512xbf16, #tpu.memory_space<vmem>>, vector<1024x512xbf16>
    %cst_57 = arith.constant dense<0.000000e+00> : vector<2x512xf32>
    %124 = tpu.matmul %122, %123, %cst_57 {dimension_numbers = #tpu.dot_dimension_numbers<[1], [0], [0], [1], [0, 0, 1, 1], [], []>} : vector<2x1024xbf16>, vector<1024x512xbf16>, vector<2x512xf32> -> vector<2x512xf32>
    %c0_58 = arith.constant 0 : index
    %c0_59 = arith.constant 0 : index
    %125 = vector.load %arg17[%c0_58, %c0_59] : memref<1x512xf32, #tpu.memory_space<vmem>>, vector<1x512xf32>
    %126 = vector.broadcast %125 : vector<1x512xf32> to vector<2x512xf32>
    %127 = arith.addf %124, %126 : vector<2x512xf32>
    %128 = math.tanh %127 : vector<2x512xf32>
    %c0_60 = arith.constant 0 : index
    %c0_61 = arith.constant 0 : index
    %129 = vector.load %arg18[%c0_60, %c0_61] : memref<2x512xf32, #tpu.memory_space<vmem>>, vector<2x512xf32>
    tpu.vector_store %arg18[%c0_60, %c0_61], %128 {strides = array<i32>} : memref<2x512xf32, #tpu.memory_space<vmem>>, vector<2x512xf32>,
    return
  }
  func.func @transform_0(%arg0: i32) -> (i32, i32) {
    %c0_i32 = arith.constant 0 : i32
    %c0_i32_0 = arith.constant 0 : i32
    %c0_i32_1 = arith.constant 0 : i32
    return %c0_i32, %c0_i32_0 : i32, i32
  }
  func.func @transform_1(%arg0: i32) -> (i32, i32) {
    %c0_i32 = arith.constant 0 : i32
    %c0_i32_0 = arith.constant 0 : i32
    %c0_i32_1 = arith.constant 0 : i32
    return %c0_i32, %c0_i32_0 : i32, i32
  }
  func.func @transform_2(%arg0: i32) -> (i32, i32) {
    %c0_i32 = arith.constant 0 : i32
    %c0_i32_0 = arith.constant 0 : i32
    %c0_i32_1 = arith.constant 0 : i32
    return %c0_i32, %c0_i32_0 : i32, i32
  }
  func.func @transform_3(%arg0: i32) -> (i32, i32) {
    %c0_i32 = arith.constant 0 : i32
    %c0_i32_0 = arith.constant 0 : i32
    %c0_i32_1 = arith.constant 0 : i32
    return %c0_i32, %c0_i32_0 : i32, i32
  }
  func.func @transform_4(%arg0: i32) -> (i32, i32) {
    %c0_i32 = arith.constant 0 : i32
    %c0_i32_0 = arith.constant 0 : i32
    %c0_i32_1 = arith.constant 0 : i32
    return %c0_i32, %c0_i32_0 : i32, i32
  }
  func.func @transform_5(%arg0: i32) -> (i32, i32) {
    %c0_i32 = arith.constant 0 : i32
    %c0_i32_0 = arith.constant 0 : i32
    %c0_i32_1 = arith.constant 0 : i32
    return %c0_i32, %c0_i32_0 : i32, i32
  }
  func.func @transform_6(%arg0: i32) -> (i32, i32) {
    %c0_i32 = arith.constant 0 : i32
    %c0_i32_0 = arith.constant 0 : i32
    %c0_i32_1 = arith.constant 0 : i32
    return %c0_i32, %c0_i32_0 : i32, i32
  }
  func.func @transform_7(%arg0: i32) -> (i32, i32) {
    %c0_i32 = arith.constant 0 : i32
    %c0_i32_0 = arith.constant 0 : i32
    %c0_i32_1 = arith.constant 0 : i32
    return %c0_i32, %c0_i32_0 : i32, i32
  }
  func.func @transform_8(%arg0: i32) -> (i32, i32) {
    %c0_i32 = arith.constant 0 : i32
    %c0_i32_0 = arith.constant 0 : i32
    %c0_i32_1 = arith.constant 0 : i32
    return %c0_i32, %c0_i32_0 : i32, i32
  }
  func.func @transform_9(%arg0: i32) -> (i32, i32) {
    %c0_i32 = arith.constant 0 : i32
    %c0_i32_0 = arith.constant 0 : i32
    %c0_i32_1 = arith.constant 0 : i32
    return %c0_i32, %c0_i32_0 : i32, i32
  }
  func.func @transform_10(%arg0: i32) -> (i32, i32) {
    %c0_i32 = arith.constant 0 : i32
    %c0_i32_0 = arith.constant 0 : i32
    %c0_i32_1 = arith.constant 0 : i32
    return %c0_i32, %c0_i32_0 : i32, i32
  }
  func.func @transform_11(%arg0: i32) -> (i32, i32) {
    %c0_i32 = arith.constant 0 : i32
    %c0_i32_0 = arith.constant 0 : i32
    %c0_i32_1 = arith.constant 0 : i32
    return %c0_i32, %c0_i32_0 : i32, i32
  }
  func.func @transform_12(%arg0: i32) -> (i32, i32) {
    %c0_i32 = arith.constant 0 : i32
    %c0_i32_0 = arith.constant 0 : i32
    %c0_i32_1 = arith.constant 0 : i32
    return %c0_i32, %c0_i32_0 : i32, i32
  }
  func.func @transform_13(%arg0: i32) -> (i32, i32) {
    %c0_i32 = arith.constant 0 : i32
    %c0_i32_0 = arith.constant 0 : i32
    %c0_i32_1 = arith.constant 0 : i32
    return %c0_i32, %c0_i32_0 : i32, i32
  }
  func.func @transform_14(%arg0: i32) -> (i32, i32) {
    %c0_i32 = arith.constant 0 : i32
    %c0_i32_0 = arith.constant 0 : i32
    %c0_i32_1 = arith.constant 0 : i32
    return %c0_i32, %c0_i32_0 : i32, i32
  }
  func.func @transform_15(%arg0: i32) -> (i32, i32) {
    %c0_i32 = arith.constant 0 : i32
    %c0_i32_0 = arith.constant 0 : i32
    return %c0_i32, %arg0 : i32, i32
  }
  func.func @transform_16(%arg0: i32) -> (i32, i32) {
    %c0_i32 = arith.constant 0 : i32
    %c0_i32_0 = arith.constant 0 : i32
    return %c0_i32, %arg0 : i32, i32
  }
  func.func @transform_17(%arg0: i32) -> (i32, i32) {
    %c0_i32 = arith.constant 0 : i32
    %c0_i32_0 = arith.constant 0 : i32
    return %c0_i32, %arg0 : i32, i32
  }
}

</mosaic_0001>

<bundles_post_ra>
// kernel: generator_forward.1
= control target key start
LH: loop header
LB: loop body
LE: loop exit
PB: predicated region body
PF: predicated region fallthrough
CT: control target
= control target key end

     0   :  { %s9160_s0 = inlined_call_operand.vmem [shape: bf16[2,32], index: 0, kind: input, shape index: {}]   ;;  %s9161_s1 = inlined_call_operand.hbm [shape: bf16[32,128], index: 1, kind: input, shape index: {}]   ;;  %s9162_s2 = inlined_call_operand.hbm [shape: f32[1,128], index: 2, kind: input, shape index: {}]   ;;  %s9163_s3 = inlined_call_operand.hbm [shape: bf16[128,256], index: 3, kind: input, shape index: {}]   ;;  %s9164_s4 = inlined_call_operand.hbm [shape: f32[1,256], index: 4, kind: input, shape index: {}]   ;;  %s9165_s5 = inlined_call_operand.hbm [shape: f32[1,256], index: 5, kind: input, shape index: {}]   ;;  %s9166_s6 = inlined_call_operand.hbm [shape: f32[1,256], index: 6, kind: input, shape index: {}]   ;;  %s9167_s7 = inlined_call_operand.hbm [shape: bf16[256,512], index: 7, kind: input, shape index: {}]   ;;  %s9168_s8 = inlined_call_operand.hbm [shape: f32[1,512], index: 8, kind: input, shape index: {}]   ;;  %s9169_s9 = inlined_call_operand.hbm [shape: f32[1,512], index: 9, kind: input, shape index: {}]   ;;  %s9170_s10 = inlined_call_operand.hbm [shape: f32[1,512], index: 10, kind: input, shape index: {}]   ;;  %s9171_s11 = inlined_call_operand.hbm [shape: bf16[512,1024], index: 11, kind: input, shape index: {}]   ;;  %s9172_s12 = inlined_call_operand.hbm [shape: f32[1,1024], index: 12, kind: input, shape index: {}]   ;;  %s9173_s13 = inlined_call_operand.hbm [shape: f32[1,1024], index: 13, kind: input, shape index: {}]   ;;  %s9174_s14 = inlined_call_operand.hbm [shape: f32[1,1024], index: 14, kind: input, shape index: {}]   ;;  %s9175_s15 = inlined_call_operand.hbm [shape: bf16[1024,1024], index: 15, kind: input, shape index: {}]   ;;  %s9176_s16 = inlined_call_operand.hbm [shape: f32[1,1024], index: 16, kind: input, shape index: {}]   ;;  %s9177_s17 = inlined_call_operand.vmem [shape: f32[2,1024], index: 17, kind: output, shape index: {}]  }
   0x1   :  { %9200 = sst [smem:[#allocation36_spill]] %s9160_s0 }
   0x2   :  { %9201 = sst [smem:[#allocation37_spill]] %s9161_s1 }
   0x3   :  { %9202 = sst [smem:[#allocation38_spill]] %s9162_s2 }
   0x4   :  { %9203 = sst [smem:[#allocation39_spill]] %s9163_s3 }
   0x5   :  { %9204 = sst [smem:[#allocation40_spill]] %s9164_s4 }
   0x6   :  { %9205 = sst [smem:[#allocation41_spill]] %s9165_s5 }
   0x7   :  { %9206 = sst [smem:[#allocation42_spill]] %s9166_s6 }
   0x8   :  { %9207 = sst [smem:[#allocation43_spill]] %s9167_s7 }
   0x9   :  { %9208 = sst [smem:[#allocation44_spill]] %s9168_s8 }
   0xa   :  { %9209 = sst [smem:[#allocation45_spill]] %s9169_s9 }
   0xb   :  { %9210 = sst [smem:[#allocation46_spill]] %s9170_s10 }
   0xc   :  { %9211 = sst [smem:[#allocation47_spill]] %s9171_s11 }
   0xd   :  { %9212 = sst [smem:[#allocation48_spill]] %s9173_s13 }
   0xe   :  { %9213 = sst [smem:[#allocation49_spill]] %s9174_s14 }
   0xf   :  { %9214 = sst [smem:[#allocation50_spill]] %s9176_s16 }
  0x10   :  { %9215 = sst [smem:[#allocation51_spill]] %s9177_s17 }
  0x11   :  { %22 = vsyncpa [#allocation3], 0 }
  0x12   :  { %23 = vsyncpa [#allocation5], 0 }
  0x13   :  { %24 = vsyncpa [#allocation8], 0 }
  0x14   :  { %25 = vsyncpa [#allocation11], 0 }
  0x15   :  { %26 = vsyncpa [#allocation14], 0 }
  0x16   :  { %27 = vsyncpa [#allocation17], 0 }
  0x17   :  { %28 = vsyncpa [#allocation20], 0 }
  0x18   :  { %29 = vsyncpa [#allocation23], 0  ;;  %s8154_s24 = smov 0   ;;  %s8156_s25 = smov 0  }
  0x19   :  { %s8158_s26 = smov 0   ;;  %s8160_s27 = smov 0  }
  0x1a LB: > { %s8036_s28 = smov [#allocation2]   ;;  %s8175_s0 = sadd.s32 4294967295, %s8034_s27   ;;  %s8034_s27 = sphi %s8160_s27, %s9269_s27   ;;  %s8030_s26 = sphi %s8158_s26, %s9268_s26   ;;  %s8026_s25 = sphi %s8156_s25, %s9267_s25   ;;  %s8022_s24 = sphi %s8154_s24, %s9266_s24  }
  0x1b   : > { %s448_s29 = sshll.u32 %s8036_s28, 4  ;;  %p6071_p0 = scmp.ge.s32.totalorder %s8034_s27, 1  ;;  %s8180_s29 = int_to_ptr.vmem [resolvable:$true] %s448_s29 }
  0x1c   : > { %p9186_p1 = scmp.eq.s32.totalorder %s8175_s0, 0  ;;  %p433_p2 = scmp.lt.s32.totalorder %s8034_s27, 3 }
  0x1d   : > { %s8037_s18 = smov [#allocation4]   ;;  %s8038_s20 = smov [#allocation7]  }
  0x1e   : > { %p8182_p3 = pnand %p6071_p0, %p433_p2  ;;  %s462_s19 = sshll.u32 %s8037_s18, 4  ;;  %s8194_s19 = int_to_ptr.vmem [resolvable:$true] %s462_s19 }
  0x1f   : > { %s486_s21 = sshll.u32 %s8038_s20, 4  ;;  %s9219_s28 = sld [smem:[#allocation37_spill]]  ;;  %s8196_s21 = int_to_ptr.vmem [resolvable:$true] %s486_s21 }
  0x20   : > { %s9216_s30 = scalar_select %p8182_p3, 1, 0 }
  0x21   : > { %p6835_p4 = pneg %p8182_p3 }
  0x22   : > { %9217 = sst [smem:[#allocation35_spill]] %s9216_s30 }
  0x23   : > { %p8190_p5 = pnand %p6835_p4, %p9186_p1 }
  0x25   : > { %s9218_s1 = scalar_select %p8190_p5, 1, 0 }
  0x26   : > { %s7516_s17 = scalar_lea.hbm %s9219_s28, 256  ;;  %p8206_p7 = pneg %p8190_p5 }
  0x27   : > { %p7517_p6 = scmp.ne.s32.totalorder %s9219_s28, %s7516_s17  ;;  %p7523_p10 = scmp.lt.u32.totalorder %s7516_s17, %s9219_s28 }
  0x29   : > { %p7519_p8 = pnand %p8206_p7, %p7517_p6 }
  0x2b   : > { %p7520_p9 = pneg %p7519_p8 }
  0x2d   : > { %p7525_p11 = pnand %p7523_p10, %p7520_p9 }
  0x2f   : > { %7528 = shalt.err (!%p7525_p11)
}
  0x30   : > { %s7529_s16 = scalar_lea.vmem %s8180_s29, 256  ;;  %p7537_p2 = scmp.lt.s32.totalorder %s8180_s29, %s8180_s29 }
  0x31   : > { %p7530_p12 = scmp.ne.s32.totalorder %s8180_s29, %s7529_s16  ;;  %p7538_p4 = scmp.lt.s32.totalorder %s7529_s16, %s7529_s16 }
  0x33   : > { %p7532_p13 = pnand %p7530_p12, %p8206_p7  ;;  %p7539_p6 = por %p7538_p4, %p7537_p2 }
  0x35   : > { %p7533_p0 = pneg %p7532_p13 }
  0x37   : > { %p7540_p8 = pnand %p7539_p6, %p7533_p0 }
  0x39   : > { %7543 = shalt.err (!%p7540_p8)
}
  0x3a   : > { %s8039_s30 = smov 64   ;;  %s8040_s14 = smov 4  }
  0x3b   : > { %6838 = dma.hbm_to_vmem [thread:$0]  (!%p8190_p5), %s9219_s28, 256, %s8180_s29, [#allocation3], %s8039_s30, %s8039_s30, %s8040_s14  }
  0x3c   : > { %s9221_s2 = sld [smem:[#allocation38_spill]] }
  0x42   : > { %s7544_s13 = scalar_lea.hbm %s9221_s2, 16 }
  0x43   : > { %p7545_p9 = scmp.ne.s32.totalorder %s9221_s2, %s7544_s13  ;;  %p7551_p12 = scmp.lt.u32.totalorder %s7544_s13, %s9221_s2 }
  0x45   : > { %p7547_p10 = pnand %p7545_p9, %p8206_p7 }
  0x47   : > { %p7548_p11 = pneg %p7547_p10 }
  0x49   : > { %p7553_p13 = pnand %p7551_p12, %p7548_p11 }
  0x4b   : > { %7556 = shalt.err (!%p7553_p13)
}
  0x4c   : > { %s7557_s29 = scalar_lea.vmem %s8194_s19, 16  ;;  %s7564_s9 = scalar_lea.vmem %s8194_s19, 32 }
  0x4d   : > { %p7558_p0 = scmp.ne.s32.totalorder %s8194_s19, %s7557_s29  ;;  %p7565_p6 = scmp.lt.s32.totalorder %s8194_s19, %s8194_s19 }
  0x4e   : > { %p7566_p8 = scmp.lt.s32.totalorder %s7564_s9, %s7557_s29 }
  0x4f   : > { %p7560_p2 = pnand %p7558_p0, %p8206_p7 }
  0x50   : > { %p7567_p9 = por %p7566_p8, %p7565_p6 }
  0x51   : > { %p7561_p4 = pneg %p7560_p2 }
  0x53   : > { %p7568_p10 = pnand %p7567_p9, %p7561_p4 }
  0x55   : > { %7571 = shalt.err (!%p7568_p10)
}
  0x56   : > { %6841 = dma.hbm_to_vmem [thread:$0]  (!%p8190_p5), %s9221_s2, 16, %s8194_s19, [#allocation5]  }
  0x57   : > { %s9222_s4 = sld [smem:[#allocation40_spill]] }
  0x5d   : > { %s7572_s14 = scalar_lea.hbm %s9222_s4, 32 }
  0x5e   : > { %p7573_p11 = scmp.ne.s32.totalorder %s9222_s4, %s7572_s14  ;;  %p7579_p0 = scmp.lt.u32.totalorder %s7572_s14, %s9222_s4 }
  0x60   : > { %p7575_p12 = pnand %p7573_p11, %p8206_p7 }
  0x62   : > { %p7576_p13 = pneg %p7575_p12 }
  0x64   : > { %p7581_p2 = pnand %p7579_p0, %p7576_p13 }
  0x66   : > { %7584 = shalt.err (!%p7581_p2)
}
  0x67   : > { %s7585_s19 = scalar_lea.vmem %s8196_s21, 32  ;;  %p7593_p9 = scmp.lt.s32.totalorder %s8196_s21, %s8196_s21 }
  0x68   : > { %p7586_p4 = scmp.ne.s32.totalorder %s8196_s21, %s7585_s19  ;;  %p7594_p10 = scmp.lt.s32.totalorder %s7585_s19, %s7585_s19 }
  0x6a   : > { %p7588_p6 = pnand %p7586_p4, %p8206_p7  ;;  %p7595_p11 = por %p7594_p10, %p7593_p9 }
  0x6c   : > { %p7589_p8 = pneg %p7588_p6 }
  0x6e   : > { %p7596_p12 = pnand %p7595_p11, %p7589_p8 }
  0x70   : > { %7599 = shalt.err (!%p7596_p12)
}
  0x71   : > { %6847 = dma.hbm_to_vmem [thread:$0]  (!%p8190_p5), %s9222_s4, 32, %s8196_s21, [#allocation8]  }
  0x72   : > { %s8041_s9 = smov [#allocation10]   ;;  %s8042_s11 = smov [#allocation13]  }
  0x73   : > { %s508_s7 = sshll.u32 %s8041_s9, 4  ;;  %s532_s13 = sshll.u32 %s8042_s11, 4  ;;  %s509_s7 = int_to_ptr.vmem [resolvable:$true] %s508_s7  ;;  %s533_s13 = int_to_ptr.vmem [resolvable:$true] %s532_s13 }
  0x74   : > { %s9223_s6 = sld [smem:[#allocation42_spill]] }
  0x7a   : > { %s7600_s17 = scalar_lea.hbm %s9223_s6, 32 }
  0x7b   : > { %p7601_p13 = scmp.ne.s32.totalorder %s9223_s6, %s7600_s17  ;;  %p7607_p4 = scmp.lt.u32.totalorder %s7600_s17, %s9223_s6 }
  0x7d   : > { %p7603_p0 = pnand %p7601_p13, %p8206_p7 }
  0x7f   : > { %p7604_p2 = pneg %p7603_p0 }
  0x81   : > { %p7609_p6 = pnand %p7607_p4, %p7604_p2 }
  0x83   : > { %7612 = shalt.err (!%p7609_p6)
}
  0x84   : > { %s7613_s21 = scalar_lea.vmem %s509_s7, 32  ;;  %p7621_p11 = scmp.lt.s32.totalorder %s509_s7, %s509_s7 }
  0x85   : > { %p7614_p8 = scmp.ne.s32.totalorder %s509_s7, %s7613_s21  ;;  %p7622_p12 = scmp.lt.s32.totalorder %s7613_s21, %s7613_s21 }
  0x87   : > { %p7616_p9 = pnand %p7614_p8, %p8206_p7  ;;  %p7623_p1 = por %p7622_p12, %p7621_p11 }
  0x89   : > { %p7617_p10 = pneg %p7616_p9 }
  0x8b   : > { %p7624_p3 = pnand %p7623_p1, %p7617_p10 }
  0x8d   : > { %7627 = shalt.err (!%p7624_p3)
}
  0x8e   : > { %6853 = dma.hbm_to_vmem [thread:$0]  (!%p8190_p5), %s9223_s6, 32, %s509_s7, [#allocation11]  }
  0x8f   : > { %s9224_s8 = sld [smem:[#allocation44_spill]] }
  0x95   : > { %s7628_s30 = scalar_lea.hbm %s9224_s8, 64 }
  0x96   : > { %p7629_p13 = scmp.ne.s32.totalorder %s9224_s8, %s7628_s30  ;;  %p7635_p3 = scmp.lt.u32.totalorder %s7628_s30, %s9224_s8 }
  0x98   : > { %p7631_p0 = pnand %p7629_p13, %p8206_p7 }
  0x9a   : > { %p7632_p1 = pneg %p7631_p0 }
  0x9c   : > { %p7637_p2 = pnand %p7635_p3, %p7632_p1 }
  0x9e   : > { %7640 = shalt.err (!%p7637_p2)
}
  0x9f   : > { %s7641_s20 = scalar_lea.vmem %s533_s13, 64  ;;  %p7649_p9 = scmp.lt.s32.totalorder %s533_s13, %s533_s13 }
  0xa0   : > { %p7642_p4 = scmp.ne.s32.totalorder %s533_s13, %s7641_s20  ;;  %p7650_p10 = scmp.lt.s32.totalorder %s7641_s20, %s7641_s20 }
  0xa2   : > { %p7644_p6 = pnand %p7642_p4, %p8206_p7  ;;  %p7651_p11 = por %p7650_p10, %p7649_p9 }
  0xa4   : > { %p7645_p8 = pneg %p7644_p6 }
  0xa6   : > { %p7652_p12 = pnand %p7651_p11, %p7645_p8 }
  0xa8   : > { %7655 = shalt.err (!%p7652_p12)
}
  0xa9   : > { %6859 = dma.hbm_to_vmem [thread:$0]  (!%p8190_p5), %s9224_s8, 64, %s533_s13, [#allocation14]  }
  0xaa   : > { %s8043_s21 = smov [#allocation16]   ;;  %s8044_s29 = smov [#allocation19]  }
  0xab   : > { %s554_s16 = sshll.u32 %s8043_s21, 4  ;;  %s578_s9 = sshll.u32 %s8044_s29, 4  ;;  %s555_s16 = int_to_ptr.vmem [resolvable:$true] %s554_s16  ;;  %s579_s9 = int_to_ptr.vmem [resolvable:$true] %s578_s9 }
  0xac   : > { %s9225_s10 = sld [smem:[#allocation46_spill]] }
  0xb2   : > { %s7656_s14 = scalar_lea.hbm %s9225_s10, 64 }
  0xb3   : > { %p7657_p13 = scmp.ne.s32.totalorder %s9225_s10, %s7656_s14  ;;  %p7663_p3 = scmp.lt.u32.totalorder %s7656_s14, %s9225_s10 }
  0xb5   : > { %p7659_p0 = pnand %p7657_p13, %p8206_p7 }
  0xb7   : > { %p7660_p1 = pneg %p7659_p0 }
  0xb9   : > { %p7665_p2 = pnand %p7663_p3, %p7660_p1 }
  0xbb   : > { %7668 = shalt.err (!%p7665_p2)
}
  0xbc   : > { %s7669_s13 = scalar_lea.vmem %s555_s16, 64  ;;  %p7677_p9 = scmp.lt.s32.totalorder %s555_s16, %s555_s16 }
  0xbd   : > { %p7670_p4 = scmp.ne.s32.totalorder %s555_s16, %s7669_s13  ;;  %p7678_p10 = scmp.lt.s32.totalorder %s7669_s13, %s7669_s13 }
  0xbf   : > { %p7672_p6 = pnand %p7670_p4, %p8206_p7  ;;  %p7679_p11 = por %p7678_p10, %p7677_p9 }
  0xc1   : > { %p7673_p8 = pneg %p7672_p6 }
  0xc3   : > { %p7680_p12 = pnand %p7679_p11, %p7673_p8 }
  0xc5   : > { %7683 = shalt.err (!%p7680_p12)
}
  0xc6   : > { %6865 = dma.hbm_to_vmem [thread:$0]  (!%p8190_p5), %s9225_s10, 64, %s555_s16, [#allocation17]  }
  0xc7   : > { %s7684_s11 = scalar_lea.hbm %s9172_s12, 128 }
  0xc8   : > { %p7685_p13 = scmp.ne.s32.totalorder %s9172_s12, %s7684_s11  ;;  %p7691_p3 = scmp.lt.u32.totalorder %s7684_s11, %s9172_s12 }
  0xca   : > { %p7687_p0 = pnand %p7685_p13, %p8206_p7 }
  0xcc   : > { %p7688_p1 = pneg %p7687_p0 }
  0xce   : > { %p7693_p2 = pnand %p7691_p3, %p7688_p1 }
  0xd0   : > { %7696 = shalt.err (!%p7693_p2)
}
  0xd1   : > { %s7697_s23 = scalar_lea.vmem %s579_s9, 128  ;;  %p7705_p9 = scmp.lt.s32.totalorder %s579_s9, %s579_s9 }
  0xd2   : > { %p7698_p4 = scmp.ne.s32.totalorder %s579_s9, %s7697_s23  ;;  %p7706_p10 = scmp.lt.s32.totalorder %s7697_s23, %s7697_s23 }
  0xd4   : > { %p7700_p6 = pnand %p7698_p4, %p8206_p7  ;;  %p7707_p11 = por %p7706_p10, %p7705_p9 }
  0xd6   : > { %p7701_p8 = pneg %p7700_p6 }
  0xd8   : > { %p7708_p12 = pnand %p7707_p11, %p7701_p8 }
  0xda   : > { %7711 = shalt.err (!%p7708_p12)
}
  0xdb   : > { %6871 = dma.hbm_to_vmem [thread:$0]  (!%p8190_p5), %s9172_s12, 128, %s579_s9, [#allocation20]  }
  0xdc   : > { %s8347_s13 = sadd.s32 1, %s8034_s27   ;;  %s357_s19 = sadd.s32 1, %s8030_s26 }
  0xdd   : > { %s354_s7 = ssub.s32 %s8034_s27, %s8347_s13  ;;  %p364_p0 = scmp.ne.s32.totalorder %s8030_s26, %s8026_s25 }
  0xde   : > { %p355_p13 = scmp.eq.s32.totalorder %s354_s7, 0  ;;  %p365_p1 = scmp.eq.s32.totalorder %s8034_s27, 0 }
  0xdf   : > { %p370_p3 = scmp.ne.s32.totalorder %s8026_s25, %s8022_s24  ;;  %p9226_p4 = scmp.eq.s32.totalorder %s8175_s0, 0 }
  0xe0   : > { %s8358_s21 = scalar_select %p355_p13, %s8030_s26, %s357_s19  }
  0xe1   : > { %p366_p2 = por %p365_p1, %p364_p0  ;;  %p8362_p6 = por %p9226_p4, %p370_p3 }
  0xe2   : > { %p6899_p8 = scmp.lt.s32.totalorder %s8034_s27, 2  ;;  %s611_s11 = sand.u32 1, %s8034_s27  }
  0xe3   : > { %s9227_s29 = scalar_select %p8362_p6, 1, 0 }
  0xe4   : > { %s9188_s9 = sand.u32 1, %s8030_s26   ;;  %s6710_s14 = sshll.u32 %s8034_s27, 8 }
  0xe5   : > { %s6087_s30 = sshll.u32 %s9188_s9, 11  ;;  %s8375_s23 = scalar_lea.hbm %s9175_s15, %s6710_s14 }
  0xe6   : > { %s615_s24 = scalar_lea.vmem [#allocation24], %s6087_s30  ;;  %p8379_p9 = pnand %p6899_p8, %p366_p2 }
  0xe7   : > { %s622_s16 = sshll.u32 %s615_s24, 4  ;;  %s8045_s7 = smov [#allocation6]   ;;  %s8377_s16 = int_to_ptr.vmem [resolvable:$true] %s622_s16 }
  0xe8   : > { %s9228_s20 = scalar_select %p8379_p9, 1, 0 }
  0xe9   : > { %s8383_s19 = sshll.u32 %s8045_s7, 4  ;;  %s8385_s17 = scalar_lea.sflag [#allocation3], %s611_s11  ;;  %s473_s19 = int_to_ptr.vmem [resolvable:$true] %s8383_s19 }
  0xea   : > { %s7712_s14 = scalar_lea.hbm %s8375_s23, 32768  ;;  %p9192_p11 = pneg %p8379_p9 }
  0xeb   : > { %p7713_p10 = scmp.ne.s32.totalorder %s8375_s23, %s7712_s14  ;;  %s7717_s24 = scalar_lea.hbm %s9175_s15, 65536 }
  0xec   : > { %p7718_p0 = scmp.lt.u32.totalorder %s8375_s23, %s9175_s15  ;;  %p7719_p1 = scmp.lt.u32.totalorder %s7717_s24, %s7712_s14 }
  0xed   : > { %p7715_p12 = pnand %p9192_p11, %p7713_p10  ;;  %p7721_p2 = scmp.lt.u32.totalorder %s7712_s14, %s8375_s23 }
  0xee   : > { %p7720_p3 = por %p7719_p1, %p7718_p0 }
  0xef   : > { %p7716_p13 = pneg %p7715_p12 }
  0xf0   : > { %p7722_p4 = por %p7721_p2, %p7720_p3 }
  0xf2   : > { %p7723_p8 = pnand %p7722_p4, %p7716_p13 }
  0xf4   : > { %7726 = shalt.err (!%p7723_p8)
}
  0xf5   : > { %s7727_s11 = scalar_lea.vmem %s8377_s16, 32768  ;;  %s8046_s7 = smov [#allocation24]  }
  0xf6   : > { %p7728_p10 = scmp.ne.s32.totalorder %s8377_s16, %s7727_s11  ;;  %s7732_s30 = sshll.u32 %s8046_s7, 4  ;;  %s7733_s30 = int_to_ptr.vmem [resolvable:$false] %s7732_s30 }
  0xf7   : > { %s7734_s2 = scalar_lea.vmem %s7733_s30, 65536  ;;  %p7735_p5 = scmp.lt.s32.totalorder %s8377_s16, %s7733_s30 }
  0xf8   : > { %p7730_p12 = pnand %p7728_p10, %p9192_p11  ;;  %p7736_p0 = scmp.lt.s32.totalorder %s7734_s2, %s7727_s11 }
  0xfa   : > { %p7731_p6 = pneg %p7730_p12  ;;  %p7737_p1 = por %p7736_p0, %p7735_p5 }
  0xfc   : > { %p7738_p3 = pnand %p7737_p1, %p7731_p6 }
  0xfe   : > { %7741 = shalt.err (!%p7738_p3)
}
  0xff   : > { %s9193_s9 = smov 512   ;;  %s9194_s14 = smov 256  }
 0x100   : > { %s9195_s22 = smov 16   ;;  %s9229_s3 = sld [smem:[#allocation39_spill]] }
 0x101   : > { %6881 = dma.hbm_to_vmem [thread:$0]  (!%p8379_p9), %s8375_s23, 32768, %s8377_s16, %s8385_s17, %s9193_s9, %s9194_s14, %s9195_s22  }
 0x106   : > { %s7742_s7 = scalar_lea.hbm %s9229_s3, 2048 }
 0x107   : > { %p7743_p5 = scmp.ne.s32.totalorder %s9229_s3, %s7742_s7  ;;  %p7749_p2 = scmp.lt.u32.totalorder %s7742_s7, %s9229_s3 }
 0x109   : > { %p7745_p6 = pnand %p7743_p5, %p8206_p7 }
 0x10b   : > { %p7746_p13 = pneg %p7745_p6 }
 0x10d   : > { %p7751_p4 = pnand %p7749_p2, %p7746_p13 }
 0x10f   : > { %7754 = shalt.err (!%p7751_p4)
}
 0x110   : > { %s7755_s8 = scalar_lea.vmem %s473_s19, 2048  ;;  %p7763_p0 = scmp.lt.s32.totalorder %s473_s19, %s473_s19 }
 0x111   : > { %p7756_p8 = scmp.ne.s32.totalorder %s473_s19, %s7755_s8  ;;  %p7764_p1 = scmp.lt.s32.totalorder %s7755_s8, %s7755_s8 }
 0x113   : > { %p7758_p10 = pnand %p7756_p8, %p8206_p7  ;;  %p7765_p3 = por %p7764_p1, %p7763_p0 }
 0x115   : > { %p7759_p12 = pneg %p7758_p10 }
 0x117   : > { %p7766_p11 = pnand %p7765_p3, %p7759_p12 }
 0x119   : > { %7769 = shalt.err (!%p7766_p11)
}
 0x11a   : > { %s8050_s23 = smov 128   ;;  %s8051_s16 = smov 8  }
 0x11b   : > { %p9230_p5 = scmp.ne.s32.totalorder %s9218_s1, 0  ;;  %s8052_s24 = smov [#allocation9]  }
 0x11c   : > { %s497_s11 = sshll.u32 %s8052_s24, 4  ;;  %s8053_s7 = smov [#allocation12]   ;;  %s498_s11 = int_to_ptr.vmem [resolvable:$true] %s497_s11 }
 0x11d   : > { %6844 = dma.hbm_to_vmem [thread:$0]  (!%p9230_p5), %s9229_s3, 2048, %s473_s19, [#allocation5], %s8050_s23, %s8050_s23, %s8051_s16  }
 0x11e   : > { %s518_s30 = sshll.u32 %s8053_s7, 4  ;;  %s9231_s5 = sld [smem:[#allocation41_spill]]  ;;  %s8435_s30 = int_to_ptr.vmem [resolvable:$true] %s518_s30 }
 0x124   : > { %s7770_s9 = scalar_lea.hbm %s9231_s5, 32 }
 0x125   : > { %p7771_p11 = scmp.ne.s32.totalorder %s9231_s5, %s7770_s9  ;;  %p7777_p2 = scmp.lt.u32.totalorder %s7770_s9, %s9231_s5 }
 0x127   : > { %p7773_p6 = pnand %p7771_p11, %p8206_p7 }
 0x129   : > { %p7774_p13 = pneg %p7773_p6 }
 0x12b   : > { %p7779_p4 = pnand %p7777_p2, %p7774_p13 }
 0x12d   : > { %7782 = shalt.err (!%p7779_p4)
}
 0x12e   : > { %s7783_s23 = scalar_lea.vmem %s498_s11, 32  ;;  %p7791_p0 = scmp.lt.s32.totalorder %s498_s11, %s498_s11 }
 0x12f   : > { %p7784_p8 = scmp.ne.s32.totalorder %s498_s11, %s7783_s23  ;;  %p7792_p1 = scmp.lt.s32.totalorder %s7783_s23, %s7783_s23 }
 0x131   : > { %p7786_p10 = pnand %p7784_p8, %p8206_p7  ;;  %p7793_p3 = por %p7792_p1, %p7791_p0 }
 0x133   : > { %p7787_p12 = pneg %p7786_p10 }
 0x135   : > { %p7794_p9 = pnand %p7793_p3, %p7787_p12 }
 0x137   : > { %7797 = shalt.err (!%p7794_p9)
}
 0x138   : > { %6850 = dma.hbm_to_vmem [thread:$0]  (!%p9230_p5), %s9231_s5, 32, %s498_s11, [#allocation8]  }
 0x139   : > { %s9232_s6 = sld [smem:[#allocation43_spill]] }
 0x13f   : > { %s7798_s24 = scalar_lea.hbm %s9232_s6, 8192 }
 0x140   : > { %p7799_p11 = scmp.ne.s32.totalorder %s9232_s6, %s7798_s24  ;;  %p7805_p9 = scmp.lt.u32.totalorder %s7798_s24, %s9232_s6 }
 0x142   : > { %p7801_p6 = pnand %p7799_p11, %p8206_p7 }
 0x144   : > { %p7802_p13 = pneg %p7801_p6 }
 0x146   : > { %p7807_p2 = pnand %p7805_p9, %p7802_p13 }
 0x148   : > { %7810 = shalt.err (!%p7807_p2)
}
 0x149   : > { %s7811_s11 = scalar_lea.vmem %s8435_s30, 8192  ;;  %p7819_p12 = scmp.lt.s32.totalorder %s8435_s30, %s8435_s30 }
 0x14a   : > { %p7812_p4 = scmp.ne.s32.totalorder %s8435_s30, %s7811_s11  ;;  %p7820_p0 = scmp.lt.s32.totalorder %s7811_s11, %s7811_s11 }
 0x14c   : > { %p7814_p8 = pnand %p7812_p4, %p8206_p7  ;;  %p7821_p1 = por %p7820_p0, %p7819_p12 }
 0x14e   : > { %p7815_p10 = pneg %p7814_p8 }
 0x150   : > { %p7822_p3 = pnand %p7821_p1, %p7815_p10 }
 0x152   : > { %7825 = shalt.err (!%p7822_p3)
}
 0x153   : > { %s9233_s19 = smov 16   ;;  %s9234_s23 = smov 256  }
 0x154   : > { %6856 = dma.hbm_to_vmem [thread:$0]  (!%p9230_p5), %s9232_s6, 8192, %s8435_s30, [#allocation11], %s9234_s23, %s9234_s23, %s9233_s19  }
 0x155   : > { %s8054_s9 = smov [#allocation15]   ;;  %s8055_s24 = smov [#allocation18]  }
 0x156   : > { %s543_s16 = sshll.u32 %s8054_s9, 4  ;;  %s564_s7 = sshll.u32 %s8055_s24, 4  ;;  %s544_s16 = int_to_ptr.vmem [resolvable:$true] %s543_s16  ;;  %s8481_s7 = int_to_ptr.vmem [resolvable:$true] %s564_s7 }
 0x157   : > { %s9235_s4 = sld [smem:[#allocation45_spill]] }
 0x15d   : > { %s7826_s11 = scalar_lea.hbm %s9235_s4, 64 }
 0x15e   : > { %p7827_p11 = scmp.ne.s32.totalorder %s9235_s4, %s7826_s11  ;;  %p7833_p9 = scmp.lt.u32.totalorder %s7826_s11, %s9235_s4 }
 0x160   : > { %p7829_p6 = pnand %p7827_p11, %p8206_p7 }
 0x162   : > { %p7830_p13 = pneg %p7829_p6 }
 0x164   : > { %p7835_p2 = pnand %p7833_p9, %p7830_p13 }
 0x166   : > { %7838 = shalt.err (!%p7835_p2)
}
 0x167   : > { %s7839_s19 = scalar_lea.vmem %s544_s16, 64  ;;  %p7847_p12 = scmp.lt.s32.totalorder %s544_s16, %s544_s16 }
 0x168   : > { %p7840_p4 = scmp.ne.s32.totalorder %s544_s16, %s7839_s19  ;;  %p7848_p0 = scmp.lt.s32.totalorder %s7839_s19, %s7839_s19 }
 0x16a   : > { %p7842_p8 = pnand %p7840_p4, %p8206_p7  ;;  %p7849_p1 = por %p7848_p0, %p7847_p12 }
 0x16c   : > { %p7843_p10 = pneg %p7842_p8 }
 0x16e   : > { %p7850_p3 = pnand %p7849_p1, %p7843_p10 }
 0x170   : > { %7853 = shalt.err (!%p7850_p3)
}
 0x171   : > { %6862 = dma.hbm_to_vmem [thread:$0]  (!%p9230_p5), %s9235_s4, 64, %s544_s16, [#allocation14]  }
 0x172   : > { %s9236_s9 = sld [smem:[#allocation47_spill]] }
 0x178   : > { %s7854_s24 = scalar_lea.hbm %s9236_s9, 32768 }
 0x179   : > { %p7855_p11 = scmp.ne.s32.totalorder %s9236_s9, %s7854_s24  ;;  %p7861_p9 = scmp.lt.u32.totalorder %s7854_s24, %s9236_s9 }
 0x17b   : > { %p7857_p6 = pnand %p7855_p11, %p8206_p7 }
 0x17d   : > { %p7858_p13 = pneg %p7857_p6 }
 0x17f   : > { %p7863_p2 = pnand %p7861_p9, %p7858_p13 }
 0x181   : > { %7866 = shalt.err (!%p7863_p2)
}
 0x182   : > { %s7867_s16 = scalar_lea.vmem %s8481_s7, 32768  ;;  %p7875_p12 = scmp.lt.s32.totalorder %s8481_s7, %s8481_s7 }
 0x183   : > { %p7868_p4 = scmp.ne.s32.totalorder %s8481_s7, %s7867_s16  ;;  %p7876_p0 = scmp.lt.s32.totalorder %s7867_s16, %s7867_s16 }
 0x185   : > { %p7870_p8 = pnand %p7868_p4, %p8206_p7  ;;  %p7877_p1 = por %p7876_p0, %p7875_p12 }
 0x187   : > { %p7871_p10 = pneg %p7870_p8 }
 0x189   : > { %p7878_p3 = pnand %p7877_p1, %p7871_p10 }
 0x18b   : > { %7881 = shalt.err (!%p7878_p3)
}
 0x18c   : > { %s8056_s30 = smov 32   ;;  %s9237_s19 = smov 512  }
 0x18d   : > { %6868 = dma.hbm_to_vmem [thread:$0]  (!%p9230_p5), %s9236_s9, 32768, %s8481_s7, [#allocation17], %s9237_s19, %s9237_s19, %s8056_s30  }
 0x18e   : > { %s8057_s23 = smov [#allocation21]   ;;  %s8058_s24 = smov [#allocation22]  }
 0x18f   : > { %s589_s22 = sshll.u32 %s8057_s23, 4  ;;  %s600_s8 = sshll.u32 %s8058_s24, 4  ;;  %s590_s22 = int_to_ptr.vmem [resolvable:$true] %s589_s22  ;;  %s601_s8 = int_to_ptr.vmem [resolvable:$true] %s600_s8 }
 0x190   : > { %s9238_s14 = sld [smem:[#allocation48_spill]] }
 0x196   : > { %s7882_s16 = scalar_lea.hbm %s9238_s14, 128 }
 0x197   : > { %p7883_p11 = scmp.ne.s32.totalorder %s9238_s14, %s7882_s16  ;;  %p7889_p9 = scmp.lt.u32.totalorder %s7882_s16, %s9238_s14 }
 0x199   : > { %p7885_p6 = pnand %p7883_p11, %p8206_p7 }
 0x19b   : > { %p7886_p13 = pneg %p7885_p6 }
 0x19d   : > { %p7891_p2 = pnand %p7889_p9, %p7886_p13 }
 0x19f   : > { %7894 = shalt.err (!%p7891_p2)
}
 0x1a0   : > { %s7895_s7 = scalar_lea.vmem %s590_s22, 128  ;;  %p7903_p12 = scmp.lt.s32.totalorder %s590_s22, %s590_s22 }
 0x1a1   : > { %p7896_p4 = scmp.ne.s32.totalorder %s590_s22, %s7895_s7  ;;  %p7904_p0 = scmp.lt.s32.totalorder %s7895_s7, %s7895_s7 }
 0x1a3   : > { %p7898_p8 = pnand %p7896_p4, %p8206_p7  ;;  %p7905_p1 = por %p7904_p0, %p7903_p12 }
 0x1a5   : > { %p7899_p10 = pneg %p7898_p8 }
 0x1a7   : > { %p7906_p3 = pnand %p7905_p1, %p7899_p10 }
 0x1a9   : > { %7909 = shalt.err (!%p7906_p3)
}
 0x1aa   : > { %6874 = dma.hbm_to_vmem [thread:$0]  (!%p9230_p5), %s9238_s14, 128, %s590_s22, [#allocation20]  }
 0x1ab   : > { %s9239_s10 = sand.u32 1, %s8030_s26   ;;  %s9240_s23 = sld [smem:[#allocation49_spill]] }
 0x1ac   : > { %s6090_s30 = sshll.u32 %s9239_s10, 2 }
 0x1b1   : > { %s7910_s24 = scalar_lea.hbm %s9240_s23, 128 }
 0x1b2   : > { %p7911_p11 = scmp.ne.s32.totalorder %s9240_s23, %s7910_s24  ;;  %p7917_p9 = scmp.lt.u32.totalorder %s7910_s24, %s9240_s23 }
 0x1b4   : > { %p7913_p6 = pnand %p7911_p11, %p8206_p7 }
 0x1b6   : > { %p7914_p13 = pneg %p7913_p6 }
 0x1b8   : > { %p7919_p2 = pnand %p7917_p9, %p7914_p13 }
 0x1ba   : > { %7922 = shalt.err (!%p7919_p2)
}
 0x1bb   : > { %s7923_s22 = scalar_lea.vmem %s601_s8, 128  ;;  %p7931_p12 = scmp.lt.s32.totalorder %s601_s8, %s601_s8 }
 0x1bc   : > { %p7924_p4 = scmp.ne.s32.totalorder %s601_s8, %s7923_s22  ;;  %p7932_p0 = scmp.lt.s32.totalorder %s7923_s22, %s7923_s22 }
 0x1be   : > { %p7926_p8 = pnand %p7924_p4, %p8206_p7  ;;  %p7933_p1 = por %p7932_p0, %p7931_p12 }
 0x1c0   : > { %p7927_p10 = pneg %p7926_p8 }
 0x1c2   : > { %p7934_p3 = pnand %p7933_p1, %p7927_p10 }
 0x1c4   : > { %7937 = shalt.err (!%p7934_p3)
}
 0x1c5   : > { %6877 = dma.hbm_to_vmem [thread:$0]  (!%p9230_p5), %s9240_s23, 128, %s601_s8, [#allocation23]  }
 0x1c6   : > { %s6711_s4 = sshll.u32 %s8034_s27, 6  ;;  %s9241_s5 = sld [smem:[#allocation50_spill]] }
 0x1c7   : > { %s636_s24 = scalar_lea.vmem [#allocation25], %s6090_s30  ;;  %p9242_p11 = scmp.ne.s32.totalorder %s9228_s20, 0 }
 0x1c8   : > { %s644_s2 = sshll.u32 %s636_s24, 4  ;;  %s645_s2 = int_to_ptr.vmem [resolvable:$true] %s644_s2 }
 0x1c9   : > { %p9243_p6 = pneg %p9242_p11 }
 0x1cc   : > { %s8568_s18 = scalar_lea.hbm %s9241_s5, %s6711_s4  ;;  %s7943_s11 = scalar_lea.hbm %s9241_s5, 128 }
 0x1cd   : > { %s7938_s1 = scalar_lea.hbm %s8568_s18, 64  ;;  %p7944_p5 = scmp.lt.u32.totalorder %s8568_s18, %s9241_s5 }
 0x1ce   : > { %p7939_p7 = scmp.ne.s32.totalorder %s8568_s18, %s7938_s1  ;;  %p7945_p2 = scmp.lt.u32.totalorder %s7943_s11, %s7938_s1 }
 0x1cf   : > { %p7947_p8 = scmp.lt.u32.totalorder %s7938_s1, %s8568_s18 }
 0x1d0   : > { %p7941_p13 = pnand %p7939_p7, %p9243_p6  ;;  %p7946_p4 = por %p7945_p2, %p7944_p5 }
 0x1d2   : > { %p7942_p9 = pneg %p7941_p13  ;;  %p7948_p10 = por %p7947_p8, %p7946_p4 }
 0x1d4   : > { %p7949_p12 = pnand %p7948_p10, %p7942_p9 }
 0x1d6   : > { %7952 = shalt.err (!%p7949_p12)
}
 0x1d7   : > { %s7953_s30 = scalar_lea.vmem %s645_s2, 64  ;;  %p9244_p1 = pmov %p9243_p6 }
 0x1d8   : > { %p7954_p0 = scmp.ne.s32.totalorder %s645_s2, %s7953_s30  ;;  %s8059_s22 = smov [#allocation25]  }
 0x1d9   : > { %s7958_s7 = sshll.u32 %s8059_s22, 4  ;;  %s7959_s7 = int_to_ptr.vmem [resolvable:$false] %s7958_s7 }
 0x1da   : > { %p7956_p3 = pnand %p7954_p0, %p9244_p1  ;;  %s7960_s6 = scalar_lea.vmem %s7959_s7, 128 }
 0x1db   : > { %p7961_p6 = scmp.lt.s32.totalorder %s645_s2, %s7959_s7  ;;  %p7962_p13 = scmp.lt.s32.totalorder %s7960_s6, %s7953_s30 }
 0x1dc   : > { %p7957_p7 = pneg %p7956_p3 }
 0x1dd   : > { %p7963_p2 = por %p7962_p13, %p7961_p6 }
 0x1df   : > { %p7964_p5 = pnand %p7963_p2, %p7957_p7 }
 0x1e1   : > { %7967 = shalt.err (!%p7964_p5)
}
 0x1e2   : > { %6884 = dma.hbm_to_vmem [thread:$0]  (!%p9242_p11), %s8568_s18, 64, %s645_s2, %s8385_s17  }
 0x1e3   : > { %s9245_s4 = sld [smem:[#allocation35_spill]] }
 0x1e9   : > { %p9246_p9 = scmp.ne.s32.totalorder %s9245_s4, 0 }
 0x1ea   : > { %p9247_p4 = scmp.eq.s32.totalorder (!%p9246_p9), %s8175_s0, 0 }
 0x1eb   : > { %653 = sbr.rel (%p9246_p9) target bundleno = 2067 (0x813), region = 88 }
 0x1f2   : > { %7985 = dma.done.wait (%p9247_p4), [#allocation3], 256   ;;  %p9248_p8 = pmov %p9247_p4 }
 0x1f3   : > { %p9249_p10 = pmov %p9247_p4 }
 0x1f4   : > { %7987 = vsyncadd (%p9248_p8), [#allocation3], 4294967040 }
 0x1f5   : > { %7989 = dma.done.wait (%p9249_p10), [#allocation5], 2064   ;;  %p9250_p12 = pmov %p9247_p4 }
 0x1f6   : > { %p9251_p0 = pmov %p9247_p4 }
 0x1f7   : > { %7991 = vsyncadd (%p9250_p12), [#allocation5], 4294965232 }
 0x1f8   : > { %7993 = dma.done.wait (%p9251_p0), [#allocation8], 64   ;;  %p9252_p11 = pmov %p9251_p0 }
 0x1f9   : > { %p9253_p1 = pmov %p9251_p0 }
 0x1fa   : > { %7995 = vsyncadd (%p9252_p11), [#allocation8], 4294967232 }
 0x1fb   : > { %7997 = dma.done.wait (%p9253_p1), [#allocation11], 8224   ;;  %p9254_p3 = pmov %p9251_p0 }
 0x1fc   : > { %p9255_p7 = pmov %p9251_p0 }
 0x1fd   : > { %7999 = vsyncadd (%p9254_p3), [#allocation11], 4294959072 }
 0x1fe   : > { %8001 = dma.done.wait (%p9255_p7), [#allocation14], 128   ;;  %p9256_p6 = pmov %p9251_p0 }
 0x1ff   : > { %p9257_p13 = pmov %p9251_p0 }
 0x200   : > { %8003 = vsyncadd (%p9256_p6), [#allocation14], 4294967168 }
 0x201   : > { %8005 = dma.done.wait (%p9257_p13), [#allocation17], 32832   ;;  %p9258_p2 = pmov %p9251_p0 }
 0x202   : > { %p9259_p5 = pmov %p9251_p0 }
 0x203   : > { %8007 = vsyncadd (%p9258_p2), [#allocation17], 4294934464 }
 0x204   : > { %8009 = dma.done.wait (%p9259_p5), [#allocation20], 256   ;;  %p9260_p9 = pmov %p9251_p0 }
 0x205   : > { %p9261_p4 = pmov %p9251_p0 }
 0x206   : > { %8011 = vsyncadd (%p9260_p9), [#allocation20], 4294967040 }
 0x207   : > { %8013 = dma.done.wait (%p9261_p4), [#allocation23], 128   ;;  %p9262_p8 = pmov %p9251_p0 }
 0x208   : > { %s711_s20 = sand.u32 1, %s8175_s0   ;;  %s713_s17 = sand.u32 1, %s8026_s25  }
 0x209   : > { %8015 = vsyncadd (%p9262_p8), [#allocation23], 4294967168  ;;  %s6108_s10 = sshll.u32 %s713_s17, 11  ;;  %s712_s19 = scalar_lea.sflag [#allocation3], %s711_s20 }
 0x20a   : > { %s8628_s18 = scalar_lea.vmem [#allocation24], %s6108_s10  ;;  %p9263_p10 = scmp.ne.s32.totalorder %s9227_s29, 0 }
 0x20c   : > { %8017 = dma.done.wait (%p9263_p10), %s712_s19, 32832  }
 0x20d   : > { %8019 = vsyncadd (%p9263_p10), %s712_s19, 4294934464  ;;  %v8060_v0 = vmov 0.0   ;;  %vm8061_vm0 = vmmov 0   ;;  %v6972_v1 = vld [vmem:[#allocation2] sm:$0xff]   ;;  %v6973_v2 = vld [vmem:[#allocation2 + $0x8] sm:$0xff]   ;;  %s9264_s1 = sld [smem:[#allocation36_spill]] }
 0x20e   : > { %6715 = vmatprep.subr.bf16.mxu0 %v8060_v0  ;;  %6719 = vmatprep.mubr.msk.bf16.mxu0 %vm8061_vm0, %v8060_v0  ;;  %v6974_v3 = vld [vmem:[#allocation6 + $0x4] ss:$8 sps:$4 sm:$0xff]   ;;  %v6976_v4 = vld [vmem:[#allocation6] ss:$8 sps:$4 sm:$0xff]   ;;  %v6977_v5 = vld [vmem:[#allocation6 + $0x14] ss:$8 sps:$4 sm:$0xff]  }
 0x20f   : > { %6716 = vmatpush3.bf16.msra.mxu0 %v6972_v1  ;;  %969 = vmatprep.subr.bf16.mxu1 %v6974_v3  ;;  %vm813_vm1 = vcmask 261120   ;;  %v6979_v7 = vld [vmem:[#allocation6 + $0x10] ss:$8 sps:$4 sm:$0xff]   ;;  %v6980_v8 = vld [vmem:[#allocation6 + $0x24] ss:$8 sps:$4 sm:$0xff]   ;;  %v8062_v20 = vmov 0  }
 0x210   : > { %6717 = vmatprep.subr.bf16.mxu0 %v8060_v0  ;;  %970 = vmatpush1.bf16.msra.mxu1 %v6976_v4  ;;  %v6982_v9 = vld [vmem:[#allocation6 + $0x20] ss:$8 sps:$4 sm:$0xff]   ;;  %v6983_v10 = vld [vmem:[#allocation6 + $0x34] ss:$8 sps:$4 sm:$0xff]   ;;  %v6985_v11 = vld [vmem:[#allocation6 + $0x30] ss:$8 sps:$4 sm:$0xff]  }
 0x211   : > { %971 = vmatprep.subr.bf16.mxu1 %v6977_v5  ;;  %v6986_v12 = vld [vmem:[#allocation6 + $0x44] ss:$8 sps:$4 sm:$0xff]   ;;  %v6988_v13 = vld [vmem:[#allocation6 + $0x40] ss:$8 sps:$4 sm:$0xff]   ;;  %v6989_v14 = vld [vmem:[#allocation6 + $0x54] ss:$8 sps:$4 sm:$0xff]   ;;  %1001 = vmatprep.mubr.bf16.mxu1 %v8062_v20 }
 0x212   : > { %v6991_v15 = vld [vmem:[#allocation6 + $0x50] ss:$8 sps:$4 sm:$0xff]   ;;  %v6992_v16 = vld [vmem:[#allocation6 + $0x64] ss:$8 sps:$4 sm:$0xff]   ;;  %v6994_v17 = vld [vmem:[#allocation6 + $0x60] ss:$8 sps:$4 sm:$0xff]  }
 0x213   : > { %v789_v6 = vld [vmem:[%s9264_s1] sm:$0x1]  ;;  %6718 = vmatpush3.bf16.msra.mxu0 %v6973_v2  ;;  %v6995_v18 = vld [vmem:[#allocation6 + $0x74] ss:$8 sps:$4 sm:$0xff]   ;;  %v6997_v19 = vld [vmem:[#allocation6 + $0x70] ss:$8 sps:$4 sm:$0xff]  }
 0x214   : > { %972 = vmatpush1.bf16.msra.mxu1 %v6979_v7  ;;  %v6998_v21 = vld [vmem:[#allocation12] ss:$16 sps:$4 sm:$0xff]   ;;  %v7000_v22 = vld [vmem:[#allocation12 + $0x4] ss:$16 sps:$4 sm:$0xff]   ;;  %v7003_v23 = vld [vmem:[#allocation12 + $0xc] ss:$16 sps:$4 sm:$0xff]  }
 0x215   : > { %973 = vmatprep.subr.bf16.mxu1 %v6980_v8  ;;  %1496 = vmatprep.subr.bf16.mxu0 %v7000_v22  ;;  %v6112_v24 = vld [vmem:[#allocation4] ss:$0 sm:$0xff]  ;;  %v7006_v34 = vld [vmem:[#allocation12 + $0x24] ss:$16 sps:$4 sm:$0xff]   ;;  %v7009_v35 = vld [vmem:[#allocation12 + $0x2c] ss:$16 sps:$4 sm:$0xff]  }
 0x216   : > { %6720 = vmatmul.mubr.msk.bf16.vlgmr.msra.gmra.mrb[0].mxu0 %vm813_vm1, %v789_v6  ;;  %v7001_v32 = vld [vmem:[#allocation12 + $0x8] ss:$16 sps:$4 sm:$0xff]   ;;  %v7004_v36 = vld [vmem:[#allocation12 + $0x20] ss:$16 sps:$4 sm:$0xff]   ;;  %v7012_v38 = vld [vmem:[#allocation12 + $0x44] ss:$16 sps:$4 sm:$0xff]  }
 0x217   : > { %1497 = vmatpush1.bf16.msra.mxu0 %v6998_v21  ;;  %v7007_v37 = vld [vmem:[#allocation12 + $0x28] ss:$16 sps:$4 sm:$0xff]   ;;  %v7015_v39 = vld [vmem:[#allocation12 + $0x4c] ss:$16 sps:$4 sm:$0xff]   ;;  %v7010_v40 = vld [vmem:[#allocation12 + $0x40] ss:$16 sps:$4 sm:$0xff]  }
 0x218   : > { %974 = vmatpush1.bf16.msra.mxu1 %v6982_v9  ;;  %1498 = vmatprep.subr.bf16.mxu0 %v7006_v34  ;;  %v7013_v41 = vld [vmem:[#allocation12 + $0x48] ss:$16 sps:$4 sm:$0xff]   ;;  %v7018_v42 = vld [vmem:[#allocation12 + $0x64] ss:$16 sps:$4 sm:$0xff]   ;;  %v7021_v43 = vld [vmem:[#allocation12 + $0x6c] ss:$16 sps:$4 sm:$0xff]  }
 0x219   : > { %975 = vmatprep.subr.bf16.mxu1 %v6983_v10  ;;  %v7016_v44 = vld [vmem:[#allocation12 + $0x60] ss:$16 sps:$4 sm:$0xff]   ;;  %v7019_v45 = vld [vmem:[#allocation12 + $0x68] ss:$16 sps:$4 sm:$0xff]   ;;  %v7024_v46 = vld [vmem:[#allocation12 + $0x84] ss:$16 sps:$4 sm:$0xff]  }
 0x21a   : > { %v7027_v47 = vld [vmem:[#allocation12 + $0x8c] ss:$16 sps:$4 sm:$0xff]   ;;  %v7022_v48 = vld [vmem:[#allocation12 + $0x80] ss:$16 sps:$4 sm:$0xff]   ;;  %v7025_v49 = vld [vmem:[#allocation12 + $0x88] ss:$16 sps:$4 sm:$0xff]  }
 0x21b   : > { %1499 = vmatpush1.bf16.msra.mxu0 %v7004_v36  ;;  %v7030_v50 = vld [vmem:[#allocation12 + $0xa4] ss:$16 sps:$4 sm:$0xff]   ;;  %v7033_v51 = vld [vmem:[#allocation12 + $0xac] ss:$16 sps:$4 sm:$0xff]   ;;  %v7028_v52 = vld [vmem:[#allocation12 + $0xa0] ss:$16 sps:$4 sm:$0xff]  }
 0x21c   : > { %976 = vmatpush1.bf16.msra.mxu1 %v6985_v11  ;;  %1500 = vmatprep.subr.bf16.mxu0 %v7012_v38  ;;  %v7031_v53 = vld [vmem:[#allocation12 + $0xa8] ss:$16 sps:$4 sm:$0xff]   ;;  %v7036_v54 = vld [vmem:[#allocation12 + $0xc4] ss:$16 sps:$4 sm:$0xff]   ;;  %v7039_v55 = vld [vmem:[#allocation12 + $0xcc] ss:$16 sps:$4 sm:$0xff]   ;;  %v879_v38 = vlaneseq }
 0x21d   : > { %977 = vmatprep.subr.bf16.mxu1 %v6986_v12  ;;  %v7034_v56 = vld [vmem:[#allocation12 + $0xc0] ss:$16 sps:$4 sm:$0xff]   ;;  %v7037_v57 = vld [vmem:[#allocation12 + $0xc8] ss:$16 sps:$4 sm:$0xff]   ;;  %v7042_v58 = vld [vmem:[#allocation12 + $0xe4] ss:$16 sps:$4 sm:$0xff]  }
 0x21e   : > { %v7045_v59 = vld [vmem:[#allocation12 + $0xec] ss:$16 sps:$4 sm:$0xff]   ;;  %v7040_v60 = vld [vmem:[#allocation12 + $0xe0] ss:$16 sps:$4 sm:$0xff]   ;;  %v7043_v61 = vld [vmem:[#allocation12 + $0xe8] ss:$16 sps:$4 sm:$0xff]  }
 0x21f   : > { %1501 = vmatpush1.bf16.msra.mxu0 %v7010_v40  ;;  %v7048_v62 = vld [vmem:[#allocation12 + $0x104] ss:$16 sps:$4 sm:$0xff]   ;;  %v7051_v63 = vld [vmem:[#allocation12 + $0x10c] ss:$16 sps:$4 sm:$0xff]   ;;  %v7046_v0 = vld [vmem:[#allocation12 + $0x100] ss:$16 sps:$4 sm:$0xff]  }
 0x220   : > { %978 = vmatpush1.bf16.msra.mxu1 %v6988_v13  ;;  %1502 = vmatprep.subr.bf16.mxu0 %v7018_v42  ;;  %v7049_v1 = vld [vmem:[#allocation12 + $0x108] ss:$16 sps:$4 sm:$0xff]   ;;  %v7054_v2 = vld [vmem:[#allocation12 + $0x124] ss:$16 sps:$4 sm:$0xff]   ;;  %v7057_v3 = vld [vmem:[#allocation12 + $0x12c] ss:$16 sps:$4 sm:$0xff]  }
 0x221   : > { %979 = vmatprep.subr.bf16.mxu1 %v6989_v14  ;;  %v7052_v4 = vld [vmem:[#allocation12 + $0x120] ss:$16 sps:$4 sm:$0xff]   ;;  %v7055_v5 = vld [vmem:[#allocation12 + $0x128] ss:$16 sps:$4 sm:$0xff]   ;;  %v7060_v6 = vld [vmem:[#allocation12 + $0x144] ss:$16 sps:$4 sm:$0xff]  }
 0x222   : > { %v7063_v7 = vld [vmem:[#allocation12 + $0x14c] ss:$16 sps:$4 sm:$0xff]   ;;  %v7058_v8 = vld [vmem:[#allocation12 + $0x140] ss:$16 sps:$4 sm:$0xff]   ;;  %v7061_v9 = vld [vmem:[#allocation12 + $0x148] ss:$16 sps:$4 sm:$0xff]  }
 0x223   : > { %1503 = vmatpush1.bf16.msra.mxu0 %v7016_v44  ;;  %v7066_v10 = vld [vmem:[#allocation12 + $0x164] ss:$16 sps:$4 sm:$0xff]   ;;  %v7069_v11 = vld [vmem:[#allocation12 + $0x16c] ss:$16 sps:$4 sm:$0xff]   ;;  %v7064_v12 = vld [vmem:[#allocation12 + $0x160] ss:$16 sps:$4 sm:$0xff]  }
 0x224   : > { %980 = vmatpush1.bf16.msra.mxu1 %v6991_v15  ;;  %1504 = vmatprep.subr.bf16.mxu0 %v7024_v46  ;;  %v7067_v13 = vld [vmem:[#allocation12 + $0x168] ss:$16 sps:$4 sm:$0xff]   ;;  %v7072_v14 = vld [vmem:[#allocation12 + $0x184] ss:$16 sps:$4 sm:$0xff]   ;;  %v7075_v15 = vld [vmem:[#allocation12 + $0x18c] ss:$16 sps:$4 sm:$0xff]  }
 0x225   : > { %981 = vmatprep.subr.bf16.mxu1 %v6992_v16  ;;  %v7070_v16 = vld [vmem:[#allocation12 + $0x180] ss:$16 sps:$4 sm:$0xff]   ;;  %v7079_v21 = vld [vmem:[#allocation12 + $0x1a8] ss:$16 sps:$4 sm:$0xff]   ;;  %v7084_v22 = vld [vmem:[#allocation12 + $0x1c4] ss:$16 sps:$4 sm:$0xff]  }
 0x226   : > { %v7076_v20 = vld [vmem:[#allocation12 + $0x1a0] ss:$16 sps:$4 sm:$0xff]   ;;  %vm1010_vm3 = vcmask 1041408   ;;  %s6109_s29 = sshll.u32 %s713_s17, 2  ;;  %s6110_s27 = sshll.u32 %s8175_s0, 2 }
 0x227   : > { %1505 = vmatpush1.bf16.msra.mxu0 %v7022_v48  ;;  %s724_s8 = scalar_lea.vmem [#allocation25], %s6109_s29  ;;  %p783_p12 = scmp.lt.s32.totalorder %s6110_s27, 7 }
 0x228   : > { %982 = vmatpush1.bf16.msra.mxu1 %v6994_v17  ;;  %1506 = vmatprep.subr.bf16.mxu0 %v7030_v50  ;;  %v7073_v17 = vld [vmem:[#allocation12 + $0x188] ss:$16 sps:$4 sm:$0xff]   ;;  %s9265_s30 = sld [smem:[#allocation51_spill]] }
 0x229   : > { %983 = vmatprep.subr.bf16.mxu1 %v6995_v18  ;;  %v7078_v18 = vld [vmem:[#allocation12 + $0x1a4] ss:$16 sps:$4 sm:$0xff]   ;;  %s9271_s27 = smov (!%p783_p12, %s6110_s27), 7 }
 0x22a   : > { %s6111_s11 = sshll.u32 %s9271_s27, 1 }
 0x22b   : > { %1507 = vmatpush1.bf16.msra.mxu0 %v7028_v52 }
 0x22c   : > { %984 = vmatpush1.bf16.msra.mxu1 %v6997_v19  ;;  %1508 = vmatprep.subr.bf16.mxu0 %v7036_v54  ;;  %v7081_v19 = vld [vmem:[#allocation12 + $0x1ac] ss:$16 sps:$4 sm:$0xff]  }
 0x22d   : > { %1537 = vmatprep.subr.bf16.mxu1 %v7003_v23  ;;  %v7087_v23 = vld [vmem:[#allocation12 + $0x1cc] ss:$16 sps:$4 sm:$0xff]  }
 0x22e   : > { %s786_s22 = scalar_lea.vmem %s9265_s30, %s6111_s11 }
 0x22f   : > { %1509 = vmatpush1.bf16.msra.mxu0 %v7034_v56 }
 0x230   : > { %1510 = vmatprep.subr.bf16.mxu0 %v7042_v58 }
 0x233   : > { %1511 = vmatpush1.bf16.msra.mxu0 %v7040_v60 }
 0x234   : > { %1512 = vmatprep.subr.bf16.mxu0 %v7048_v62 }
 0x237   : > { %1513 = vmatpush1.bf16.msra.mxu0 %v7046_v0 }
 0x238   : > { %1514 = vmatprep.subr.bf16.mxu0 %v7054_v2 }
 0x23b   : > { %1515 = vmatpush1.bf16.msra.mxu0 %v7052_v4 }
 0x23c   : > { %1516 = vmatprep.subr.bf16.mxu0 %v7060_v6 }
 0x23f   : > { %1517 = vmatpush1.bf16.msra.mxu0 %v7058_v8 }
 0x240   : > { %1518 = vmatprep.subr.bf16.mxu0 %v7066_v10 }
 0x243   : > { %1519 = vmatpush1.bf16.msra.mxu0 %v7064_v12 }
 0x244   : > { %1520 = vmatprep.subr.bf16.mxu0 %v7072_v14 }
 0x247   : > { %1521 = vmatpush1.bf16.msra.mxu0 %v7070_v16 }
 0x248   : > { %1522 = vmatprep.subr.bf16.mxu0 %v7078_v18 }
 0x24b   : > { %1523 = vmatpush1.bf16.msra.mxu0 %v7076_v20 }
 0x24c   : > { %1524 = vmatprep.subr.bf16.mxu0 %v7084_v22 }
 0x2e9   : > { %v851_v25 = vpop.f32.mrb[0].mxu0 }
 0x2ea   : > { %v852_v26 = vadd.f32 %v6112_v24, %v851_v25  ;;  %v6721_v27 = vpop.f32.mrb[1].mxu0  ;;  %v7082_v24 = vld [vmem:[#allocation12 + $0x1c0] ss:$16 sps:$4 sm:$0xff]   ;;  %v7085_v25 = vld [vmem:[#allocation12 + $0x1c8] ss:$16 sps:$4 sm:$0xff]  }
 0x2eb   : > { %v854_v28 = vpop.f32.mrb[2].mxu0  ;;  %1525 = vmatpush1.bf16.msra.mxu0 %v7082_v24  ;;  %v7088_v27 = vld [vmem:[#allocation12 + $0x1e0] ss:$16 sps:$4 sm:$0xff]  }
 0x2ec   : > { %vm857_vm2 = vcmp.gt.f32.partialorder %v852_v26, 0.0  ;;  %v858_v29 = vmul.f32 0.2, %v852_v26  ;;  %v6722_v30 = vpop.f32.mrb[3].mxu0  ;;  %v7091_v28 = vld [vmem:[#allocation12 + $0x1e8] ss:$16 sps:$4 sm:$0xff]  }
 0x2ed   : > { %v8637_v30 = vld [vmem:[#allocation18] sm:$0xff] }
 0x2ee   : > { %v859_v31 = vsel %vm857_vm2, %v852_v26, %v858_v29  ;;  %v7090_v26 = vld [vmem:[#allocation12 + $0x1e4] ss:$16 sps:$4 sm:$0xff]   ;;  %v7093_v29 = vld [vmem:[#allocation12 + $0x1ec] ss:$16 sps:$4 sm:$0xff]  }
 0x2ef   : > { %v860_v33 = vpack.c.bf16 %v859_v31, %v859_v31  ;;  %1526 = vmatprep.subr.bf16.mxu0 %v7090_v26  ;;  %v8639_v31 = vld [vmem:[#allocation18 + $0x20] sm:$0xff]  ;;  %v1068_v26 = vld [vmem:[#allocation10] sm:$0x3] }
 0x2f0   : > { %1527 = vmatpush1.bf16.msra.mxu0 %v7088_v27  ;;  %v6197_v34 = vcombine.high %v8637_v30, %v8639_v31 }
 0x2f1   : > { %1002 = vmatmul.mubr.bf16.vlgmr.msra.gmra.mrb[0].mxu1 %v860_v33  ;;  %v6196_v33 = vcombine.low %v8637_v30, %v8639_v31  ;;  %v1751_v31 = vld [vmem:[#allocation18 + $0xa8] sm:$0xff] }
 0x2f2   : > { %1538 = vmatpush1.bf16.msra.mxu1 %v7001_v32  ;;  %v8641_v32 = vld [vmem:[#allocation18 + $0x8] sm:$0xff]  ;;  %3308 = vmatprep.subr.bf16.mxu0 %v6197_v34 }
 0x2f3   : > { %1539 = vmatprep.subr.bf16.mxu1 %v7009_v35  ;;  %v8647_v35 = vld [vmem:[#allocation18 + $0x28] sm:$0xff] }
 0x2f4   : > { %v6198_v36 = vcombine.low %v8641_v32, %v8647_v35 }
 0x2f6   : > { %1540 = vmatpush1.bf16.msra.mxu1 %v7007_v37  ;;  %v6199_v37 = vcombine.high %v8641_v32, %v8647_v35 }
 0x2f7   : > { %1541 = vmatprep.subr.bf16.mxu1 %v7015_v39  ;;  %v8653_v39 = vshrl.u32 %v879_v38, 7 }
 0x2f9   : > { %v8656_v40 = vsub.s32 0, %v8653_v39  ;;  %v8659_v42 = vsub.s32 1, %v8653_v39 }
 0x2fa   : > { %1542 = vmatpush1.bf16.msra.mxu1 %v7013_v41  ;;  %v877_v41 = vld [vmem:[#allocation7] sm:$0x3] }
 0x2fb   : > { %1543 = vmatprep.subr.bf16.mxu1 %v7021_v43  ;;  %v882_v43 = vrot.slane %v877_v41, %v8656_v40  ;;  %v886_v44 = vrot.slane %v877_v41, %v8659_v42  ;;  %v1073_v38 = vrot.slane %v1068_v26, %v8656_v40 }
 0x2fe   : > { %1544 = vmatpush1.bf16.msra.mxu1 %v7019_v45 }
 0x2ff   : > { %1545 = vmatprep.subr.bf16.mxu1 %v7027_v47 }
 0x302   : > { %1546 = vmatpush1.bf16.msra.mxu1 %v7025_v49 }
 0x303   : > { %1547 = vmatprep.subr.bf16.mxu1 %v7033_v51 }
 0x306   : > { %1548 = vmatpush1.bf16.msra.mxu1 %v7031_v53 }
 0x307   : > { %1549 = vmatprep.subr.bf16.mxu1 %v7039_v55 }
 0x30a   : > { %1550 = vmatpush1.bf16.msra.mxu1 %v7037_v57 }
 0x30b   : > { %1551 = vmatprep.subr.bf16.mxu1 %v7045_v59 }
 0x30e   : > { %1552 = vmatpush1.bf16.msra.mxu1 %v7043_v61 }
 0x30f   : > { %1553 = vmatprep.subr.bf16.mxu1 %v7051_v63 }
 0x312   : > { %1554 = vmatpush1.bf16.msra.mxu1 %v7049_v1 }
 0x313   : > { %1555 = vmatprep.subr.bf16.mxu1 %v7057_v3 }
 0x316   : > { %1556 = vmatpush1.bf16.msra.mxu1 %v7055_v5 }
 0x317   : > { %1557 = vmatprep.subr.bf16.mxu1 %v7063_v7 }
 0x31a   : > { %1558 = vmatpush1.bf16.msra.mxu1 %v7061_v9 }
 0x31b   : > { %1559 = vmatprep.subr.bf16.mxu1 %v7069_v11 }
 0x31e   : > { %1560 = vmatpush1.bf16.msra.mxu1 %v7067_v13 }
 0x31f   : > { %1561 = vmatprep.subr.bf16.mxu1 %v7075_v15 }
 0x322   : > { %1562 = vmatpush1.bf16.msra.mxu1 %v7073_v17 }
 0x323   : > { %1563 = vmatprep.subr.bf16.mxu1 %v7081_v19 }
 0x326   : > { %1564 = vmatpush1.bf16.msra.mxu1 %v7079_v21 }
 0x327   : > { %1565 = vmatprep.subr.bf16.mxu1 %v7087_v23 }
 0x32a   : > { %1566 = vmatpush1.bf16.msra.mxu1 %v7085_v25  ;;  %v1054_v25 = vld [vmem:[#allocation9] sm:$0x3] }
 0x32b   : > { %1567 = vmatprep.subr.bf16.mxu1 %v7093_v29  ;;  %v1059_v27 = vrot.slane %v1054_v25, %v8656_v40  ;;  %v1063_v29 = vrot.slane %v1054_v25, %v8659_v42  ;;  %v1782_v25 = vld [vmem:[#allocation18 + $0x1a0] sm:$0xff] }
 0x32e   : > { %1568 = vmatpush1.bf16.msra.mxu1 %v7091_v28 }
 0x32f   : > { %3390 = vmatprep.subr.bf16.mxu1 %v6199_v37 }
 0x3c4   : > { %v1003_v45 = vpop.f32.mrb[0].mxu1 }
 0x3c5   : > { %v1004_v46 = vadd.f32 %v1003_v45, %v882_v43  ;;  %v1005_v47 = vpop.f32.mrb[1].mxu1  ;;  %v1077_v43 = vrot.slane %v1068_v26, %v8659_v42  ;;  %v1779_v26 = vld [vmem:[#allocation18 + $0x188] sm:$0xff] }
 0x3c6   : > { %v1006_v48 = vadd.f32 %v1005_v47, %v886_v44  ;;  %v1007_v49 = vpop.f32.mrb[2].mxu1 }
 0x3c7   : > { %v1011_v50 = vsel %vm1010_vm3, %v1004_v46, 0.0  ;;  %v1008_v51 = vpop.f32.mrb[3].mxu1 }
 0x3c8   : > { %v1012_v52 = vrot.slane %v1011_v50, 4  ;;  %v1018_v53 = vsel %vm1010_vm3, %v1006_v48, 0.0 }
 0x3c9   : > { %v1019_v54 = vrot.slane %v1018_v53, 4 }
 0x3ca   : > { %v1013_v55 = vadd.f32 %v1012_v52, %v1011_v50 }
 0x3cb   : > { %v1020_v56 = vadd.f32 %v1019_v54, %v1018_v53  ;;  %v1738_v54 = vld [vmem:[#allocation18 + $0x40] sm:$0xff] }
 0x3cc   : > { %v1014_v57 = vrot.slane %v1013_v55, 2 }
 0x3cd   : > { %v1021_v58 = vrot.slane %v1020_v56, 2 }
 0x3ce   : > { %v1015_v59 = vadd.f32 %v1014_v57, %v1013_v55  ;;  %v1742_v55 = vld [vmem:[#allocation18 + $0x60] sm:$0xff] }
 0x3cf   : > { %v1022_v60 = vadd.f32 %v1021_v58, %v1020_v56  ;;  %v1739_v56 = vld [vmem:[#allocation18 + $0x48] sm:$0xff]  ;;  %v6205_v57 = vcombine.high %v1738_v54, %v1742_v55 }
 0x3d0   : > { %v1016_v61 = vrot.slane %v1015_v59, 1  ;;  %v1743_v58 = vld [vmem:[#allocation18 + $0x68] sm:$0xff] }
 0x3d1   : > { %v1023_v62 = vrot.slane %v1022_v60, 1 }
 0x3d2   : > { %v1017_v63 = vadd.f32 %v1016_v61, %v1015_v59  ;;  %v6204_v59 = vcombine.low %v1738_v54, %v1742_v55  ;;  %v6207_v61 = vcombine.high %v1739_v56, %v1743_v58 }
 0x3d3   : > { %v1024_v0 = vadd.f32 %v1023_v62, %v1022_v60  ;;  %v6206_v60 = vcombine.low %v1739_v56, %v1743_v58  ;;  %v1746_v62 = vld [vmem:[#allocation18 + $0x80] sm:$0xff] }
 0x3d4   : > { %v1026_v1 = vmul.f32 0.5, %v1017_v63  ;;  %v1750_v63 = vld [vmem:[#allocation18 + $0xa0] sm:$0xff] }
 0x3d5   : > { %v1027_v2 = vmul.f32 0.5, %v1024_v0  ;;  %v1747_v0 = vld [vmem:[#allocation18 + $0x88] sm:$0xff]  ;;  %v6213_v30 = vcombine.high %v1746_v62, %v1750_v63  ;;  %v1806_v58 = vld [vmem:[#allocation18 + $0x260] sm:$0xff] }
 0x3d6   : > { %v1028_v3 = vsub.f32 %v1004_v46, %v1026_v1  ;;  %v6214_v32 = vcombine.low %v1747_v0, %v1751_v31  ;;  %v6215_v35 = vcombine.high %v1747_v0, %v1751_v31  ;;  %v1758_v1 = vld [vmem:[#allocation18 + $0xe0] sm:$0xff] }
 0x3d7   : > { %v1029_v4 = vsub.f32 %v1006_v48, %v1027_v2  ;;  %v1755_v2 = vld [vmem:[#allocation18 + $0xc8] sm:$0xff]  ;;  %v1814_v31 = vld [vmem:[#allocation18 + $0x2a0] sm:$0xff] }
 0x3d8   : > { %v1030_v5 = vmul.f32 %v1028_v3, %v1028_v3 }
 0x3d9   : > { %v1031_v6 = vmul.f32 %v1029_v4, %v1029_v4 }
 0x3da   : > { %v1032_v7 = vsel %vm1010_vm3, %v1030_v5, 0.0 }
 0x3db   : > { %v1033_v8 = vrot.slane %v1032_v7, 4  ;;  %v1039_v9 = vsel %vm1010_vm3, %v1031_v6, 0.0 }
 0x3dc   : > { %v1040_v10 = vrot.slane %v1039_v9, 4 }
 0x3dd   : > { %v1034_v11 = vadd.f32 %v1033_v8, %v1032_v7  ;;  %v1762_v8 = vld [vmem:[#allocation18 + $0x100] sm:$0xff] }
 0x3de   : > { %v1041_v12 = vadd.f32 %v1040_v10, %v1039_v9  ;;  %v1766_v9 = vld [vmem:[#allocation18 + $0x120] sm:$0xff]  ;;  %v1763_v10 = vld [vmem:[#allocation18 + $0x108] sm:$0xff] }
 0x3df   : > { %v1035_v13 = vrot.slane %v1034_v11, 2 }
 0x3e0   : > { %v1042_v14 = vrot.slane %v1041_v12, 2 }
 0x3e1   : > { %v1036_v15 = vadd.f32 %v1035_v13, %v1034_v11  ;;  %v6229_v11 = vcombine.high %v1762_v8, %v1766_v9  ;;  %v6228_v13 = vcombine.low %v1762_v8, %v1766_v9 }
 0x3e2   : > { %v1043_v16 = vadd.f32 %v1042_v14, %v1041_v12  ;;  %v1767_v12 = vld [vmem:[#allocation18 + $0x128] sm:$0xff] }
 0x3e3   : > { %v1037_v17 = vrot.slane %v1036_v15, 1  ;;  %v6230_v14 = vcombine.low %v1763_v10, %v1767_v12 }
 0x3e4   : > { %v1044_v18 = vrot.slane %v1043_v16, 1 }
 0x3e5   : > { %v1038_v19 = vadd.f32 %v1037_v17, %v1036_v15  ;;  %v6231_v15 = vcombine.high %v1763_v10, %v1767_v12  ;;  %v1774_v17 = vld [vmem:[#allocation18 + $0x160] sm:$0xff] }
 0x3e6   : > { %v1045_v20 = vadd.f32 %v1044_v18, %v1043_v16  ;;  %v1770_v16 = vld [vmem:[#allocation18 + $0x140] sm:$0xff]  ;;  %v1771_v18 = vld [vmem:[#allocation18 + $0x148] sm:$0xff] }
 0x3e7   : > { %v1046_v21 = vmul.f32 0.5, %v1038_v19  ;;  %v6237_v19 = vcombine.high %v1770_v16, %v1774_v17  ;;  %v1830_v12 = vld [vmem:[#allocation18 + $0x320] sm:$0xff] }
 0x3e8   : > { %v1047_v22 = vmul.f32 0.5, %v1045_v20  ;;  %v1775_v20 = vld [vmem:[#allocation18 + $0x168] sm:$0xff] }
 0x3e9   : > { %v1048_v23 = vadd.f32 0.8, %v1046_v21  ;;  %v6236_v21 = vcombine.low %v1770_v16, %v1774_v17 }
 0x3ea   : > { %v1049_v24 = vadd.f32 0.8, %v1047_v22  ;;  %v6238_v22 = vcombine.low %v1771_v18, %v1775_v20 }
 0x3eb   : > { %7478 = vrsqrt.f32 %v1048_v23  ;;  %v6239_v23 = vcombine.high %v1771_v18, %v1775_v20  ;;  %v1838_v20 = vld [vmem:[#allocation18 + $0x360] sm:$0xff] }
 0x3ec   : > { %7480 = vrsqrt.f32 %v1049_v24  ;;  %v1778_v24 = vld [vmem:[#allocation18 + $0x180] sm:$0xff] }
 0x3f5   : > { %v7479_v28 = vpop.eup %7478 }
 0x3f6   : > { %v7481_v34 = vpop.eup %7480  ;;  %v1052_v37 = vmul.f32 %v7479_v28, %v1028_v3  ;;  %v1783_v28 = vld [vmem:[#allocation18 + $0x1a8] sm:$0xff] }
 0x3f7   : > { %v1053_v41 = vmul.f32 %v7481_v34, %v1029_v4  ;;  %v1759_v4 = vld [vmem:[#allocation18 + $0xe8] sm:$0xff]  ;;  %v6246_v34 = vcombine.low %v1779_v26, %v1783_v28 }
 0x3f8   : > { %v1066_v44 = vmul.f32 %v1059_v27, %v1052_v37  ;;  %v6222_v6 = vcombine.low %v1755_v2, %v1759_v4  ;;  %v6223_v7 = vcombine.high %v1755_v2, %v1759_v4  ;;  %v6245_v27 = vcombine.high %v1778_v24, %v1782_v25  ;;  %v1822_v4 = vld [vmem:[#allocation18 + $0x2e0] sm:$0xff] }
 0x3f9   : > { %v1067_v45 = vmul.f32 %v1063_v29, %v1053_v41  ;;  %v6244_v29 = vcombine.low %v1778_v24, %v1782_v25  ;;  %v6247_v37 = vcombine.high %v1779_v26, %v1783_v28  ;;  %v1790_v41 = vld [vmem:[#allocation18 + $0x1e0] sm:$0xff] }
 0x3fa   : > { %v1080_v46 = vadd.f32 %v1073_v38, %v1066_v44  ;;  %v1786_v38 = vld [vmem:[#allocation18 + $0x1c0] sm:$0xff] }
 0x3fb   : > { %v1081_v47 = vadd.f32 %v1077_v43, %v1067_v45  ;;  %v1787_v43 = vld [vmem:[#allocation18 + $0x1c8] sm:$0xff]  ;;  %v6253_v44 = vcombine.high %v1786_v38, %v1790_v41  ;;  %v1846_v28 = vld [vmem:[#allocation18 + $0x3a0] sm:$0xff] }
 0x3fc   : > { %vm1082_vm4 = vcmp.gt.f32.partialorder %v1080_v46, 0.0  ;;  %v1084_v48 = vmul.f32 0.2, %v1080_v46  ;;  %v1791_v45 = vld [vmem:[#allocation18 + $0x1e8] sm:$0xff] }
 0x3fd   : > { %vm1083_vm5 = vcmp.gt.f32.partialorder %v1081_v47, 0.0  ;;  %v1085_v49 = vmul.f32 0.2, %v1081_v47 }
 0x3fe   : > { %v1086_v50 = vsel %vm1082_vm4, %v1080_v46, %v1084_v48  ;;  %v6252_v46 = vcombine.low %v1786_v38, %v1790_v41  ;;  %v6255_v48 = vcombine.high %v1787_v43, %v1791_v45 }
 0x3ff   : > { %v1087_v51 = vsel %vm1083_vm5, %v1081_v47, %v1085_v49  ;;  %v1088_v53 = vpack.c.bf16 %v1086_v50, %v1086_v50  ;;  %v6254_v47 = vcombine.low %v1787_v43, %v1791_v45  ;;  %v1794_v49 = vld [vmem:[#allocation18 + $0x200] sm:$0xff] }
 0x400   : > { %v1089_v52 = vpack.c.bf16 %v1087_v51, %v1087_v51  ;;  %v1798_v50 = vld [vmem:[#allocation18 + $0x220] sm:$0xff]  ;;  %v1795_v51 = vld [vmem:[#allocation18 + $0x208] sm:$0xff] }
 0x401   : > { %v6260_v54 = vcombine.low %v1794_v49, %v1798_v50  ;;  %v1854_v45 = vld [vmem:[#allocation18 + $0x3e0] sm:$0xff] }
 0x402   : > { %1528 = vmatprep.mubr.bf16.mxu0 %v1089_v52  ;;  %1569 = vmatprep.mubr.bf16.mxu1 %v1089_v52  ;;  %v6261_v52 = vcombine.high %v1794_v49, %v1798_v50  ;;  %v1855_v49 = vld [vmem:[#allocation18 + $0x3e8] sm:$0xff] }
 0x403   : > { %1529 = vmatmul.mubr.bf16.vlgmr.msra.gmra.mrb[4].mxu0 %v1088_v53  ;;  %1570 = vmatmul.mubr.bf16.vlgmr.msra.gmra.mrb[4].mxu1 %v1088_v53  ;;  %v1799_v53 = vld [vmem:[#allocation18 + $0x228] sm:$0xff] }
 0x404   : > { %3309 = vmatpush1.bf16.msra.mxu0 %v6196_v33  ;;  %3391 = vmatpush1.bf16.msra.mxu1 %v6198_v36  ;;  %v6212_v33 = vcombine.low %v1746_v62, %v1750_v63  ;;  %v1754_v36 = vld [vmem:[#allocation18 + $0xc0] sm:$0xff]  ;;  %v6262_v55 = vcombine.low %v1795_v51, %v1799_v53  ;;  %v6263_v56 = vcombine.high %v1795_v51, %v1799_v53 }
 0x405   : > { %3310 = vmatprep.subr.bf16.mxu0 %v6205_v57  ;;  %3392 = vmatprep.subr.bf16.mxu1 %v6207_v61  ;;  %v6221_v3 = vcombine.high %v1754_v36, %v1758_v1  ;;  %v6220_v5 = vcombine.low %v1754_v36, %v1758_v1  ;;  %v1802_v57 = vld [vmem:[#allocation18 + $0x240] sm:$0xff]  ;;  %v1807_v61 = vld [vmem:[#allocation18 + $0x268] sm:$0xff] }
 0x406   : > { %v6268_v62 = vcombine.low %v1802_v57, %v1806_v58  ;;  %v8679_v53 = vld [vmem:[#allocation18 + $0x420] sm:$0xff] }
 0x408   : > { %3311 = vmatpush1.bf16.msra.mxu0 %v6204_v59  ;;  %3393 = vmatpush1.bf16.msra.mxu1 %v6206_v60  ;;  %v1803_v59 = vld [vmem:[#allocation18 + $0x248] sm:$0xff]  ;;  %v6269_v60 = vcombine.high %v1802_v57, %v1806_v58 }
 0x409   : > { %3312 = vmatprep.subr.bf16.mxu0 %v6213_v30  ;;  %3394 = vmatprep.subr.bf16.mxu1 %v6215_v35  ;;  %v6270_v63 = vcombine.low %v1803_v59, %v1807_v61  ;;  %v6271_v0 = vcombine.high %v1803_v59, %v1807_v61  ;;  %v1810_v30 = vld [vmem:[#allocation18 + $0x280] sm:$0xff]  ;;  %v1815_v35 = vld [vmem:[#allocation18 + $0x2a8] sm:$0xff]  ;;  %v1154_v61 = vld [vmem:[#allocation13] sm:$0xf] }
 0x40a   : > { %v6276_v36 = vcombine.low %v1810_v30, %v1814_v31 }
 0x40c   : > { %3313 = vmatpush1.bf16.msra.mxu0 %v6212_v33  ;;  %3395 = vmatpush1.bf16.msra.mxu1 %v6214_v32  ;;  %v1811_v33 = vld [vmem:[#allocation18 + $0x288] sm:$0xff]  ;;  %v6277_v32 = vcombine.high %v1810_v30, %v1814_v31  ;;  %v1163_v30 = vrot.slane %v1154_v61, %v8659_v42 }
 0x40d   : > { %3314 = vmatprep.subr.bf16.mxu0 %v6221_v3  ;;  %3396 = vmatprep.subr.bf16.mxu1 %v6223_v7  ;;  %v6278_v1 = vcombine.low %v1811_v33, %v1815_v35  ;;  %v6279_v2 = vcombine.high %v1811_v33, %v1815_v35  ;;  %v1818_v3 = vld [vmem:[#allocation18 + $0x2c0] sm:$0xff]  ;;  %v1823_v7 = vld [vmem:[#allocation18 + $0x2e8] sm:$0xff] }
 0x40e   : > { %v6284_v8 = vcombine.low %v1818_v3, %v1822_v4 }
 0x410   : > { %3315 = vmatpush1.bf16.msra.mxu0 %v6220_v5  ;;  %3397 = vmatpush1.bf16.msra.mxu1 %v6222_v6  ;;  %v1819_v5 = vld [vmem:[#allocation18 + $0x2c8] sm:$0xff]  ;;  %v6285_v6 = vcombine.high %v1818_v3, %v1822_v4 }
 0x411   : > { %3316 = vmatprep.subr.bf16.mxu0 %v6229_v11  ;;  %3398 = vmatprep.subr.bf16.mxu1 %v6231_v15  ;;  %v6286_v9 = vcombine.low %v1819_v5, %v1823_v7  ;;  %v6287_v10 = vcombine.high %v1819_v5, %v1823_v7  ;;  %v1826_v11 = vld [vmem:[#allocation18 + $0x300] sm:$0xff]  ;;  %v1831_v15 = vld [vmem:[#allocation18 + $0x328] sm:$0xff] }
 0x412   : > { %v6292_v16 = vcombine.low %v1826_v11, %v1830_v12 }
 0x414   : > { %3317 = vmatpush1.bf16.msra.mxu0 %v6228_v13  ;;  %3399 = vmatpush1.bf16.msra.mxu1 %v6230_v14  ;;  %v1827_v13 = vld [vmem:[#allocation18 + $0x308] sm:$0xff]  ;;  %v6293_v14 = vcombine.high %v1826_v11, %v1830_v12 }
 0x415   : > { %3318 = vmatprep.subr.bf16.mxu0 %v6237_v19  ;;  %3400 = vmatprep.subr.bf16.mxu1 %v6239_v23  ;;  %v6294_v17 = vcombine.low %v1827_v13, %v1831_v15  ;;  %v6295_v18 = vcombine.high %v1827_v13, %v1831_v15  ;;  %v1834_v19 = vld [vmem:[#allocation18 + $0x340] sm:$0xff]  ;;  %v1839_v23 = vld [vmem:[#allocation18 + $0x368] sm:$0xff] }
 0x416   : > { %v6300_v24 = vcombine.low %v1834_v19, %v1838_v20 }
 0x418   : > { %3319 = vmatpush1.bf16.msra.mxu0 %v6236_v21  ;;  %3401 = vmatpush1.bf16.msra.mxu1 %v6238_v22  ;;  %v6301_v21 = vcombine.high %v1834_v19, %v1838_v20  ;;  %v1835_v22 = vld [vmem:[#allocation18 + $0x348] sm:$0xff] }
 0x419   : > { %3320 = vmatprep.subr.bf16.mxu0 %v6245_v27  ;;  %3402 = vmatprep.subr.bf16.mxu1 %v6247_v37  ;;  %v6302_v25 = vcombine.low %v1835_v22, %v1839_v23  ;;  %v6303_v26 = vcombine.high %v1835_v22, %v1839_v23  ;;  %v1842_v27 = vld [vmem:[#allocation18 + $0x380] sm:$0xff]  ;;  %v1847_v37 = vld [vmem:[#allocation18 + $0x3a8] sm:$0xff] }
 0x41a   : > { %v6308_v38 = vcombine.low %v1842_v27, %v1846_v28 }
 0x41c   : > { %3321 = vmatpush1.bf16.msra.mxu0 %v6244_v29  ;;  %3403 = vmatpush1.bf16.msra.mxu1 %v6246_v34  ;;  %v1843_v29 = vld [vmem:[#allocation18 + $0x388] sm:$0xff]  ;;  %v6309_v34 = vcombine.high %v1842_v27, %v1846_v28 }
 0x41d   : > { %3322 = vmatprep.subr.bf16.mxu0 %v6253_v44  ;;  %3404 = vmatprep.subr.bf16.mxu1 %v6255_v48  ;;  %v6310_v41 = vcombine.low %v1843_v29, %v1847_v37  ;;  %v6311_v43 = vcombine.high %v1843_v29, %v1847_v37  ;;  %v1850_v44 = vld [vmem:[#allocation18 + $0x3c0] sm:$0xff] }
 0x41e   : > { %v6317_v48 = vcombine.high %v1850_v44, %v1854_v45 }
 0x420   : > { %3323 = vmatpush1.bf16.msra.mxu0 %v6252_v46  ;;  %3405 = vmatpush1.bf16.msra.mxu1 %v6254_v47  ;;  %v1851_v46 = vld [vmem:[#allocation18 + $0x3c8] sm:$0xff]  ;;  %v6316_v47 = vcombine.low %v1850_v44, %v1854_v45 }
 0x421   : > { %3324 = vmatprep.subr.bf16.mxu0 %v6261_v52  ;;  %3406 = vmatprep.subr.bf16.mxu1 %v6263_v56  ;;  %v6318_v50 = vcombine.low %v1851_v46, %v1855_v49  ;;  %v6319_v51 = vcombine.high %v1851_v46, %v1855_v49  ;;  %v8677_v52 = vld [vmem:[#allocation18 + $0x400] sm:$0xff]  ;;  %v8685_v56 = vld [vmem:[#allocation18 + $0x428] sm:$0xff] }
 0x422   : > { %v6324_v57 = vcombine.low %v8677_v52, %v8679_v53 }
 0x424   : > { %3325 = vmatpush1.bf16.msra.mxu0 %v6260_v54  ;;  %3407 = vmatpush1.bf16.msra.mxu1 %v6262_v55  ;;  %v8681_v54 = vld [vmem:[#allocation18 + $0x408] sm:$0xff]  ;;  %v6325_v55 = vcombine.high %v8677_v52, %v8679_v53 }
 0x425   : > { %3326 = vmatprep.subr.bf16.mxu0 %v6269_v60  ;;  %3408 = vmatprep.subr.bf16.mxu1 %v6271_v0  ;;  %v6326_v58 = vcombine.low %v8681_v54, %v8685_v56  ;;  %v6327_v59 = vcombine.high %v8681_v54, %v8685_v56  ;;  %v8694_v60 = vsub.s32 2, %v8653_v39 }
 0x427   : > { %v1167_v0 = vrot.slane %v1154_v61, %v8694_v60 }
 0x428   : > { %3327 = vmatpush1.bf16.msra.mxu0 %v6268_v62  ;;  %3409 = vmatpush1.bf16.msra.mxu1 %v6270_v63  ;;  %v8697_v62 = vsub.s32 3, %v8653_v39  ;;  %v1159_v63 = vrot.slane %v1154_v61, %v8656_v40 }
 0x429   : > { %3328 = vmatprep.subr.bf16.mxu0 %v6277_v32  ;;  %3410 = vmatprep.subr.bf16.mxu1 %v6279_v2 }
 0x42a   : > { %v1171_v31 = vrot.slane %v1154_v61, %v8697_v62 }
 0x42c   : > { %3329 = vmatpush1.bf16.msra.mxu0 %v6276_v36  ;;  %3411 = vmatpush1.bf16.msra.mxu1 %v6278_v1 }
 0x42d   : > { %3330 = vmatprep.subr.bf16.mxu0 %v6285_v6  ;;  %3412 = vmatprep.subr.bf16.mxu1 %v6287_v10 }
 0x430   : > { %3331 = vmatpush1.bf16.msra.mxu0 %v6284_v8  ;;  %3413 = vmatpush1.bf16.msra.mxu1 %v6286_v9 }
 0x431   : > { %3332 = vmatprep.subr.bf16.mxu0 %v6293_v14  ;;  %3414 = vmatprep.subr.bf16.mxu1 %v6295_v18 }
 0x434   : > { %3333 = vmatpush1.bf16.msra.mxu0 %v6292_v16  ;;  %3415 = vmatpush1.bf16.msra.mxu1 %v6294_v17 }
 0x435   : > { %3334 = vmatprep.subr.bf16.mxu0 %v6301_v21  ;;  %3416 = vmatprep.subr.bf16.mxu1 %v6303_v26 }
 0x438   : > { %3335 = vmatpush1.bf16.msra.mxu0 %v6300_v24  ;;  %3417 = vmatpush1.bf16.msra.mxu1 %v6302_v25 }
 0x439   : > { %3336 = vmatprep.subr.bf16.mxu0 %v6309_v34  ;;  %3418 = vmatprep.subr.bf16.mxu1 %v6311_v43 }
 0x43c   : > { %3337 = vmatpush1.bf16.msra.mxu0 %v6308_v38  ;;  %3419 = vmatpush1.bf16.msra.mxu1 %v6310_v41 }
 0x43d   : > { %3338 = vmatprep.subr.bf16.mxu0 %v6317_v48  ;;  %3420 = vmatprep.subr.bf16.mxu1 %v6319_v51 }
 0x440   : > { %3339 = vmatpush1.bf16.msra.mxu0 %v6316_v47  ;;  %3421 = vmatpush1.bf16.msra.mxu1 %v6318_v50 }
 0x441   : > { %3349 = vmatprep.subr.bf16.mxu0 %v6325_v55  ;;  %3431 = vmatprep.subr.bf16.mxu1 %v6327_v59 }
 0x4d6   : > { %v1530_v33 = vpop.f32.mrb[4].mxu0  ;;  %v1571_v32 = vpop.f32.mrb[4].mxu1 }
 0x4d7   : > { %v1531_v35 = vadd.f32 %v1530_v33, %v1159_v63  ;;  %v1572_v36 = vadd.f32 %v1571_v32, %v1167_v0  ;;  %v1532_v1 = vpop.f32.mrb[5].mxu0  ;;  %v1573_v2 = vpop.f32.mrb[5].mxu1 }
 0x4d8   : > { %v1533_v3 = vadd.f32 %v1532_v1, %v1163_v30  ;;  %v1574_v4 = vadd.f32 %v1573_v2, %v1171_v31  ;;  %v1534_v5 = vpop.f32.mrb[6].mxu0  ;;  %v1575_v6 = vpop.f32.mrb[6].mxu1 }
 0x4d9   : > { %v1578_v7 = vsel %vm1010_vm3, %v1531_v35, 0.0  ;;  %v1592_v8 = vsel %vm1010_vm3, %v1572_v36, 0.0  ;;  %v1535_v9 = vpop.f32.mrb[7].mxu0  ;;  %v1576_v10 = vpop.f32.mrb[7].mxu1 }
 0x4da   : > { %v1579_v11 = vrot.slane %v1578_v7, 4  ;;  %v1593_v12 = vrot.slane %v1592_v8, 4  ;;  %v1585_v13 = vsel %vm1010_vm3, %v1533_v3, 0.0  ;;  %v1599_v14 = vsel %vm1010_vm3, %v1574_v4, 0.0 }
 0x4db   : > { %v1586_v15 = vrot.slane %v1585_v13, 4  ;;  %v1600_v16 = vrot.slane %v1599_v14, 4 }
 0x4dc   : > { %v1580_v17 = vadd.f32 %v1579_v11, %v1578_v7  ;;  %v1594_v18 = vadd.f32 %v1593_v12, %v1592_v8 }
 0x4dd   : > { %v1587_v19 = vadd.f32 %v1586_v15, %v1585_v13  ;;  %v1601_v20 = vadd.f32 %v1600_v16, %v1599_v14 }
 0x4de   : > { %v1581_v21 = vrot.slane %v1580_v17, 2  ;;  %v1595_v22 = vrot.slane %v1594_v18, 2 }
 0x4df   : > { %v1588_v23 = vrot.slane %v1587_v19, 2  ;;  %v1602_v24 = vrot.slane %v1601_v20, 2 }
 0x4e0   : > { %v1582_v25 = vadd.f32 %v1581_v21, %v1580_v17  ;;  %v1596_v26 = vadd.f32 %v1595_v22, %v1594_v18 }
 0x4e1   : > { %v1589_v27 = vadd.f32 %v1588_v23, %v1587_v19  ;;  %v1603_v28 = vadd.f32 %v1602_v24, %v1601_v20 }
 0x4e2   : > { %v1583_v29 = vrot.slane %v1582_v25, 1  ;;  %v1597_v34 = vrot.slane %v1596_v26, 1 }
 0x4e3   : > { %v1590_v37 = vrot.slane %v1589_v27, 1  ;;  %v1604_v38 = vrot.slane %v1603_v28, 1 }
 0x4e4   : > { %v1584_v41 = vadd.f32 %v1583_v29, %v1582_v25  ;;  %v1598_v43 = vadd.f32 %v1597_v34, %v1596_v26 }
 0x4e5   : > { %v1591_v44 = vadd.f32 %v1590_v37, %v1589_v27  ;;  %v1605_v45 = vadd.f32 %v1604_v38, %v1603_v28  ;;  %v1662_v38 = vld [vmem:[#allocation15] sm:$0xf] }
 0x4e6   : > { %v1606_v46 = vmul.f32 0.5, %v1584_v41  ;;  %v1608_v47 = vmul.f32 0.5, %v1598_v43  ;;  %v1688_v41 = vld [vmem:[#allocation16] sm:$0xf]  ;;  %v1667_v43 = vrot.slane %v1662_v38, %v8656_v40 }
 0x4e7   : > { %v1607_v48 = vmul.f32 0.5, %v1591_v44  ;;  %v1609_v49 = vmul.f32 0.5, %v1605_v45  ;;  %v1675_v45 = vrot.slane %v1662_v38, %v8694_v60 }
 0x4e8   : > { %v1610_v50 = vsub.f32 %v1531_v35, %v1606_v46  ;;  %v1612_v51 = vsub.f32 %v1572_v36, %v1608_v47 }
 0x4e9   : > { %v1611_v55 = vsub.f32 %v1533_v3, %v1607_v48  ;;  %v8707_v59 = vsub.f32 %v1574_v4, %v1609_v49  ;;  %v1693_v48 = vrot.slane %v1688_v41, %v8656_v40  ;;  %v1671_v49 = vrot.slane %v1662_v38, %v8659_v42 }
 0x4ea   : > { %v1614_v61 = vmul.f32 %v1610_v50, %v1610_v50  ;;  %v1616_v63 = vmul.f32 %v1612_v51, %v1612_v51 }
 0x4eb   : > { %v1615_v0 = vmul.f32 %v1611_v55, %v1611_v55  ;;  %v1617_v30 = vmul.f32 %v8707_v59, %v8707_v59 }
 0x4ec   : > { %v1618_v31 = vsel %vm1010_vm3, %v1614_v61, 0.0  ;;  %v1632_v33 = vsel %vm1010_vm3, %v1616_v63, 0.0 }
 0x4ed   : > { %v1619_v32 = vrot.slane %v1618_v31, 4  ;;  %v1633_v1 = vrot.slane %v1632_v33, 4  ;;  %v1625_v2 = vsel %vm1010_vm3, %v1615_v0, 0.0  ;;  %v1639_v35 = vsel %vm1010_vm3, %v1617_v30, 0.0 }
 0x4ee   : > { %v1626_v36 = vrot.slane %v1625_v2, 4  ;;  %v1640_v3 = vrot.slane %v1639_v35, 4  ;;  %v1701_v0 = vrot.slane %v1688_v41, %v8694_v60  ;;  %v1679_v30 = vrot.slane %v1662_v38, %v8697_v62  ;;  %v1891_v38 = vld [vmem:[#allocation18 + $0x508] sm:$0xff] }
 0x4ef   : > { %v1620_v4 = vadd.f32 %v1619_v32, %v1618_v31  ;;  %v1634_v5 = vadd.f32 %v1633_v1, %v1632_v33  ;;  %v1697_v1 = vrot.slane %v1688_v41, %v8659_v42 }
 0x4f0   : > { %v1627_v6 = vadd.f32 %v1626_v36, %v1625_v2  ;;  %v1641_v7 = vadd.f32 %v1640_v3, %v1639_v35 }
 0x4f1   : > { %v1621_v8 = vrot.slane %v1620_v4, 2  ;;  %v1635_v9 = vrot.slane %v1634_v5, 2 }
 0x4f2   : > { %v1628_v10 = vrot.slane %v1627_v6, 2  ;;  %v1642_v11 = vrot.slane %v1641_v7, 2 }
 0x4f3   : > { %v1622_v12 = vadd.f32 %v1621_v8, %v1620_v4  ;;  %v1636_v13 = vadd.f32 %v1635_v9, %v1634_v5 }
 0x4f4   : > { %v1629_v14 = vadd.f32 %v1628_v10, %v1627_v6  ;;  %v1643_v15 = vadd.f32 %v1642_v11, %v1641_v7  ;;  %v1866_v10 = vld [vmem:[#allocation18 + $0x440] sm:$0xff] }
 0x4f5   : > { %v1623_v16 = vrot.slane %v1622_v12, 1  ;;  %v1637_v17 = vrot.slane %v1636_v13, 1 }
 0x4f6   : > { %v1630_v18 = vrot.slane %v1629_v14, 1  ;;  %v1644_v19 = vrot.slane %v1643_v15, 1 }
 0x4f7   : > { %v1624_v20 = vadd.f32 %v1623_v16, %v1622_v12  ;;  %v1638_v21 = vadd.f32 %v1637_v17, %v1636_v13  ;;  %v1870_v12 = vld [vmem:[#allocation18 + $0x460] sm:$0xff]  ;;  %v1871_v13 = vld [vmem:[#allocation18 + $0x468] sm:$0xff] }
 0x4f8   : > { %v1631_v22 = vadd.f32 %v1630_v18, %v1629_v14  ;;  %v1645_v23 = vadd.f32 %v1644_v19, %v1643_v15  ;;  %v1874_v17 = vld [vmem:[#allocation18 + $0x480] sm:$0xff]  ;;  %v6333_v18 = vcombine.high %v1866_v10, %v1870_v12 }
 0x4f9   : > { %v1646_v24 = vmul.f32 0.5, %v1624_v20  ;;  %v1648_v25 = vmul.f32 0.5, %v1638_v21  ;;  %v1878_v20 = vld [vmem:[#allocation18 + $0x4a0] sm:$0xff]  ;;  %v1875_v21 = vld [vmem:[#allocation18 + $0x488] sm:$0xff] }
 0x4fa   : > { %v1647_v26 = vmul.f32 0.5, %v1631_v22  ;;  %v1649_v27 = vmul.f32 0.5, %v1645_v23  ;;  %v1879_v22 = vld [vmem:[#allocation18 + $0x4a8] sm:$0xff]  ;;  %v6340_v52 = vcombine.low %v1874_v17, %v1878_v20 }
 0x4fb   : > { %v1650_v28 = vadd.f32 0.8, %v1646_v24  ;;  %v1652_v29 = vadd.f32 0.8, %v1648_v25  ;;  %v6332_v24 = vcombine.low %v1866_v10, %v1870_v12  ;;  %v6342_v53 = vcombine.low %v1875_v21, %v1879_v22  ;;  %v1926_v12 = vld [vmem:[#allocation18 + $0x620] sm:$0xff] }
 0x4fc   : > { %v1651_v34 = vadd.f32 0.8, %v1647_v26  ;;  %v1653_v37 = vadd.f32 0.8, %v1649_v27  ;;  %v6341_v26 = vcombine.high %v1874_v17, %v1878_v20  ;;  %v6343_v27 = vcombine.high %v1875_v21, %v1879_v22  ;;  %v1930_v20 = vld [vmem:[#allocation18 + $0x640] sm:$0xff]  ;;  %v1931_v22 = vld [vmem:[#allocation18 + $0x648] sm:$0xff] }
 0x4fd   : > { %7482 = vrsqrt.f32 %v1650_v28  ;;  %v1882_v28 = vld [vmem:[#allocation18 + $0x4c0] sm:$0xff] }
 0x4fe   : > { %7484 = vrsqrt.f32 %v1652_v29  ;;  %v1886_v29 = vld [vmem:[#allocation18 + $0x4e0] sm:$0xff] }
 0x4ff   : > { %7486 = vrsqrt.f32 %v1651_v34  ;;  %v1883_v34 = vld [vmem:[#allocation18 + $0x4c8] sm:$0xff]  ;;  %v6349_v54 = vcombine.high %v1882_v28, %v1886_v29  ;;  %v1934_v21 = vld [vmem:[#allocation18 + $0x660] sm:$0xff] }
 0x500   : > { %7488 = vrsqrt.f32 %v1653_v37  ;;  %v1887_v37 = vld [vmem:[#allocation18 + $0x4e8] sm:$0xff] }
 0x501   : > { %v6351_v56 = vcombine.high %v1883_v34, %v1887_v37 }
 0x507   : > { %v7483_v44 = vpop.eup %7482 }
 0x508   : > { %v7485_v46 = vpop.eup %7484  ;;  %v1658_v47 = vmul.f32 %v7483_v44, %v1610_v50  ;;  %v1705_v50 = vrot.slane %v1688_v41, %v8697_v62  ;;  %v1895_v41 = vld [vmem:[#allocation18 + $0x528] sm:$0xff]  ;;  %v6350_v44 = vcombine.low %v1883_v34, %v1887_v37  ;;  %v1942_v34 = vld [vmem:[#allocation18 + $0x6a0] sm:$0xff] }
 0x509   : > { %v7487_v61 = vpop.eup %7486  ;;  %v1660_v63 = vmul.f32 %v7485_v46, %v1612_v51  ;;  %v6359_v46 = vcombine.high %v1891_v38, %v1895_v41  ;;  %v1939_v37 = vld [vmem:[#allocation18 + $0x688] sm:$0xff] }
 0x50a   : > { %v7489_v31 = vpop.eup %7488  ;;  %v1684_v33 = vmul.f32 %v1667_v43, %v1658_v47  ;;  %v1659_v32 = vmul.f32 %v7487_v61, %v1611_v55  ;;  %v6348_v43 = vcombine.low %v1882_v28, %v1886_v29  ;;  %v1898_v47 = vld [vmem:[#allocation18 + $0x540] sm:$0xff]  ;;  %v1903_v61 = vld [vmem:[#allocation18 + $0x568] sm:$0xff] }
 0x50b   : > { %v1686_v2 = vmul.f32 %v1675_v45, %v1660_v63  ;;  %v1661_v35 = vmul.f32 %v7489_v31, %v8707_v59  ;;  %v1867_v59 = vld [vmem:[#allocation18 + $0x448] sm:$0xff]  ;;  %v1938_v29 = vld [vmem:[#allocation18 + $0x680] sm:$0xff] }
 0x50c   : > { %v1710_v36 = vadd.f32 %v1693_v48, %v1684_v33  ;;  %v1685_v3 = vmul.f32 %v1671_v49, %v1659_v32  ;;  %v6335_v19 = vcombine.high %v1867_v59, %v1871_v13  ;;  %v6334_v25 = vcombine.low %v1867_v59, %v1871_v13  ;;  %v1902_v48 = vld [vmem:[#allocation18 + $0x560] sm:$0xff]  ;;  %v1899_v49 = vld [vmem:[#allocation18 + $0x548] sm:$0xff] }
 0x50d   : > { %v8724_v4 = vadd.f32 %v1701_v0, %v1686_v2  ;;  %v1687_v5 = vmul.f32 %v1679_v30, %v1661_v35  ;;  %v6358_v0 = vcombine.low %v1891_v38, %v1895_v41  ;;  %v6365_v30 = vcombine.high %v1898_v47, %v1902_v48  ;;  %v1906_v33 = vld [vmem:[#allocation18 + $0x580] sm:$0xff]  ;;  %v1911_v2 = vld [vmem:[#allocation18 + $0x5a8] sm:$0xff] }
 0x50e   : > { %v1711_v51 = vadd.f32 %v1697_v1, %v1685_v3  ;;  %vm1714_vm6 = vcmp.gt.f32.partialorder %v1710_v36, 0.0  ;;  %v1718_v6 = vmul.f32 0.2, %v1710_v36  ;;  %v6367_v31 = vcombine.high %v1899_v49, %v1903_v61  ;;  %v1910_v32 = vld [vmem:[#allocation18 + $0x5a0] sm:$0xff]  ;;  %v1907_v1 = vld [vmem:[#allocation18 + $0x588] sm:$0xff] }
 0x50f   : > { %v1713_v7 = vadd.f32 %v1705_v50, %v1687_v5  ;;  %v6364_v35 = vcombine.low %v1898_v47, %v1902_v48  ;;  %v6366_v50 = vcombine.low %v1899_v49, %v1903_v61  ;;  %v6375_v3 = vcombine.high %v1907_v1, %v1911_v2  ;;  %v1914_v5 = vld [vmem:[#allocation18 + $0x5c0] sm:$0xff]  ;;  %v1923_v59 = vld [vmem:[#allocation18 + $0x608] sm:$0xff] }
 0x510   : > { %vm1715_vm7 = vcmp.gt.f32.partialorder %v1711_v51, 0.0  ;;  %v1719_v8 = vmul.f32 0.2, %v1711_v51  ;;  %v1722_v9 = vsel %vm1714_vm6, %v1710_v36, %v1718_v6  ;;  %v6373_v36 = vcombine.high %v1906_v33, %v1910_v32  ;;  %v1915_v6 = vld [vmem:[#allocation18 + $0x5c8] sm:$0xff]  ;;  %v1950_v38 = vld [vmem:[#allocation18 + $0x6e0] sm:$0xff] }
 0x511   : > { %vm1717_vm8 = vcmp.gt.f32.partialorder %v1713_v7, 0.0  ;;  %v1721_v55 = vmul.f32 0.2, %v1713_v7  ;;  %v8728_v16 = vpack.c.bf16 %v1722_v9, %v1722_v9  ;;  %v6374_v9 = vcombine.low %v1907_v1, %v1911_v2  ;;  %v1927_v13 = vld [vmem:[#allocation18 + $0x628] sm:$0xff]  ;;  %v1954_v48 = vld [vmem:[#allocation18 + $0x700] sm:$0xff] }
 0x512   : > { %v1723_v11 = vsel %vm1715_vm7, %v1711_v51, %v1719_v8  ;;  %v1918_v51 = vld [vmem:[#allocation18 + $0x5e0] sm:$0xff]  ;;  %v6372_v8 = vcombine.low %v1906_v33, %v1910_v32  ;;  %v1947_v41 = vld [vmem:[#allocation18 + $0x6c8] sm:$0xff]  ;;  %vm1716_vm9 = vcmp.gt.f32.partialorder %v8724_v4, 0.0 }
 0x513   : > { %v8726_v14 = vpack.c.bf16 %v1723_v11, %v1723_v11  ;;  %v1725_v15 = vsel %vm1717_vm8, %v1713_v7, %v1721_v55  ;;  %v1919_v7 = vld [vmem:[#allocation18 + $0x5e8] sm:$0xff]  ;;  %v6381_v55 = vcombine.high %v1914_v5, %v1918_v51  ;;  %v1922_v11 = vld [vmem:[#allocation18 + $0x600] sm:$0xff] }
 0x514   : > { %v8734_v23 = vpack.c.bf16 %v1725_v15, %v1725_v15  ;;  %v6383_v10 = vcombine.high %v1915_v6, %v1919_v7  ;;  %v6380_v15 = vcombine.low %v1914_v5, %v1918_v51  ;;  %v6382_v17 = vcombine.low %v1915_v6, %v1919_v7  ;;  %v1958_v49 = vld [vmem:[#allocation18 + $0x720] sm:$0xff]  ;;  %v1955_v61 = vld [vmem:[#allocation18 + $0x708] sm:$0xff] }
 0x515   : > { %3340 = vmatprep.mubr.bf16.mxu0 %v8726_v14  ;;  %3422 = vmatprep.mubr.bf16.mxu1 %v8726_v14  ;;  %v1962_v32 = vld [vmem:[#allocation18 + $0x740] sm:$0xff]  ;;  %v1963_v2 = vld [vmem:[#allocation18 + $0x748] sm:$0xff] }
 0x516   : > { %3341 = vmatmul.mubr.bf16.vlgmr.msra.gmra.mrb[8].mxu0 %v8728_v16  ;;  %3423 = vmatmul.mubr.bf16.vlgmr.msra.gmra.mrb[8].mxu1 %v8728_v16  ;;  %v1966_v1 = vld [vmem:[#allocation18 + $0x760] sm:$0xff]  ;;  %v1971_v7 = vld [vmem:[#allocation18 + $0x788] sm:$0xff] }
 0x517   : > { %3350 = vmatpush1.bf16.msra.mxu0 %v6324_v57  ;;  %3432 = vmatpush1.bf16.msra.mxu1 %v6326_v58  ;;  %v1890_v57 = vld [vmem:[#allocation18 + $0x500] sm:$0xff] }
 0x518   : > { %3381 = vmatprep.mubr.bf16.mxu0 %v8734_v23  ;;  %3463 = vmatprep.mubr.bf16.mxu1 %v8734_v23  ;;  %v1894_v58 = vld [vmem:[#allocation18 + $0x520] sm:$0xff] }
 0x519   : > { %3351 = vmatprep.subr.bf16.mxu0 %v6333_v18  ;;  %3433 = vmatprep.subr.bf16.mxu1 %v6335_v19  ;;  %v6357_v45 = vcombine.high %v1890_v57, %v1894_v58  ;;  %v6356_v63 = vcombine.low %v1890_v57, %v1894_v58  ;;  %v6389_v18 = vcombine.high %v1922_v11, %v1926_v12  ;;  %v1946_v58 = vld [vmem:[#allocation18 + $0x6c0] sm:$0xff] }
 0x51a   : > { %v6391_v19 = vcombine.high %v1923_v59, %v1927_v13  ;;  %v1970_v51 = vld [vmem:[#allocation18 + $0x780] sm:$0xff] }
 0x51b   : > { %3352 = vmatpush1.bf16.msra.mxu0 %v6332_v24  ;;  %3434 = vmatpush1.bf16.msra.mxu1 %v6334_v25  ;;  %v1935_v24 = vld [vmem:[#allocation18 + $0x668] sm:$0xff]  ;;  %v6388_v25 = vcombine.low %v1922_v11, %v1926_v12  ;;  %v1974_v6 = vld [vmem:[#allocation18 + $0x7a0] sm:$0xff] }
 0x51c   : > { %3353 = vmatprep.subr.bf16.mxu0 %v6341_v26  ;;  %3435 = vmatprep.subr.bf16.mxu1 %v6343_v27  ;;  %v6390_v26 = vcombine.low %v1923_v59, %v1927_v13  ;;  %v6397_v27 = vcombine.high %v1930_v20, %v1934_v21  ;;  %v6399_v28 = vcombine.high %v1931_v22, %v1935_v24  ;;  %v1978_v12 = vld [vmem:[#allocation18 + $0x7c0] sm:$0xff]  ;;  %v1979_v13 = vld [vmem:[#allocation18 + $0x7c8] sm:$0xff] }
 0x51d   : > { %v1982_v59 = vld [vmem:[#allocation18 + $0x7e0] sm:$0xff] }
 0x51f   : > { %3354 = vmatpush1.bf16.msra.mxu0 %v6340_v52  ;;  %3436 = vmatpush1.bf16.msra.mxu1 %v6342_v53  ;;  %v1943_v52 = vld [vmem:[#allocation18 + $0x6a8] sm:$0xff]  ;;  %v6396_v53 = vcombine.low %v1930_v20, %v1934_v21  ;;  %v1732_v21 = vld [vmem:[#allocation18 + $0x10] sm:$0xff] }
 0x520   : > { %3355 = vmatprep.subr.bf16.mxu0 %v6349_v54  ;;  %3437 = vmatprep.subr.bf16.mxu1 %v6351_v56  ;;  %v6398_v54 = vcombine.low %v1931_v22, %v1935_v24  ;;  %v6405_v56 = vcombine.high %v1938_v29, %v1942_v34  ;;  %v6407_v57 = vcombine.high %v1939_v37, %v1943_v52  ;;  %v1720_v22 = vmul.f32 0.2, %v8724_v4  ;;  %v1736_v24 = vld [vmem:[#allocation18 + $0x30] sm:$0xff] }
 0x523   : > { %3356 = vmatpush1.bf16.msra.mxu0 %v6348_v43  ;;  %3438 = vmatpush1.bf16.msra.mxu1 %v6350_v44  ;;  %v1951_v43 = vld [vmem:[#allocation18 + $0x6e8] sm:$0xff]  ;;  %v6404_v44 = vcombine.low %v1938_v29, %v1942_v34  ;;  %v6201_v29 = vcombine.high %v1732_v21, %v1736_v24 }
 0x524   : > { %3357 = vmatprep.subr.bf16.mxu0 %v6357_v45  ;;  %3439 = vmatprep.subr.bf16.mxu1 %v6359_v46  ;;  %v6406_v45 = vcombine.low %v1939_v37, %v1943_v52  ;;  %v6413_v46 = vcombine.high %v1946_v58, %v1950_v38  ;;  %v6415_v47 = vcombine.high %v1947_v41, %v1951_v43  ;;  %v1740_v52 = vld [vmem:[#allocation18 + $0x50] sm:$0xff] }
 0x525   : > { %v1724_v37 = vsel %vm1716_vm9, %v8724_v4, %v1720_v22  ;;  %v1749_v4 = vld [vmem:[#allocation18 + $0x98] sm:$0xff] }
 0x527   : > { %3358 = vmatpush1.bf16.msra.mxu0 %v6356_v63  ;;  %3440 = vmatpush1.bf16.msra.mxu1 %v6358_v0  ;;  %v1959_v63 = vld [vmem:[#allocation18 + $0x728] sm:$0xff]  ;;  %v6412_v0 = vcombine.low %v1946_v58, %v1950_v38  ;;  %v8747_v58 = vpack.c.bf16 %v1724_v37, %v1724_v37 }
 0x528   : > { %3359 = vmatprep.subr.bf16.mxu0 %v6365_v30  ;;  %3441 = vmatprep.subr.bf16.mxu1 %v6367_v31  ;;  %v6414_v30 = vcombine.low %v1947_v41, %v1951_v43  ;;  %v6421_v31 = vcombine.high %v1954_v48, %v1958_v49  ;;  %v6423_v33 = vcombine.high %v1955_v61, %v1959_v63 }
 0x52b   : > { %3360 = vmatpush1.bf16.msra.mxu0 %v6364_v35  ;;  %3442 = vmatpush1.bf16.msra.mxu1 %v6366_v50  ;;  %v1967_v35 = vld [vmem:[#allocation18 + $0x768] sm:$0xff]  ;;  %v6420_v50 = vcombine.low %v1954_v48, %v1958_v49 }
 0x52c   : > { %3361 = vmatprep.subr.bf16.mxu0 %v6373_v36  ;;  %3443 = vmatprep.subr.bf16.mxu1 %v6375_v3  ;;  %v6422_v36 = vcombine.low %v1955_v61, %v1959_v63  ;;  %v6429_v3 = vcombine.high %v1962_v32, %v1966_v1  ;;  %v6431_v5 = vcombine.high %v1963_v2, %v1967_v35  ;;  %v1756_v63 = vld [vmem:[#allocation18 + $0xd0] sm:$0xff] }
 0x52f   : > { %3362 = vmatpush1.bf16.msra.mxu0 %v6372_v8  ;;  %3444 = vmatpush1.bf16.msra.mxu1 %v6374_v9  ;;  %v1975_v8 = vld [vmem:[#allocation18 + $0x7a8] sm:$0xff]  ;;  %v6428_v9 = vcombine.low %v1962_v32, %v1966_v1 }
 0x530   : > { %3363 = vmatprep.subr.bf16.mxu0 %v6381_v55  ;;  %3445 = vmatprep.subr.bf16.mxu1 %v6383_v10  ;;  %v6430_v55 = vcombine.low %v1963_v2, %v1967_v35  ;;  %v6437_v10 = vcombine.high %v1970_v51, %v1974_v6  ;;  %v6439_v11 = vcombine.high %v1971_v7, %v1975_v8  ;;  %v1764_v35 = vld [vmem:[#allocation18 + $0x110] sm:$0xff] }
 0x533   : > { %3364 = vmatpush1.bf16.msra.mxu0 %v6380_v15  ;;  %3446 = vmatpush1.bf16.msra.mxu1 %v6382_v17  ;;  %v1983_v15 = vld [vmem:[#allocation18 + $0x7e8] sm:$0xff]  ;;  %v6436_v17 = vcombine.low %v1970_v51, %v1974_v6 }
 0x534   : > { %3365 = vmatprep.subr.bf16.mxu0 %v6389_v18  ;;  %3447 = vmatprep.subr.bf16.mxu1 %v6391_v19  ;;  %v6438_v18 = vcombine.low %v1971_v7, %v1975_v8  ;;  %v6445_v19 = vcombine.high %v1978_v12, %v1982_v59  ;;  %v6447_v20 = vcombine.high %v1979_v13, %v1983_v15  ;;  %v1772_v7 = vld [vmem:[#allocation18 + $0x150] sm:$0xff] }
 0x535   : > { %v1776_v8 = vld [vmem:[#allocation18 + $0x170] sm:$0xff] }
 0x537   : > { %3366 = vmatpush1.bf16.msra.mxu0 %v6388_v25  ;;  %3448 = vmatpush1.bf16.msra.mxu1 %v6390_v26  ;;  %v1733_v25 = vld [vmem:[#allocation18 + $0x18] sm:$0xff] }
 0x538   : > { %3367 = vmatprep.subr.bf16.mxu0 %v6397_v27  ;;  %3449 = vmatprep.subr.bf16.mxu1 %v6399_v28  ;;  %v1737_v26 = vld [vmem:[#allocation18 + $0x38] sm:$0xff]  ;;  %v6444_v27 = vcombine.low %v1978_v12, %v1982_v59  ;;  %v6446_v28 = vcombine.low %v1979_v13, %v1983_v15  ;;  %v6241_v12 = vcombine.high %v1772_v7, %v1776_v8  ;;  %v1780_v13 = vld [vmem:[#allocation18 + $0x190] sm:$0xff] }
 0x539   : > { %v6203_v34 = vcombine.high %v1733_v25, %v1737_v26  ;;  %v6202_v38 = vcombine.low %v1733_v25, %v1737_v26  ;;  %v1784_v15 = vld [vmem:[#allocation18 + $0x1b0] sm:$0xff]  ;;  %v1789_v26 = vld [vmem:[#allocation18 + $0x1d8] sm:$0xff] }
 0x53a   : > { %v1792_v25 = vld [vmem:[#allocation18 + $0x1f0] sm:$0xff] }
 0x53b   : > { %3368 = vmatpush1.bf16.msra.mxu0 %v6396_v53  ;;  %3450 = vmatpush1.bf16.msra.mxu1 %v6398_v54  ;;  %v1744_v53 = vld [vmem:[#allocation18 + $0x70] sm:$0xff]  ;;  %v1741_v54 = vld [vmem:[#allocation18 + $0x58] sm:$0xff] }
 0x53c   : > { %3369 = vmatprep.subr.bf16.mxu0 %v6405_v56  ;;  %3451 = vmatprep.subr.bf16.mxu1 %v6407_v57  ;;  %v1745_v56 = vld [vmem:[#allocation18 + $0x78] sm:$0xff]  ;;  %v6200_v57 = vcombine.low %v1732_v21, %v1736_v24  ;;  %v6209_v41 = vcombine.high %v1740_v52, %v1744_v53  ;;  %v6249_v21 = vcombine.high %v1780_v13, %v1784_v15  ;;  %v1788_v24 = vld [vmem:[#allocation18 + $0x1d0] sm:$0xff] }
 0x53d   : > { %v6211_v43 = vcombine.high %v1741_v54, %v1745_v56  ;;  %v6210_v48 = vcombine.low %v1741_v54, %v1745_v56  ;;  %v1797_v54 = vld [vmem:[#allocation18 + $0x218] sm:$0xff] }
 0x53e   : > { %v1801_v56 = vld [vmem:[#allocation18 + $0x238] sm:$0xff] }
 0x53f   : > { %3370 = vmatpush1.bf16.msra.mxu0 %v6404_v44  ;;  %3452 = vmatpush1.bf16.msra.mxu1 %v6406_v45  ;;  %v1748_v44 = vld [vmem:[#allocation18 + $0x90] sm:$0xff] }
 0x540   : > { %3371 = vmatprep.subr.bf16.mxu0 %v6413_v46  ;;  %3453 = vmatprep.subr.bf16.mxu1 %v6415_v47  ;;  %v1752_v45 = vld [vmem:[#allocation18 + $0xb0] sm:$0xff]  ;;  %v1753_v46 = vld [vmem:[#allocation18 + $0xb8] sm:$0xff]  ;;  %v6208_v47 = vcombine.low %v1740_v52, %v1744_v53 }
 0x541   : > { %v6217_v49 = vcombine.high %v1748_v44, %v1752_v45  ;;  %v6219_v61 = vcombine.high %v1749_v4, %v1753_v46  ;;  %v6218_v32 = vcombine.low %v1749_v4, %v1753_v46  ;;  %v1796_v52 = vld [vmem:[#allocation18 + $0x210] sm:$0xff]  ;;  %v1805_v4 = vld [vmem:[#allocation18 + $0x258] sm:$0xff] }
 0x542   : > { %v1800_v53 = vld [vmem:[#allocation18 + $0x230] sm:$0xff]  ;;  %v1809_v46 = vld [vmem:[#allocation18 + $0x278] sm:$0xff] }
 0x543   : > { %3372 = vmatpush1.bf16.msra.mxu0 %v6412_v0  ;;  %3454 = vmatpush1.bf16.msra.mxu1 %v6414_v30  ;;  %v1760_v0 = vld [vmem:[#allocation18 + $0xf0] sm:$0xff]  ;;  %v1757_v30 = vld [vmem:[#allocation18 + $0xd8] sm:$0xff] }
 0x544   : > { %3373 = vmatprep.subr.bf16.mxu0 %v6421_v31  ;;  %3455 = vmatprep.subr.bf16.mxu1 %v6423_v33  ;;  %v1761_v31 = vld [vmem:[#allocation18 + $0xf8] sm:$0xff]  ;;  %v6216_v33 = vcombine.low %v1748_v44, %v1752_v45  ;;  %v6225_v1 = vcombine.high %v1756_v63, %v1760_v0  ;;  %v1804_v44 = vld [vmem:[#allocation18 + $0x250] sm:$0xff] }
 0x545   : > { %v6227_v2 = vcombine.high %v1757_v30, %v1761_v31  ;;  %v1808_v45 = vld [vmem:[#allocation18 + $0x270] sm:$0xff] }
 0x547   : > { %3374 = vmatpush1.bf16.msra.mxu0 %v6420_v50  ;;  %3456 = vmatpush1.bf16.msra.mxu1 %v6422_v36  ;;  %v1768_v50 = vld [vmem:[#allocation18 + $0x130] sm:$0xff]  ;;  %v1769_v36 = vld [vmem:[#allocation18 + $0x138] sm:$0xff] }
 0x548   : > { %3375 = vmatprep.subr.bf16.mxu0 %v6429_v3  ;;  %3457 = vmatprep.subr.bf16.mxu1 %v6431_v5  ;;  %v6224_v3 = vcombine.low %v1756_v63, %v1760_v0  ;;  %v6226_v5 = vcombine.low %v1757_v30, %v1761_v31  ;;  %v6233_v51 = vcombine.high %v1764_v35, %v1768_v50  ;;  %v1812_v63 = vld [vmem:[#allocation18 + $0x290] sm:$0xff]  ;;  %v1813_v30 = vld [vmem:[#allocation18 + $0x298] sm:$0xff] }
 0x549   : > { %v1816_v0 = vld [vmem:[#allocation18 + $0x2b0] sm:$0xff]  ;;  %v1817_v31 = vld [vmem:[#allocation18 + $0x2b8] sm:$0xff] }
 0x54b   : > { %3376 = vmatpush1.bf16.msra.mxu0 %v6428_v9  ;;  %3458 = vmatpush1.bf16.msra.mxu1 %v6430_v55  ;;  %v1773_v9 = vld [vmem:[#allocation18 + $0x158] sm:$0xff] }
 0x54c   : > { %3377 = vmatprep.subr.bf16.mxu0 %v6437_v10  ;;  %3459 = vmatprep.subr.bf16.mxu1 %v6439_v11  ;;  %v1777_v55 = vld [vmem:[#allocation18 + $0x178] sm:$0xff]  ;;  %v6232_v10 = vcombine.low %v1764_v35, %v1768_v50  ;;  %v1820_v35 = vld [vmem:[#allocation18 + $0x2d0] sm:$0xff] }
 0x54d   : > { %v6243_v59 = vcombine.high %v1773_v9, %v1777_v55  ;;  %v1824_v50 = vld [vmem:[#allocation18 + $0x2f0] sm:$0xff] }
 0x54f   : > { %3378 = vmatpush1.bf16.msra.mxu0 %v6436_v17  ;;  %3460 = vmatpush1.bf16.msra.mxu1 %v6438_v18  ;;  %v1781_v17 = vld [vmem:[#allocation18 + $0x198] sm:$0xff] }
 0x550   : > { %3379 = vmatprep.subr.bf16.mxu0 %v6445_v19  ;;  %3461 = vmatprep.subr.bf16.mxu1 %v6447_v20  ;;  %v1785_v18 = vld [vmem:[#allocation18 + $0x1b8] sm:$0xff]  ;;  %v6240_v19 = vcombine.low %v1772_v7, %v1776_v8  ;;  %v6242_v20 = vcombine.low %v1773_v9, %v1777_v55  ;;  %v1828_v7 = vld [vmem:[#allocation18 + $0x310] sm:$0xff] }
 0x551   : > { %v6251_v22 = vcombine.high %v1781_v17, %v1785_v18  ;;  %v1832_v8 = vld [vmem:[#allocation18 + $0x330] sm:$0xff]  ;;  %v1829_v9 = vld [vmem:[#allocation18 + $0x318] sm:$0xff] }
 0x552   : > { %v1833_v55 = vld [vmem:[#allocation18 + $0x338] sm:$0xff] }
 0x553   : > { %3380 = vmatpush1.bf16.msra.mxu0 %v6444_v27  ;;  %3462 = vmatpush1.bf16.msra.mxu1 %v6446_v28  ;;  %v1793_v27 = vld [vmem:[#allocation18 + $0x1f8] sm:$0xff]  ;;  %v6248_v28 = vcombine.low %v1780_v13, %v1784_v15  ;;  %v1836_v13 = vld [vmem:[#allocation18 + $0x350] sm:$0xff] }
 0x554   : > { %3472 = vmatprep.subr.bf16.mxu0 %v6201_v29  ;;  %3554 = vmatprep.subr.bf16.mxu1 %v6203_v34  ;;  %v6250_v29 = vcombine.low %v1781_v17, %v1785_v18  ;;  %v6257_v34 = vcombine.high %v1788_v24, %v1792_v25  ;;  %v6259_v37 = vcombine.high %v1789_v26, %v1793_v27  ;;  %v1840_v15 = vld [vmem:[#allocation18 + $0x370] sm:$0xff]  ;;  %v1837_v17 = vld [vmem:[#allocation18 + $0x358] sm:$0xff] }
 0x555   : > { %v1841_v18 = vld [vmem:[#allocation18 + $0x378] sm:$0xff] }
 0x556   : > { %3382 = vmatmul.mubr.bf16.vlgmr.msra.gmra.mrb[8].mxu0 %v8747_v58  ;;  %3464 = vmatmul.mubr.bf16.vlgmr.msra.gmra.mrb[8].mxu1 %v8747_v58 }
 0x557   : > { %3473 = vmatpush1.bf16.msra.mxu0 %v6200_v57  ;;  %3504 = vmatprep.mubr.bf16.mxu0 %v8726_v14  ;;  %v6256_v57 = vcombine.low %v1788_v24, %v1792_v25  ;;  %v1844_v24 = vld [vmem:[#allocation18 + $0x390] sm:$0xff] }
 0x558   : > { %3555 = vmatpush1.bf16.msra.mxu1 %v6202_v38  ;;  %3586 = vmatprep.mubr.bf16.mxu1 %v8726_v14  ;;  %v1765_v14 = vld [vmem:[#allocation18 + $0x118] sm:$0xff]  ;;  %v6258_v38 = vcombine.low %v1789_v26, %v1793_v27  ;;  %v1848_v25 = vld [vmem:[#allocation18 + $0x3b0] sm:$0xff] }
 0x559   : > { %3474 = vmatprep.subr.bf16.mxu0 %v6209_v41  ;;  %3556 = vmatprep.subr.bf16.mxu1 %v6211_v43  ;;  %v6235_v6 = vcombine.high %v1765_v14, %v1769_v36  ;;  %v6234_v11 = vcombine.low %v1765_v14, %v1769_v36  ;;  %v6265_v41 = vcombine.high %v1796_v52, %v1800_v53  ;;  %v1821_v14 = vld [vmem:[#allocation18 + $0x2d8] sm:$0xff] }
 0x55a   : > { %v6267_v43 = vcombine.high %v1797_v54, %v1801_v56  ;;  %v1825_v36 = vld [vmem:[#allocation18 + $0x2f8] sm:$0xff] }
 0x55b   : > { %3475 = vmatpush1.bf16.msra.mxu0 %v6208_v47  ;;  %v6264_v47 = vcombine.low %v1796_v52, %v1800_v53  ;;  %v1845_v26 = vld [vmem:[#allocation18 + $0x398] sm:$0xff]  ;;  %v1852_v52 = vld [vmem:[#allocation18 + $0x3d0] sm:$0xff] }
 0x55c   : > { %3557 = vmatpush1.bf16.msra.mxu1 %v6210_v48  ;;  %3476 = vmatprep.subr.bf16.mxu0 %v6217_v49  ;;  %v6266_v48 = vcombine.low %v1797_v54, %v1801_v56  ;;  %v6273_v49 = vcombine.high %v1804_v44, %v1808_v45  ;;  %v1849_v27 = vld [vmem:[#allocation18 + $0x3b8] sm:$0xff]  ;;  %v1856_v53 = vld [vmem:[#allocation18 + $0x3f0] sm:$0xff] }
 0x55d   : > { %3558 = vmatprep.subr.bf16.mxu1 %v6219_v61  ;;  %v6275_v61 = vcombine.high %v1805_v4, %v1809_v46  ;;  %v1853_v54 = vld [vmem:[#allocation18 + $0x3d8] sm:$0xff] }
 0x55e   : > { %v1857_v56 = vld [vmem:[#allocation18 + $0x3f8] sm:$0xff] }
 0x55f   : > { %3477 = vmatpush1.bf16.msra.mxu0 %v6216_v33  ;;  %v6272_v33 = vcombine.low %v1804_v44, %v1808_v45  ;;  %v1860_v44 = vld [vmem:[#allocation18 + $0x410] sm:$0xff] }
 0x560   : > { %3559 = vmatpush1.bf16.msra.mxu1 %v6218_v32  ;;  %3478 = vmatprep.subr.bf16.mxu0 %v6225_v1  ;;  %v6274_v32 = vcombine.low %v1805_v4, %v1809_v46  ;;  %v6281_v1 = vcombine.high %v1812_v63, %v1816_v0  ;;  %v1864_v45 = vld [vmem:[#allocation18 + $0x430] sm:$0xff]  ;;  %v1861_v4 = vld [vmem:[#allocation18 + $0x418] sm:$0xff] }
 0x561   : > { %3560 = vmatprep.subr.bf16.mxu1 %v6227_v2  ;;  %v6283_v2 = vcombine.high %v1813_v30, %v1817_v31  ;;  %v1865_v46 = vld [vmem:[#allocation18 + $0x438] sm:$0xff] }
 0x563   : > { %3479 = vmatpush1.bf16.msra.mxu0 %v6224_v3  ;;  %v6280_v3 = vcombine.low %v1812_v63, %v1816_v0  ;;  %v1868_v63 = vld [vmem:[#allocation18 + $0x450] sm:$0xff] }
 0x564   : > { %3561 = vmatpush1.bf16.msra.mxu1 %v6226_v5  ;;  %3480 = vmatprep.subr.bf16.mxu0 %v6233_v51  ;;  %v6282_v5 = vcombine.low %v1813_v30, %v1817_v31  ;;  %v6289_v51 = vcombine.high %v1820_v35, %v1824_v50  ;;  %v1872_v0 = vld [vmem:[#allocation18 + $0x470] sm:$0xff]  ;;  %v6328_v30 = vcombine.low %v1860_v44, %v1864_v45  ;;  %v1869_v31 = vld [vmem:[#allocation18 + $0x458] sm:$0xff] }
 0x565   : > { %3562 = vmatprep.subr.bf16.mxu1 %v6235_v6  ;;  %v6291_v6 = vcombine.high %v1821_v14, %v1825_v36 }
 0x567   : > { %3481 = vmatpush1.bf16.msra.mxu0 %v6232_v10  ;;  %v6288_v10 = vcombine.low %v1820_v35, %v1824_v50  ;;  %v1880_v35 = vld [vmem:[#allocation18 + $0x4b0] sm:$0xff] }
 0x568   : > { %3563 = vmatpush1.bf16.msra.mxu1 %v6234_v11  ;;  %3482 = vmatprep.subr.bf16.mxu0 %v6241_v12  ;;  %v6290_v11 = vcombine.low %v1821_v14, %v1825_v36  ;;  %v6297_v12 = vcombine.high %v1828_v7, %v1832_v8  ;;  %v1877_v14 = vld [vmem:[#allocation18 + $0x498] sm:$0xff] }
 0x569   : > { %3564 = vmatprep.subr.bf16.mxu1 %v6243_v59  ;;  %v6299_v59 = vcombine.high %v1829_v9, %v1833_v55  ;;  %v1881_v36 = vld [vmem:[#allocation18 + $0x4b8] sm:$0xff] }
 0x56b   : > { %3483 = vmatpush1.bf16.msra.mxu0 %v6240_v19  ;;  %v6296_v19 = vcombine.low %v1828_v7, %v1832_v8  ;;  %v1884_v7 = vld [vmem:[#allocation18 + $0x4d0] sm:$0xff] }
 0x56c   : > { %3565 = vmatpush1.bf16.msra.mxu1 %v6242_v20  ;;  %3484 = vmatprep.subr.bf16.mxu0 %v6249_v21  ;;  %v6298_v20 = vcombine.low %v1829_v9, %v1833_v55  ;;  %v6305_v21 = vcombine.high %v1836_v13, %v1840_v15  ;;  %v1888_v8 = vld [vmem:[#allocation18 + $0x4f0] sm:$0xff]  ;;  %v1885_v9 = vld [vmem:[#allocation18 + $0x4d8] sm:$0xff] }
 0x56d   : > { %3566 = vmatprep.subr.bf16.mxu1 %v6251_v22  ;;  %v6307_v22 = vcombine.high %v1837_v17, %v1841_v18  ;;  %v1889_v55 = vld [vmem:[#allocation18 + $0x4f8] sm:$0xff] }
 0x56f   : > { %3485 = vmatpush1.bf16.msra.mxu0 %v6248_v28  ;;  %v6304_v28 = vcombine.low %v1836_v13, %v1840_v15  ;;  %v1896_v13 = vld [vmem:[#allocation18 + $0x530] sm:$0xff]  ;;  %v1893_v15 = vld [vmem:[#allocation18 + $0x518] sm:$0xff] }
 0x570   : > { %3567 = vmatpush1.bf16.msra.mxu1 %v6250_v29  ;;  %3486 = vmatprep.subr.bf16.mxu0 %v6257_v34  ;;  %v6306_v29 = vcombine.low %v1837_v17, %v1841_v18  ;;  %v6313_v34 = vcombine.high %v1844_v24, %v1848_v25  ;;  %v1897_v17 = vld [vmem:[#allocation18 + $0x538] sm:$0xff]  ;;  %v6354_v18 = vcombine.low %v1885_v9, %v1889_v55 }
 0x571   : > { %3568 = vmatprep.subr.bf16.mxu1 %v6259_v37  ;;  %v6315_v37 = vcombine.high %v1845_v26, %v1849_v27 }
 0x573   : > { %3487 = vmatpush1.bf16.msra.mxu0 %v6256_v57  ;;  %v6312_v57 = vcombine.low %v1844_v24, %v1848_v25  ;;  %v1901_v24 = vld [vmem:[#allocation18 + $0x558] sm:$0xff] }
 0x574   : > { %3569 = vmatpush1.bf16.msra.mxu1 %v6258_v38  ;;  %3488 = vmatprep.subr.bf16.mxu0 %v6265_v41  ;;  %v6314_v38 = vcombine.low %v1845_v26, %v1849_v27  ;;  %v6321_v41 = vcombine.high %v1852_v52, %v1856_v53  ;;  %v1905_v25 = vld [vmem:[#allocation18 + $0x578] sm:$0xff]  ;;  %v6362_v27 = vcombine.low %v1893_v15, %v1897_v17 }
 0x575   : > { %3570 = vmatprep.subr.bf16.mxu1 %v6267_v43  ;;  %v6323_v43 = vcombine.high %v1853_v54, %v1857_v56 }
 0x577   : > { %3489 = vmatpush1.bf16.msra.mxu0 %v6264_v47  ;;  %v6320_v47 = vcombine.low %v1852_v52, %v1856_v53  ;;  %v1909_v52 = vld [vmem:[#allocation18 + $0x598] sm:$0xff] }
 0x578   : > { %3571 = vmatpush1.bf16.msra.mxu1 %v6266_v48  ;;  %3490 = vmatprep.subr.bf16.mxu0 %v6273_v49  ;;  %v6322_v48 = vcombine.low %v1853_v54, %v1857_v56  ;;  %v6329_v49 = vcombine.high %v1860_v44, %v1864_v45  ;;  %v1913_v53 = vld [vmem:[#allocation18 + $0x5b8] sm:$0xff]  ;;  %v6370_v56 = vcombine.low %v1901_v24, %v1905_v25 }
 0x579   : > { %3572 = vmatprep.subr.bf16.mxu1 %v6275_v61  ;;  %v6331_v61 = vcombine.high %v1861_v4, %v1865_v46  ;;  %v1917_v44 = vld [vmem:[#allocation18 + $0x5d8] sm:$0xff] }
 0x57a   : > { %v1921_v45 = vld [vmem:[#allocation18 + $0x5f8] sm:$0xff] }
 0x57b   : > { %3491 = vmatpush1.bf16.msra.mxu0 %v6272_v33  ;;  %v1873_v33 = vld [vmem:[#allocation18 + $0x478] sm:$0xff] }
 0x57c   : > { %3573 = vmatpush1.bf16.msra.mxu1 %v6274_v32  ;;  %3492 = vmatprep.subr.bf16.mxu0 %v6281_v1  ;;  %v6330_v32 = vcombine.low %v1861_v4, %v1865_v46  ;;  %v6337_v1 = vcombine.high %v1868_v63, %v1872_v0  ;;  %v6339_v50 = vcombine.high %v1869_v31, %v1873_v33 }
 0x57d   : > { %3574 = vmatprep.subr.bf16.mxu1 %v6283_v2  ;;  %v1876_v2 = vld [vmem:[#allocation18 + $0x490] sm:$0xff]  ;;  %v6378_v46 = vcombine.low %v1909_v52, %v1913_v53 }
 0x57f   : > { %3493 = vmatpush1.bf16.msra.mxu0 %v6280_v3  ;;  %v6336_v3 = vcombine.low %v1868_v63, %v1872_v0  ;;  %v1925_v63 = vld [vmem:[#allocation18 + $0x618] sm:$0xff] }
 0x580   : > { %3575 = vmatpush1.bf16.msra.mxu1 %v6282_v5  ;;  %3494 = vmatprep.subr.bf16.mxu0 %v6289_v51  ;;  %v6338_v5 = vcombine.low %v1869_v31, %v1873_v33  ;;  %v6345_v51 = vcombine.high %v1876_v2, %v1880_v35  ;;  %v1929_v0 = vld [vmem:[#allocation18 + $0x638] sm:$0xff]  ;;  %v6386_v31 = vcombine.low %v1917_v44, %v1921_v45 }
 0x581   : > { %3576 = vmatprep.subr.bf16.mxu1 %v6291_v6  ;;  %v6347_v6 = vcombine.high %v1877_v14, %v1881_v36 }
 0x583   : > { %3495 = vmatpush1.bf16.msra.mxu0 %v6288_v10  ;;  %v6344_v10 = vcombine.low %v1876_v2, %v1880_v35  ;;  %v1936_v2 = vld [vmem:[#allocation18 + $0x670] sm:$0xff]  ;;  %v1933_v35 = vld [vmem:[#allocation18 + $0x658] sm:$0xff] }
 0x584   : > { %3577 = vmatpush1.bf16.msra.mxu1 %v6290_v11  ;;  %3496 = vmatprep.subr.bf16.mxu0 %v6297_v12  ;;  %v6353_v11 = vcombine.high %v1884_v7, %v1888_v8  ;;  %v6355_v12 = vcombine.high %v1885_v9, %v1889_v55 }
 0x585   : > { %3578 = vmatprep.subr.bf16.mxu1 %v6299_v59  ;;  %v1892_v59 = vld [vmem:[#allocation18 + $0x510] sm:$0xff] }
 0x586   : > { %v6360_v26 = vcombine.low %v1892_v59, %v1896_v13 }
 0x587   : > { %3497 = vmatpush1.bf16.msra.mxu0 %v6296_v19  ;;  %v6361_v19 = vcombine.high %v1892_v59, %v1896_v13  ;;  %v1949_v59 = vld [vmem:[#allocation18 + $0x6d8] sm:$0xff] }
 0x588   : > { %3579 = vmatpush1.bf16.msra.mxu1 %v6298_v20  ;;  %3498 = vmatprep.subr.bf16.mxu0 %v6305_v21  ;;  %v6363_v20 = vcombine.high %v1893_v15, %v1897_v17  ;;  %v1900_v21 = vld [vmem:[#allocation18 + $0x550] sm:$0xff]  ;;  %v1953_v13 = vld [vmem:[#allocation18 + $0x6f8] sm:$0xff] }
 0x589   : > { %3580 = vmatprep.subr.bf16.mxu1 %v6307_v22  ;;  %v1904_v22 = vld [vmem:[#allocation18 + $0x570] sm:$0xff] }
 0x58a   : > { %v6368_v54 = vcombine.low %v1900_v21, %v1904_v22 }
 0x58b   : > { %3499 = vmatpush1.bf16.msra.mxu0 %v6304_v28  ;;  %v6369_v28 = vcombine.high %v1900_v21, %v1904_v22  ;;  %v1957_v21 = vld [vmem:[#allocation18 + $0x718] sm:$0xff] }
 0x58c   : > { %3581 = vmatpush1.bf16.msra.mxu1 %v6306_v29  ;;  %3500 = vmatprep.subr.bf16.mxu0 %v6313_v34  ;;  %v6371_v29 = vcombine.high %v1901_v24, %v1905_v25  ;;  %v1908_v34 = vld [vmem:[#allocation18 + $0x590] sm:$0xff]  ;;  %v1961_v22 = vld [vmem:[#allocation18 + $0x738] sm:$0xff]  ;;  %v6418_v25 = vcombine.low %v1949_v59, %v1953_v13 }
 0x58d   : > { %3582 = vmatprep.subr.bf16.mxu1 %v6315_v37  ;;  %v1912_v37 = vld [vmem:[#allocation18 + $0x5b0] sm:$0xff] }
 0x58e   : > { %v6376_v4 = vcombine.low %v1908_v34, %v1912_v37 }
 0x58f   : > { %3501 = vmatpush1.bf16.msra.mxu0 %v6312_v57  ;;  %v6377_v57 = vcombine.high %v1908_v34, %v1912_v37  ;;  %v1965_v34 = vld [vmem:[#allocation18 + $0x758] sm:$0xff] }
 0x590   : > { %3583 = vmatpush1.bf16.msra.mxu1 %v6314_v38  ;;  %3502 = vmatprep.subr.bf16.mxu0 %v6321_v41  ;;  %v6379_v38 = vcombine.high %v1909_v52, %v1913_v53  ;;  %v1916_v41 = vld [vmem:[#allocation18 + $0x5d0] sm:$0xff]  ;;  %v1969_v37 = vld [vmem:[#allocation18 + $0x778] sm:$0xff]  ;;  %v6426_v53 = vcombine.low %v1957_v21, %v1961_v22 }
 0x591   : > { %3584 = vmatprep.subr.bf16.mxu1 %v6323_v43  ;;  %v1920_v43 = vld [vmem:[#allocation18 + $0x5f0] sm:$0xff] }
 0x593   : > { %3503 = vmatpush1.bf16.msra.mxu0 %v6320_v47  ;;  %v6385_v47 = vcombine.high %v1916_v41, %v1920_v43 }
 0x594   : > { %3585 = vmatpush1.bf16.msra.mxu1 %v6322_v48  ;;  %3513 = vmatprep.subr.bf16.mxu0 %v6329_v49  ;;  %v6387_v48 = vcombine.high %v1917_v44, %v1921_v45  ;;  %v1924_v49 = vld [vmem:[#allocation18 + $0x610] sm:$0xff]  ;;  %v6434_v45 = vcombine.low %v1965_v34, %v1969_v37 }
 0x595   : > { %3595 = vmatprep.subr.bf16.mxu1 %v6331_v61  ;;  %v1928_v61 = vld [vmem:[#allocation18 + $0x630] sm:$0xff] }
 0x596   : > { %3505 = vmatmul.mubr.bf16.vlgmr.msra.gmra.mrb[12].mxu0 %v8728_v16  ;;  %v6393_v33 = vcombine.high %v1924_v49, %v1928_v61 }
 0x597   : > { %3587 = vmatmul.mubr.bf16.vlgmr.msra.gmra.mrb[12].mxu1 %v8728_v16  ;;  %3514 = vmatpush1.bf16.msra.mxu0 %v6328_v30  ;;  %v6346_v16 = vcombine.low %v1877_v14, %v1881_v36  ;;  %v6384_v30 = vcombine.low %v1916_v41, %v1920_v43  ;;  %v6392_v14 = vcombine.low %v1924_v49, %v1928_v61  ;;  %v1973_v41 = vld [vmem:[#allocation18 + $0x798] sm:$0xff] }
 0x598   : > { %3545 = vmatprep.mubr.bf16.mxu0 %v8734_v23  ;;  %3596 = vmatpush1.bf16.msra.mxu1 %v6330_v32  ;;  %v6395_v32 = vcombine.high %v1925_v63, %v1929_v0  ;;  %v6394_v36 = vcombine.low %v1925_v63, %v1929_v0  ;;  %v1977_v43 = vld [vmem:[#allocation18 + $0x7b8] sm:$0xff] }
 0x599   : > { %3627 = vmatprep.mubr.bf16.mxu1 %v8734_v23  ;;  %3515 = vmatprep.subr.bf16.mxu0 %v6337_v1  ;;  %v6352_v23 = vcombine.low %v1884_v7, %v1888_v8  ;;  %v1932_v1 = vld [vmem:[#allocation18 + $0x650] sm:$0xff]  ;;  %v1941_v7 = vld [vmem:[#allocation18 + $0x698] sm:$0xff]  ;;  %v6442_v0 = vcombine.low %v1973_v41, %v1977_v43 }
 0x59a   : > { %3597 = vmatprep.subr.bf16.mxu1 %v6339_v50  ;;  %v1937_v50 = vld [vmem:[#allocation18 + $0x678] sm:$0xff]  ;;  %v6400_v9 = vcombine.low %v1932_v1, %v1936_v2 }
 0x59b   : > { %3516 = vmatpush1.bf16.msra.mxu0 %v6336_v3  ;;  %v6401_v3 = vcombine.high %v1932_v1, %v1936_v2  ;;  %v1945_v8 = vld [vmem:[#allocation18 + $0x6b8] sm:$0xff]  ;;  %v6402_v55 = vcombine.low %v1933_v35, %v1937_v50  ;;  %v7099_v2 = vld [vmem:[%s8628_s18 + $0xc] ss:$16 sps:$4 sm:$0xff]  }
 0x59c   : > { %3598 = vmatpush1.bf16.msra.mxu1 %v6338_v5  ;;  %3517 = vmatprep.subr.bf16.mxu0 %v6345_v51  ;;  %v6403_v5 = vcombine.high %v1933_v35, %v1937_v50  ;;  %v1940_v51 = vld [vmem:[#allocation18 + $0x690] sm:$0xff]  ;;  %v6410_v17 = vcombine.low %v1941_v7, %v1945_v8  ;;  %v1981_v49 = vld [vmem:[#allocation18 + $0x7d8] sm:$0xff] }
 0x59d   : > { %3599 = vmatprep.subr.bf16.mxu1 %v6347_v6  ;;  %v1944_v6 = vld [vmem:[#allocation18 + $0x6b0] sm:$0xff]  ;;  %v1985_v61 = vld [vmem:[#allocation18 + $0x7f8] sm:$0xff] }
 0x59e   : > { %v6408_v15 = vcombine.low %v1940_v51, %v1944_v6  ;;  %v7096_v1 = vld [vmem:[%s8628_s18 + $0x4] ss:$16 sps:$4 sm:$0xff]   ;;  %v7094_v35 = vld [vmem:[%s8628_s18] ss:$16 sps:$4 sm:$0xff]   ;;  %v7097_v50 = vld [vmem:[%s8628_s18 + $0x8] ss:$16 sps:$4 sm:$0xff]  }
 0x59f   : > { %3518 = vmatpush1.bf16.msra.mxu0 %v6344_v10  ;;  %v6409_v10 = vcombine.high %v1940_v51, %v1944_v6  ;;  %v7108_v51 = vld [vmem:[%s8628_s18 + $0x44] ss:$16 sps:$4 sm:$0xff]   ;;  %v7111_v6 = vld [vmem:[%s8628_s18 + $0x4c] ss:$16 sps:$4 sm:$0xff]  }
 0x5a0   : > { %3600 = vmatpush1.bf16.msra.mxu1 %v6346_v16  ;;  %3519 = vmatprep.subr.bf16.mxu0 %v6353_v11  ;;  %v6411_v16 = vcombine.high %v1941_v7, %v1945_v8  ;;  %v1948_v11 = vld [vmem:[#allocation18 + $0x6d0] sm:$0xff]  ;;  %v7106_v7 = vld [vmem:[%s8628_s18 + $0x40] ss:$16 sps:$4 sm:$0xff]  }
 0x5a1   : > { %3601 = vmatprep.subr.bf16.mxu1 %v6355_v12  ;;  %v1952_v12 = vld [vmem:[#allocation18 + $0x6f0] sm:$0xff] }
 0x5a2   : > { %v6416_v24 = vcombine.low %v1948_v11, %v1952_v12  ;;  %v7109_v8 = vld [vmem:[%s8628_s18 + $0x48] ss:$16 sps:$4 sm:$0xff]  }
 0x5a3   : > { %3520 = vmatpush1.bf16.msra.mxu0 %v6352_v23  ;;  %v6417_v23 = vcombine.high %v1948_v11, %v1952_v12  ;;  %v7123_v11 = vld [vmem:[%s8628_s18 + $0x8c] ss:$16 sps:$4 sm:$0xff]   ;;  %v7118_v12 = vld [vmem:[%s8628_s18 + $0x80] ss:$16 sps:$4 sm:$0xff]  }
 0x5a4   : > { %3602 = vmatpush1.bf16.msra.mxu1 %v6354_v18  ;;  %3521 = vmatprep.subr.bf16.mxu0 %v6361_v19  ;;  %v6419_v18 = vcombine.high %v1949_v59, %v1953_v13  ;;  %v1956_v19 = vld [vmem:[#allocation18 + $0x710] sm:$0xff]  ;;  %v7126_v13 = vld [vmem:[%s8628_s18 + $0xa4] ss:$16 sps:$4 sm:$0xff]  }
 0x5a5   : > { %3603 = vmatprep.subr.bf16.mxu1 %v6363_v20  ;;  %v1960_v20 = vld [vmem:[#allocation18 + $0x730] sm:$0xff] }
 0x5a6   : > { %v6424_v52 = vcombine.low %v1956_v19, %v1960_v20  ;;  %v7121_v59 = vld [vmem:[%s8628_s18 + $0x88] ss:$16 sps:$4 sm:$0xff]  }
 0x5a7   : > { %3522 = vmatpush1.bf16.msra.mxu0 %v6360_v26  ;;  %v6425_v26 = vcombine.high %v1956_v19, %v1960_v20  ;;  %v7135_v19 = vld [vmem:[%s8628_s18 + $0xcc] ss:$16 sps:$4 sm:$0xff]   ;;  %v7130_v20 = vld [vmem:[%s8628_s18 + $0xc0] ss:$16 sps:$4 sm:$0xff]  }
 0x5a8   : > { %3604 = vmatpush1.bf16.msra.mxu1 %v6362_v27  ;;  %3523 = vmatprep.subr.bf16.mxu0 %v6369_v28  ;;  %v6427_v27 = vcombine.high %v1957_v21, %v1961_v22  ;;  %v1964_v28 = vld [vmem:[#allocation18 + $0x750] sm:$0xff]  ;;  %v7138_v22 = vld [vmem:[%s8628_s18 + $0xe4] ss:$16 sps:$4 sm:$0xff]  }
 0x5a9   : > { %3605 = vmatprep.subr.bf16.mxu1 %v6371_v29  ;;  %v1968_v29 = vld [vmem:[#allocation18 + $0x770] sm:$0xff] }
 0x5aa   : > { %v6432_v44 = vcombine.low %v1964_v28, %v1968_v29  ;;  %v7133_v21 = vld [vmem:[%s8628_s18 + $0xc8] ss:$16 sps:$4 sm:$0xff]  }
 0x5ab   : > { %3524 = vmatpush1.bf16.msra.mxu0 %v6368_v54  ;;  %v6433_v54 = vcombine.high %v1964_v28, %v1968_v29  ;;  %v7147_v28 = vld [vmem:[%s8628_s18 + $0x10c] ss:$16 sps:$4 sm:$0xff]   ;;  %v7142_v29 = vld [vmem:[%s8628_s18 + $0x100] ss:$16 sps:$4 sm:$0xff]  }
 0x5ac   : > { %3606 = vmatpush1.bf16.msra.mxu1 %v6370_v56  ;;  %3525 = vmatprep.subr.bf16.mxu0 %v6377_v57  ;;  %v6435_v56 = vcombine.high %v1965_v34, %v1969_v37  ;;  %v1972_v57 = vld [vmem:[#allocation18 + $0x790] sm:$0xff]  ;;  %v7150_v37 = vld [vmem:[%s8628_s18 + $0x124] ss:$16 sps:$4 sm:$0xff]  }
 0x5ad   : > { %3607 = vmatprep.subr.bf16.mxu1 %v6379_v38  ;;  %v1976_v38 = vld [vmem:[#allocation18 + $0x7b0] sm:$0xff] }
 0x5ae   : > { %v6440_v63 = vcombine.low %v1972_v57, %v1976_v38  ;;  %v7145_v34 = vld [vmem:[%s8628_s18 + $0x108] ss:$16 sps:$4 sm:$0xff]  }
 0x5af   : > { %3526 = vmatpush1.bf16.msra.mxu0 %v6376_v4  ;;  %v6441_v4 = vcombine.high %v1972_v57, %v1976_v38  ;;  %v7159_v57 = vld [vmem:[%s8628_s18 + $0x14c] ss:$16 sps:$4 sm:$0xff]   ;;  %v7154_v38 = vld [vmem:[%s8628_s18 + $0x140] ss:$16 sps:$4 sm:$0xff]  }
 0x5b0   : > { %3608 = vmatpush1.bf16.msra.mxu1 %v6378_v46  ;;  %3527 = vmatprep.subr.bf16.mxu0 %v6385_v47  ;;  %v6443_v46 = vcombine.high %v1973_v41, %v1977_v43  ;;  %v1980_v47 = vld [vmem:[#allocation18 + $0x7d0] sm:$0xff]  ;;  %v7162_v43 = vld [vmem:[%s8628_s18 + $0x164] ss:$16 sps:$4 sm:$0xff]  }
 0x5b1   : > { %3609 = vmatprep.subr.bf16.mxu1 %v6387_v48  ;;  %v1984_v48 = vld [vmem:[#allocation18 + $0x7f0] sm:$0xff] }
 0x5b2   : > { %v7157_v41 = vld [vmem:[%s8628_s18 + $0x148] ss:$16 sps:$4 sm:$0xff]  }
 0x5b3   : > { %3528 = vmatpush1.bf16.msra.mxu0 %v6384_v30  ;;  %v6449_v30 = vcombine.high %v1980_v47, %v1984_v48 }
 0x5b4   : > { %3610 = vmatpush1.bf16.msra.mxu1 %v6386_v31  ;;  %3529 = vmatprep.subr.bf16.mxu0 %v6393_v33  ;;  %v6451_v31 = vcombine.high %v1981_v49, %v1985_v61  ;;  %v6448_v33 = vcombine.low %v1980_v47, %v1984_v48  ;;  %v7171_v47 = vld [vmem:[%s8628_s18 + $0x18c] ss:$16 sps:$4 sm:$0xff]   ;;  %v7166_v48 = vld [vmem:[%s8628_s18 + $0x180] ss:$16 sps:$4 sm:$0xff]  }
 0x5b5   : > { %3611 = vmatprep.subr.bf16.mxu1 %v6395_v32  ;;  %v6450_v32 = vcombine.low %v1981_v49, %v1985_v61  ;;  %v7169_v49 = vld [vmem:[%s8628_s18 + $0x188] ss:$16 sps:$4 sm:$0xff]   ;;  %v7174_v61 = vld [vmem:[%s8628_s18 + $0x1a4] ss:$16 sps:$4 sm:$0xff]  }
 0x5b7   : > { %3530 = vmatpush1.bf16.msra.mxu0 %v6392_v14  ;;  %v7102_v14 = vld [vmem:[%s8628_s18 + $0x24] ss:$16 sps:$4 sm:$0xff]  }
 0x5b8   : > { %3612 = vmatpush1.bf16.msra.mxu1 %v6394_v36  ;;  %3531 = vmatprep.subr.bf16.mxu0 %v6401_v3  ;;  %v7105_v36 = vld [vmem:[%s8628_s18 + $0x2c] ss:$16 sps:$4 sm:$0xff]   ;;  %v7100_v3 = vld [vmem:[%s8628_s18 + $0x20] ss:$16 sps:$4 sm:$0xff]  }
 0x5b9   : > { %3613 = vmatprep.subr.bf16.mxu1 %v6403_v5  ;;  %v7103_v5 = vld [vmem:[%s8628_s18 + $0x28] ss:$16 sps:$4 sm:$0xff]  }
 0x5bb   : > { %3532 = vmatpush1.bf16.msra.mxu0 %v6400_v9  ;;  %v7117_v9 = vld [vmem:[%s8628_s18 + $0x6c] ss:$16 sps:$4 sm:$0xff]  }
 0x5bc   : > { %3614 = vmatpush1.bf16.msra.mxu1 %v6402_v55  ;;  %3533 = vmatprep.subr.bf16.mxu0 %v6409_v10  ;;  %v7112_v55 = vld [vmem:[%s8628_s18 + $0x60] ss:$16 sps:$4 sm:$0xff]   ;;  %v7115_v10 = vld [vmem:[%s8628_s18 + $0x68] ss:$16 sps:$4 sm:$0xff]  }
 0x5bd   : > { %3615 = vmatprep.subr.bf16.mxu1 %v6411_v16  ;;  %v7120_v16 = vld [vmem:[%s8628_s18 + $0x84] ss:$16 sps:$4 sm:$0xff]  }
 0x5bf   : > { %3534 = vmatpush1.bf16.msra.mxu0 %v6408_v15  ;;  %v7129_v15 = vld [vmem:[%s8628_s18 + $0xac] ss:$16 sps:$4 sm:$0xff]  }
 0x5c0   : > { %3616 = vmatpush1.bf16.msra.mxu1 %v6410_v17  ;;  %3535 = vmatprep.subr.bf16.mxu0 %v6417_v23  ;;  %v7124_v17 = vld [vmem:[%s8628_s18 + $0xa0] ss:$16 sps:$4 sm:$0xff]   ;;  %v7127_v23 = vld [vmem:[%s8628_s18 + $0xa8] ss:$16 sps:$4 sm:$0xff]  }
 0x5c1   : > { %3617 = vmatprep.subr.bf16.mxu1 %v6419_v18  ;;  %v7132_v18 = vld [vmem:[%s8628_s18 + $0xc4] ss:$16 sps:$4 sm:$0xff]  }
 0x5c3   : > { %3536 = vmatpush1.bf16.msra.mxu0 %v6416_v24  ;;  %v7141_v24 = vld [vmem:[%s8628_s18 + $0xec] ss:$16 sps:$4 sm:$0xff]  }
 0x5c4   : > { %3618 = vmatpush1.bf16.msra.mxu1 %v6418_v25  ;;  %3537 = vmatprep.subr.bf16.mxu0 %v6425_v26  ;;  %v7136_v25 = vld [vmem:[%s8628_s18 + $0xe0] ss:$16 sps:$4 sm:$0xff]   ;;  %v7139_v26 = vld [vmem:[%s8628_s18 + $0xe8] ss:$16 sps:$4 sm:$0xff]  }
 0x5c5   : > { %3619 = vmatprep.subr.bf16.mxu1 %v6427_v27  ;;  %v7144_v27 = vld [vmem:[%s8628_s18 + $0x104] ss:$16 sps:$4 sm:$0xff]  }
 0x5c7   : > { %3538 = vmatpush1.bf16.msra.mxu0 %v6424_v52  ;;  %v7153_v52 = vld [vmem:[%s8628_s18 + $0x12c] ss:$16 sps:$4 sm:$0xff]  }
 0x5c8   : > { %3620 = vmatpush1.bf16.msra.mxu1 %v6426_v53  ;;  %3539 = vmatprep.subr.bf16.mxu0 %v6433_v54  ;;  %v7148_v53 = vld [vmem:[%s8628_s18 + $0x120] ss:$16 sps:$4 sm:$0xff]   ;;  %v7151_v54 = vld [vmem:[%s8628_s18 + $0x128] ss:$16 sps:$4 sm:$0xff]  }
 0x5c9   : > { %3621 = vmatprep.subr.bf16.mxu1 %v6435_v56  ;;  %v7156_v56 = vld [vmem:[%s8628_s18 + $0x144] ss:$16 sps:$4 sm:$0xff]  }
 0x5cb   : > { %3540 = vmatpush1.bf16.msra.mxu0 %v6432_v44  ;;  %v7165_v44 = vld [vmem:[%s8628_s18 + $0x16c] ss:$16 sps:$4 sm:$0xff]  }
 0x5cc   : > { %3622 = vmatpush1.bf16.msra.mxu1 %v6434_v45  ;;  %3541 = vmatprep.subr.bf16.mxu0 %v6441_v4  ;;  %v7160_v45 = vld [vmem:[%s8628_s18 + $0x160] ss:$16 sps:$4 sm:$0xff]   ;;  %v7163_v4 = vld [vmem:[%s8628_s18 + $0x168] ss:$16 sps:$4 sm:$0xff]  }
 0x5cd   : > { %3623 = vmatprep.subr.bf16.mxu1 %v6443_v46  ;;  %v7168_v46 = vld [vmem:[%s8628_s18 + $0x184] ss:$16 sps:$4 sm:$0xff]  }
 0x5cf   : > { %3542 = vmatpush1.bf16.msra.mxu0 %v6440_v63  ;;  %v7177_v63 = vld [vmem:[%s8628_s18 + $0x1ac] ss:$16 sps:$4 sm:$0xff]  }
 0x5d0   : > { %3624 = vmatpush1.bf16.msra.mxu1 %v6442_v0  ;;  %3543 = vmatprep.subr.bf16.mxu0 %v6449_v30  ;;  %v7172_v0 = vld [vmem:[%s8628_s18 + $0x1a0] ss:$16 sps:$4 sm:$0xff]   ;;  %v7175_v30 = vld [vmem:[%s8628_s18 + $0x1a8] ss:$16 sps:$4 sm:$0xff]  }
 0x5d1   : > { %3625 = vmatprep.subr.bf16.mxu1 %v6451_v31  ;;  %v7180_v31 = vld [vmem:[%s8628_s18 + $0x1c4] ss:$16 sps:$4 sm:$0xff]  }
 0x5d3   : > { %3544 = vmatpush1.bf16.msra.mxu0 %v6448_v33  ;;  %v7183_v33 = vld [vmem:[%s8628_s18 + $0x1cc] ss:$16 sps:$4 sm:$0xff]  }
 0x5d4   : > { %3626 = vmatpush1.bf16.msra.mxu1 %v6450_v32  ;;  %5494 = vmatprep.subr.bf16.mxu0 %v7096_v1  ;;  %v7178_v32 = vld [vmem:[%s8628_s18 + $0x1c0] ss:$16 sps:$4 sm:$0xff]   ;;  %v7181_v1 = vld [vmem:[%s8628_s18 + $0x1c8] ss:$16 sps:$4 sm:$0xff]  }
 0x5d5   : > { %5658 = vmatprep.subr.bf16.mxu1 %v7099_v2  ;;  %v7186_v2 = vld [vmem:[%s8628_s18 + $0x1e4] ss:$16 sps:$4 sm:$0xff]  }
 0x5d6   : > { %3546 = vmatmul.mubr.bf16.vlgmr.msra.gmra.mrb[12].mxu0 %v8747_v58 }
 0x5d7   : > { %3628 = vmatmul.mubr.bf16.vlgmr.msra.gmra.mrb[12].mxu1 %v8747_v58  ;;  %5495 = vmatpush1.bf16.msra.mxu0 %v7094_v35  ;;  %v7114_v58 = vld [vmem:[%s8628_s18 + $0x64] ss:$16 sps:$4 sm:$0xff]   ;;  %v7189_v35 = vld [vmem:[%s8628_s18 + $0x1ec] ss:$16 sps:$4 sm:$0xff]  }
 0x5d8   : > { %5659 = vmatpush1.bf16.msra.mxu1 %v7097_v50  ;;  %5496 = vmatprep.subr.bf16.mxu0 %v7102_v14  ;;  %v7184_v50 = vld [vmem:[%s8628_s18 + $0x1e0] ss:$16 sps:$4 sm:$0xff]   ;;  %v7187_v14 = vld [vmem:[%s8628_s18 + $0x1e8] ss:$16 sps:$4 sm:$0xff]  }
 0x5d9   : > { %5660 = vmatprep.subr.bf16.mxu1 %v7105_v36  ;;  %v7192_v36 = vld [vmem:[%s8628_s18 + $0x204] ss:$16 sps:$4 sm:$0xff]  }
 0x5db   : > { %5497 = vmatpush1.bf16.msra.mxu0 %v7100_v3  ;;  %v7195_v3 = vld [vmem:[%s8628_s18 + $0x20c] ss:$16 sps:$4 sm:$0xff]  }
 0x5dc   : > { %5661 = vmatpush1.bf16.msra.mxu1 %v7103_v5  ;;  %5498 = vmatprep.subr.bf16.mxu0 %v7108_v51  ;;  %v8825_v5 = vld [vmem:[#allocation19] sm:$0xff] }
 0x5dd   : > { %5662 = vmatprep.subr.bf16.mxu1 %v7111_v6  ;;  %v1991_v51 = vrot.slane %v8825_v5, %v8656_v40  ;;  %v1995_v6 = vrot.slane %v8825_v5, %v8659_v42 }
 0x5df   : > { %5499 = vmatpush1.bf16.msra.mxu0 %v7106_v7  ;;  %v2003_v7 = vrot.slane %v8825_v5, %v8697_v62 }
 0x5e0   : > { %5663 = vmatpush1.bf16.msra.mxu1 %v7109_v8  ;;  %5500 = vmatprep.subr.bf16.mxu0 %v7114_v58 }
 0x5e1   : > { %5664 = vmatprep.subr.bf16.mxu1 %v7117_v9 }
 0x5e3   : > { %5501 = vmatpush1.bf16.msra.mxu0 %v7112_v55 }
 0x5e4   : > { %5665 = vmatpush1.bf16.msra.mxu1 %v7115_v10  ;;  %5502 = vmatprep.subr.bf16.mxu0 %v7120_v16 }
 0x5e5   : > { %5666 = vmatprep.subr.bf16.mxu1 %v7123_v11 }
 0x5e7   : > { %5503 = vmatpush1.bf16.msra.mxu0 %v7118_v12 }
 0x5e8   : > { %5667 = vmatpush1.bf16.msra.mxu1 %v7121_v59  ;;  %5504 = vmatprep.subr.bf16.mxu0 %v7126_v13 }
 0x5e9   : > { %5668 = vmatprep.subr.bf16.mxu1 %v7129_v15 }
 0x5eb   : > { %5505 = vmatpush1.bf16.msra.mxu0 %v7124_v17 }
 0x5ec   : > { %5669 = vmatpush1.bf16.msra.mxu1 %v7127_v23  ;;  %5506 = vmatprep.subr.bf16.mxu0 %v7132_v18 }
 0x5ed   : > { %5670 = vmatprep.subr.bf16.mxu1 %v7135_v19 }
 0x5ef   : > { %5507 = vmatpush1.bf16.msra.mxu0 %v7130_v20 }
 0x5f0   : > { %5671 = vmatpush1.bf16.msra.mxu1 %v7133_v21  ;;  %5508 = vmatprep.subr.bf16.mxu0 %v7138_v22 }
 0x5f1   : > { %5672 = vmatprep.subr.bf16.mxu1 %v7141_v24 }
 0x5f3   : > { %5509 = vmatpush1.bf16.msra.mxu0 %v7136_v25 }
 0x5f4   : > { %5673 = vmatpush1.bf16.msra.mxu1 %v7139_v26  ;;  %5510 = vmatprep.subr.bf16.mxu0 %v7144_v27 }
 0x5f5   : > { %5674 = vmatprep.subr.bf16.mxu1 %v7147_v28 }
 0x5f7   : > { %5511 = vmatpush1.bf16.msra.mxu0 %v7142_v29 }
 0x5f8   : > { %5675 = vmatpush1.bf16.msra.mxu1 %v7145_v34  ;;  %5512 = vmatprep.subr.bf16.mxu0 %v7150_v37 }
 0x5f9   : > { %5676 = vmatprep.subr.bf16.mxu1 %v7153_v52 }
 0x5fb   : > { %5513 = vmatpush1.bf16.msra.mxu0 %v7148_v53  ;;  %v1999_v53 = vrot.slane %v8825_v5, %v8694_v60 }
 0x5fc   : > { %5677 = vmatpush1.bf16.msra.mxu1 %v7151_v54  ;;  %5514 = vmatprep.subr.bf16.mxu0 %v7156_v56 }
 0x5fd   : > { %5678 = vmatprep.subr.bf16.mxu1 %v7159_v57 }
 0x5ff   : > { %5515 = vmatpush1.bf16.msra.mxu0 %v7154_v38 }
 0x600   : > { %5679 = vmatpush1.bf16.msra.mxu1 %v7157_v41  ;;  %5516 = vmatprep.subr.bf16.mxu0 %v7162_v43 }
 0x601   : > { %5680 = vmatprep.subr.bf16.mxu1 %v7165_v44 }
 0x603   : > { %5517 = vmatpush1.bf16.msra.mxu0 %v7160_v45 }
 0x604   : > { %5681 = vmatpush1.bf16.msra.mxu1 %v7163_v4  ;;  %5518 = vmatprep.subr.bf16.mxu0 %v7168_v46 }
 0x605   : > { %5682 = vmatprep.subr.bf16.mxu1 %v7171_v47 }
 0x607   : > { %5519 = vmatpush1.bf16.msra.mxu0 %v7166_v48 }
 0x608   : > { %5683 = vmatpush1.bf16.msra.mxu1 %v7169_v49  ;;  %5520 = vmatprep.subr.bf16.mxu0 %v7174_v61 }
 0x609   : > { %5684 = vmatprep.subr.bf16.mxu1 %v7177_v63 }
 0x60b   : > { %5521 = vmatpush1.bf16.msra.mxu0 %v7172_v0 }
 0x60c   : > { %5685 = vmatpush1.bf16.msra.mxu1 %v7175_v30  ;;  %5522 = vmatprep.subr.bf16.mxu0 %v7180_v31 }
 0x60d   : > { %5686 = vmatprep.subr.bf16.mxu1 %v7183_v33 }
 0x60f   : > { %5523 = vmatpush1.bf16.msra.mxu0 %v7178_v32 }
 0x610   : > { %5687 = vmatpush1.bf16.msra.mxu1 %v7181_v1  ;;  %5524 = vmatprep.subr.bf16.mxu0 %v7186_v2 }
 0x611   : > { %5688 = vmatprep.subr.bf16.mxu1 %v7189_v35 }
 0x613   : > { %5525 = vmatpush1.bf16.msra.mxu0 %v7184_v50 }
 0x614   : > { %5689 = vmatpush1.bf16.msra.mxu1 %v7187_v14  ;;  %5535 = vmatprep.subr.bf16.mxu0 %v7192_v36 }
 0x615   : > { %5699 = vmatprep.subr.bf16.mxu1 %v7195_v3 }
 0x629   : > { %v3383_v8 = vpop.f32.mrb[8].mxu0  ;;  %v3465_v58 = vpop.f32.mrb[8].mxu1 }
 0x62a   : > { %v6723_v9 = vadd.f32 %v3383_v8, %v1991_v51  ;;  %v3385_v55 = vpop.f32.mrb[9].mxu0  ;;  %v3467_v10 = vpop.f32.mrb[9].mxu1  ;;  %v6725_v44 = vadd.f32 %v3465_v58, %v1999_v53 }
 0x62b   : > { %v6724_v16 = vadd.f32 %v3385_v55, %v1995_v6  ;;  %v6726_v11 = vadd.f32 %v3467_v10, %v2003_v7  ;;  %v3387_v12 = vpop.f32.mrb[10].mxu0  ;;  %v3469_v59 = vpop.f32.mrb[10].mxu1 }
 0x62c   : > { %v3636_v13 = vsel %vm1010_vm3, %v6723_v9, 0.0  ;;  %v3388_v15 = vpop.f32.mrb[11].mxu0  ;;  %v3470_v17 = vpop.f32.mrb[11].mxu1  ;;  %v3650_v61 = vsel %vm1010_vm3, %v6725_v44, 0.0 }
 0x62d   : > { %v3637_v23 = vrot.slane %v3636_v13, 4  ;;  %v3643_v18 = vsel %vm1010_vm3, %v6724_v16, 0.0  ;;  %v3657_v19 = vsel %vm1010_vm3, %v6726_v11, 0.0  ;;  %v3651_v33 = vrot.slane %v3650_v61, 4 }
 0x62e   : > { %v3644_v20 = vrot.slane %v3643_v18, 4  ;;  %v3658_v21 = vrot.slane %v3657_v19, 4 }
 0x62f   : > { %v3638_v22 = vadd.f32 %v3637_v23, %v3636_v13  ;;  %v3652_v51 = vadd.f32 %v3651_v33, %v3650_v61 }
 0x630   : > { %v3645_v24 = vadd.f32 %v3644_v20, %v3643_v18  ;;  %v3659_v25 = vadd.f32 %v3658_v21, %v3657_v19 }
 0x631   : > { %v3639_v26 = vrot.slane %v3638_v22, 2  ;;  %v3653_v10 = vrot.slane %v3652_v51, 2 }
 0x632   : > { %v3646_v27 = vrot.slane %v3645_v24, 2  ;;  %v3660_v28 = vrot.slane %v3659_v25, 2 }
 0x633   : > { %v3640_v29 = vadd.f32 %v3639_v26, %v3638_v22  ;;  %v3654_v17 = vadd.f32 %v3653_v10, %v3652_v51  ;;  %v8844_v26 = vld [vmem:[#allocation22] sm:$0xff]  ;;  %v7202_v10 = vld [vmem:[%s8628_s18 + $0x240] ss:$16 sps:$4 sm:$0xff]  }
 0x634   : > { %v3647_v34 = vadd.f32 %v3646_v27, %v3645_v24  ;;  %v3661_v37 = vadd.f32 %v3660_v28, %v3659_v25  ;;  %v8842_v25 = vld [vmem:[#allocation21] sm:$0xff]  ;;  %v7201_v51 = vld [vmem:[%s8628_s18 + $0x22c] ss:$16 sps:$4 sm:$0xff]  }
 0x635   : > { %v3641_v52 = vrot.slane %v3640_v29, 1  ;;  %v3655_v22 = vrot.slane %v3654_v17, 1  ;;  %v3809_v28 = vrot.slane %v8842_v25, %v8656_v40 }
 0x636   : > { %v3648_v54 = vrot.slane %v3647_v34, 1  ;;  %v3662_v56 = vrot.slane %v3661_v37, 1 }
 0x637   : > { %v3642_v57 = vadd.f32 %v3641_v52, %v3640_v29  ;;  %v3656_v24 = vadd.f32 %v3655_v22, %v3654_v17  ;;  %v3813_v52 = vrot.slane %v8842_v25, %v8659_v42  ;;  %v7222_v22 = vld [vmem:[%s8628_s18 + $0x2a4] ss:$16 sps:$4 sm:$0xff]  }
 0x638   : > { %v3649_v38 = vadd.f32 %v3648_v54, %v3647_v34  ;;  %v3663_v41 = vadd.f32 %v3662_v56, %v3661_v37  ;;  %v3859_v37 = vrot.slane %v8844_v26, %v8656_v40  ;;  %v3821_v56 = vrot.slane %v8842_v25, %v8697_v62 }
 0x639   : > { %v3692_v43 = vmul.f32 0.5, %v3642_v57  ;;  %v3694_v27 = vmul.f32 0.5, %v3656_v24  ;;  %v7225_v24 = vld [vmem:[%s8628_s18 + $0x2ac] ss:$16 sps:$4 sm:$0xff]  }
 0x63a   : > { %v3693_v45 = vmul.f32 0.5, %v3649_v38  ;;  %v3695_v4 = vmul.f32 0.5, %v3663_v41 }
 0x63b   : > { %v3700_v46 = vsub.f32 %v6723_v9, %v3692_v43  ;;  %v8852_v54 = vsub.f32 %v6725_v44, %v3694_v27  ;;  %v3863_v43 = vrot.slane %v8844_v26, %v8659_v42  ;;  %v7220_v27 = vld [vmem:[%s8628_s18 + $0x2a0] ss:$16 sps:$4 sm:$0xff]  }
 0x63c   : > { %v3701_v47 = vsub.f32 %v6724_v16, %v3693_v45  ;;  %v3703_v48 = vsub.f32 %v6726_v11, %v3695_v4  ;;  %v3871_v4 = vrot.slane %v8844_v26, %v8697_v62 }
 0x63d   : > { %v3708_v49 = vmul.f32 %v3700_v46, %v3700_v46  ;;  %v3710_v44 = vmul.f32 %v8852_v54, %v8852_v54 }
 0x63e   : > { %v3709_v63 = vmul.f32 %v3701_v47, %v3701_v47  ;;  %v3711_v0 = vmul.f32 %v3703_v48, %v3703_v48 }
 0x63f   : > { %v3716_v30 = vsel %vm1010_vm3, %v3708_v49, 0.0 }
 0x640   : > { %v3717_v31 = vrot.slane %v3716_v30, 4  ;;  %v3723_v32 = vsel %vm1010_vm3, %v3709_v63, 0.0  ;;  %v3737_v1 = vsel %vm1010_vm3, %v3711_v0, 0.0 }
 0x641   : > { %v3724_v2 = vrot.slane %v3723_v32, 4  ;;  %v3738_v35 = vrot.slane %v3737_v1, 4 }
 0x642   : > { %v3718_v50 = vadd.f32 %v3717_v31, %v3716_v30 }
 0x643   : > { %v3725_v14 = vadd.f32 %v3724_v2, %v3723_v32  ;;  %v3739_v36 = vadd.f32 %v3738_v35, %v3737_v1  ;;  %v7190_v2 = vld [vmem:[%s8628_s18 + $0x200] ss:$16 sps:$4 sm:$0xff]   ;;  %v7193_v35 = vld [vmem:[%s8628_s18 + $0x208] ss:$16 sps:$4 sm:$0xff]  }
 0x644   : > { %v3719_v3 = vrot.slane %v3718_v50, 2 }
 0x645   : > { %v3726_v6 = vrot.slane %v3725_v14, 2  ;;  %v3740_v7 = vrot.slane %v3739_v36, 2 }
 0x646   : > { %v3720_v8 = vadd.f32 %v3719_v3, %v3718_v50  ;;  %v7198_v3 = vld [vmem:[%s8628_s18 + $0x224] ss:$16 sps:$4 sm:$0xff]  }
 0x647   : > { %v3727_v58 = vadd.f32 %v3726_v6, %v3725_v14  ;;  %v3741_v9 = vadd.f32 %v3740_v7, %v3739_v36  ;;  %v7196_v7 = vld [vmem:[%s8628_s18 + $0x220] ss:$16 sps:$4 sm:$0xff]  }
 0x648   : > { %v3721_v55 = vrot.slane %v3720_v8, 1 }
 0x649   : > { %v3728_v16 = vrot.slane %v3727_v58, 1  ;;  %v3742_v11 = vrot.slane %v3741_v9, 1 }
 0x64a   : > { %v3722_v12 = vadd.f32 %v3721_v55, %v3720_v8  ;;  %v7199_v8 = vld [vmem:[%s8628_s18 + $0x228] ss:$16 sps:$4 sm:$0xff]   ;;  %v7207_v55 = vld [vmem:[%s8628_s18 + $0x24c] ss:$16 sps:$4 sm:$0xff]  }
 0x64b   : > { %v3729_v59 = vadd.f32 %v3728_v16, %v3727_v58  ;;  %v3743_v13 = vadd.f32 %v3742_v11, %v3741_v9  ;;  %v7204_v9 = vld [vmem:[%s8628_s18 + $0x244] ss:$16 sps:$4 sm:$0xff]   ;;  %v7205_v16 = vld [vmem:[%s8628_s18 + $0x248] ss:$16 sps:$4 sm:$0xff]  }
 0x64c   : > { %v3772_v15 = vmul.f32 0.5, %v3722_v12  ;;  %v7210_v12 = vld [vmem:[%s8628_s18 + $0x264] ss:$16 sps:$4 sm:$0xff]  }
 0x64d   : > { %v3773_v23 = vmul.f32 0.5, %v3729_v59  ;;  %v3775_v18 = vmul.f32 0.5, %v3743_v13  ;;  %v7213_v59 = vld [vmem:[%s8628_s18 + $0x26c] ss:$16 sps:$4 sm:$0xff]   ;;  %v7208_v13 = vld [vmem:[%s8628_s18 + $0x260] ss:$16 sps:$4 sm:$0xff]  }
 0x64e   : > { %v3780_v19 = vadd.f32 0.8, %v3772_v15  ;;  %v7211_v15 = vld [vmem:[%s8628_s18 + $0x268] ss:$16 sps:$4 sm:$0xff]  }
 0x64f   : > { %v3781_v20 = vadd.f32 0.8, %v3773_v23  ;;  %v3783_v21 = vadd.f32 0.8, %v3775_v18  ;;  %v7216_v23 = vld [vmem:[%s8628_s18 + $0x284] ss:$16 sps:$4 sm:$0xff]  }
 0x650   : > { %7490 = vrsqrt.f32 %v3780_v19  ;;  %v7219_v18 = vld [vmem:[%s8628_s18 + $0x28c] ss:$16 sps:$4 sm:$0xff]   ;;  %v7214_v19 = vld [vmem:[%s8628_s18 + $0x280] ss:$16 sps:$4 sm:$0xff]  }
 0x651   : > { %7492 = vrsqrt.f32 %v3781_v20  ;;  %v7217_v20 = vld [vmem:[%s8628_s18 + $0x288] ss:$16 sps:$4 sm:$0xff]  }
 0x652   : > { %7494 = vrsqrt.f32 %v3783_v21 }
 0x65a   : > { %v7491_v29 = vpop.eup %7490 }
 0x65b   : > { %v3796_v34 = vmul.f32 %v7491_v29, %v3700_v46  ;;  %v7493_v53 = vpop.eup %7492 }
 0x65c   : > { %v7495_v57 = vpop.eup %7494  ;;  %v3797_v41 = vmul.f32 %v7493_v53, %v3701_v47  ;;  %v7229_v53 = vld [vmem:[%s8628_s18 + $0x2c8] ss:$16 sps:$4 sm:$0xff]  }
 0x65d   : > { %v3846_v38 = vmul.f32 %v3809_v28, %v3796_v34  ;;  %v3799_v45 = vmul.f32 %v7495_v57, %v3703_v48  ;;  %v3730_v48 = vsel %vm1010_vm3, %v3710_v44, 0.0  ;;  %v7223_v28 = vld [vmem:[%s8628_s18 + $0x2a8] ss:$16 sps:$4 sm:$0xff]   ;;  %v7228_v34 = vld [vmem:[%s8628_s18 + $0x2c4] ss:$16 sps:$4 sm:$0xff]  }
 0x65e   : > { %v3847_v49 = vmul.f32 %v3813_v52, %v3797_v41  ;;  %v3731_v14 = vrot.slane %v3730_v48, 4  ;;  %v7226_v52 = vld [vmem:[%s8628_s18 + $0x2c0] ss:$16 sps:$4 sm:$0xff]   ;;  %v7234_v57 = vld [vmem:[%s8628_s18 + $0x2e4] ss:$16 sps:$4 sm:$0xff]  }
 0x65f   : > { %v3896_v46 = vadd.f32 %v3859_v37, %v3846_v38  ;;  %v3849_v61 = vmul.f32 %v3821_v56, %v3799_v45  ;;  %v7231_v37 = vld [vmem:[%s8628_s18 + $0x2cc] ss:$16 sps:$4 sm:$0xff]   ;;  %v7232_v41 = vld [vmem:[%s8628_s18 + $0x2e0] ss:$16 sps:$4 sm:$0xff]   ;;  %v7241_v44 = vld [vmem:[%s8628_s18 + $0x308] ss:$16 sps:$4 sm:$0xff]  }
 0x660   : > { %v3897_v63 = vadd.f32 %v3863_v43, %v3847_v49  ;;  %v3732_v58 = vadd.f32 %v3731_v14, %v3730_v48  ;;  %v7237_v38 = vld [vmem:[%s8628_s18 + $0x2ec] ss:$16 sps:$4 sm:$0xff]   ;;  %v7235_v43 = vld [vmem:[%s8628_s18 + $0x2e8] ss:$16 sps:$4 sm:$0xff]   ;;  %v7238_v49 = vld [vmem:[%s8628_s18 + $0x300] ss:$16 sps:$4 sm:$0xff]  }
 0x661   : > { %vm3904_vm10 = vcmp.gt.f32.partialorder %v3896_v46, 0.0  ;;  %v3912_v0 = vmul.f32 0.2, %v3896_v46  ;;  %v3899_v30 = vadd.f32 %v3871_v4, %v3849_v61  ;;  %v7240_v4 = vld [vmem:[%s8628_s18 + $0x304] ss:$16 sps:$4 sm:$0xff]  }
 0x662   : > { %vm3905_vm11 = vcmp.gt.f32.partialorder %v3897_v63, 0.0  ;;  %v3913_v47 = vmul.f32 0.2, %v3897_v63  ;;  %v3733_v11 = vrot.slane %v3732_v58, 2  ;;  %v7246_v61 = vld [vmem:[%s8628_s18 + $0x324] ss:$16 sps:$4 sm:$0xff]  }
 0x663   : > { %v3920_v31 = vsel %vm3904_vm10, %v3896_v46, %v3912_v0  ;;  %vm3907_vm12 = vcmp.gt.f32.partialorder %v3899_v30, 0.0  ;;  %v3915_v33 = vmul.f32 0.2, %v3899_v30  ;;  %v7243_v46 = vld [vmem:[%s8628_s18 + $0x30c] ss:$16 sps:$4 sm:$0xff]  }
 0x664   : > { %v3921_v32 = vsel %vm3905_vm11, %v3897_v63, %v3913_v47  ;;  %v3928_v36 = vpack.c.bf16 %v3920_v31, %v3920_v31  ;;  %v3734_v17 = vadd.f32 %v3733_v11, %v3732_v58  ;;  %v7249_v63 = vld [vmem:[%s8628_s18 + $0x32c] ss:$16 sps:$4 sm:$0xff]   ;;  %v7244_v0 = vld [vmem:[%s8628_s18 + $0x320] ss:$16 sps:$4 sm:$0xff]   ;;  %v7252_v47 = vld [vmem:[%s8628_s18 + $0x344] ss:$16 sps:$4 sm:$0xff]  }
 0x665   : > { %v3929_v1 = vpack.c.bf16 %v3921_v32, %v3921_v32  ;;  %v3923_v50 = vsel %vm3907_vm12, %v3899_v30, %v3915_v33  ;;  %v7247_v30 = vld [vmem:[%s8628_s18 + $0x328] ss:$16 sps:$4 sm:$0xff]   ;;  %v7255_v48 = vld [vmem:[%s8628_s18 + $0x34c] ss:$16 sps:$4 sm:$0xff]   ;;  %v7250_v31 = vld [vmem:[%s8628_s18 + $0x340] ss:$16 sps:$4 sm:$0xff]  }
 0x666   : > { %v3931_v6 = vpack.c.bf16 %v3923_v50, %v3923_v50  ;;  %v3735_v21 = vrot.slane %v3734_v17, 1  ;;  %v7253_v33 = vld [vmem:[%s8628_s18 + $0x348] ss:$16 sps:$4 sm:$0xff]   ;;  %v7258_v32 = vld [vmem:[%s8628_s18 + $0x364] ss:$16 sps:$4 sm:$0xff]  }
 0x667   : > { %5526 = vmatprep.mubr.bf16.mxu0 %v3929_v1  ;;  %5690 = vmatprep.mubr.bf16.mxu1 %v3929_v1  ;;  %v7261_v1 = vld [vmem:[%s8628_s18 + $0x36c] ss:$16 sps:$4 sm:$0xff]   ;;  %v7259_v50 = vld [vmem:[%s8628_s18 + $0x368] ss:$16 sps:$4 sm:$0xff]   ;;  %v7264_v14 = vld [vmem:[%s8628_s18 + $0x384] ss:$16 sps:$4 sm:$0xff]  }
 0x668   : > { %5527 = vmatmul.mubr.bf16.vlgmr.msra.gmra.mrb[16].mxu0 %v3928_v36  ;;  %5691 = vmatmul.mubr.bf16.vlgmr.msra.gmra.mrb[16].mxu1 %v3928_v36  ;;  %v3736_v29 = vadd.f32 %v3735_v21, %v3734_v17  ;;  %v7267_v36 = vld [vmem:[%s8628_s18 + $0x38c] ss:$16 sps:$4 sm:$0xff]   ;;  %v7288_v21 = vld [vmem:[%s8628_s18 + $0x404] ss:$16 sps:$4 sm:$0xff]  }
 0x669   : > { %5536 = vmatpush1.bf16.msra.mxu0 %v7190_v2  ;;  %5700 = vmatpush1.bf16.msra.mxu1 %v7193_v35  ;;  %v7256_v35 = vld [vmem:[%s8628_s18 + $0x360] ss:$16 sps:$4 sm:$0xff]   ;;  %v7273_v58 = vld [vmem:[%s8628_s18 + $0x3ac] ss:$16 sps:$4 sm:$0xff]  }
 0x66a   : > { %5567 = vmatprep.mubr.bf16.mxu0 %v3931_v6  ;;  %5731 = vmatprep.mubr.bf16.mxu1 %v3931_v6  ;;  %v3774_v56 = vmul.f32 0.5, %v3736_v29  ;;  %v7262_v6 = vld [vmem:[%s8628_s18 + $0x380] ss:$16 sps:$4 sm:$0xff]   ;;  %v7279_v11 = vld [vmem:[%s8628_s18 + $0x3cc] ss:$16 sps:$4 sm:$0xff]  }
 0x66b   : > { %5537 = vmatprep.subr.bf16.mxu0 %v7198_v3  ;;  %5701 = vmatprep.subr.bf16.mxu1 %v7201_v51  ;;  %v3817_v51 = vrot.slane %v8842_v25, %v8694_v60  ;;  %v7285_v17 = vld [vmem:[%s8628_s18 + $0x3ec] ss:$16 sps:$4 sm:$0xff]   ;;  %v7286_v29 = vld [vmem:[%s8628_s18 + $0x400] ss:$16 sps:$4 sm:$0xff]  }
 0x66c   : > { %v3782_v45 = vadd.f32 0.8, %v3774_v56  ;;  %v7294_v56 = vld [vmem:[%s8628_s18 + $0x424] ss:$16 sps:$4 sm:$0xff]  }
 0x66d   : > { %5538 = vmatpush1.bf16.msra.mxu0 %v7196_v7  ;;  %5702 = vmatpush1.bf16.msra.mxu1 %v7199_v8  ;;  %v7265_v7 = vld [vmem:[%s8628_s18 + $0x388] ss:$16 sps:$4 sm:$0xff]   ;;  %v7270_v8 = vld [vmem:[%s8628_s18 + $0x3a4] ss:$16 sps:$4 sm:$0xff]  }
 0x66e   : > { %5539 = vmatprep.subr.bf16.mxu0 %v7204_v9  ;;  %5703 = vmatprep.subr.bf16.mxu1 %v7207_v55  ;;  %7496 = vrsqrt.f32 %v3782_v45  ;;  %v3867_v55 = vrot.slane %v8844_v26, %v8694_v60 }
 0x671   : > { %5540 = vmatpush1.bf16.msra.mxu0 %v7202_v10  ;;  %5704 = vmatpush1.bf16.msra.mxu1 %v7205_v16  ;;  %v7271_v10 = vld [vmem:[%s8628_s18 + $0x3a8] ss:$16 sps:$4 sm:$0xff]   ;;  %v7276_v16 = vld [vmem:[%s8628_s18 + $0x3c4] ss:$16 sps:$4 sm:$0xff]  }
 0x672   : > { %5541 = vmatprep.subr.bf16.mxu0 %v7210_v12  ;;  %5705 = vmatprep.subr.bf16.mxu1 %v7213_v59  ;;  %v7274_v59 = vld [vmem:[%s8628_s18 + $0x3c0] ss:$16 sps:$4 sm:$0xff]  }
 0x675   : > { %5542 = vmatpush1.bf16.msra.mxu0 %v7208_v13  ;;  %5706 = vmatpush1.bf16.msra.mxu1 %v7211_v15  ;;  %v7277_v13 = vld [vmem:[%s8628_s18 + $0x3c8] ss:$16 sps:$4 sm:$0xff]   ;;  %v7282_v15 = vld [vmem:[%s8628_s18 + $0x3e4] ss:$16 sps:$4 sm:$0xff]  }
 0x676   : > { %5543 = vmatprep.subr.bf16.mxu0 %v7216_v23  ;;  %5707 = vmatprep.subr.bf16.mxu1 %v7219_v18  ;;  %v7280_v18 = vld [vmem:[%s8628_s18 + $0x3e0] ss:$16 sps:$4 sm:$0xff]  }
 0x678   : > { %v7497_v2 = vpop.eup %7496 }
 0x679   : > { %5544 = vmatpush1.bf16.msra.mxu0 %v7214_v19  ;;  %5708 = vmatpush1.bf16.msra.mxu1 %v7217_v20  ;;  %v3798_v3 = vmul.f32 %v7497_v2, %v8852_v54  ;;  %v7268_v54 = vld [vmem:[%s8628_s18 + $0x3a0] ss:$16 sps:$4 sm:$0xff]   ;;  %v7283_v19 = vld [vmem:[%s8628_s18 + $0x3e8] ss:$16 sps:$4 sm:$0xff]   ;;  %v8931_v20 = vsub.s32 4, %v8653_v39 }
 0x67a   : > { %5545 = vmatprep.subr.bf16.mxu0 %v7222_v22  ;;  %5709 = vmatprep.subr.bf16.mxu1 %v7225_v24  ;;  %v7291_v22 = vld [vmem:[%s8628_s18 + $0x40c] ss:$16 sps:$4 sm:$0xff]   ;;  %v8936_v24 = vsub.s32 5, %v8653_v39 }
 0x67b   : > { %v3848_v9 = vmul.f32 %v3817_v51, %v3798_v3 }
 0x67d   : > { %5546 = vmatpush1.bf16.msra.mxu0 %v7220_v27  ;;  %5710 = vmatpush1.bf16.msra.mxu1 %v7223_v28  ;;  %v3898_v12 = vadd.f32 %v3867_v55, %v3848_v9  ;;  %v8939_v28 = vsub.s32 7, %v8653_v39  ;;  %v8972_v9 = vsub.s32 6, %v8653_v39 }
 0x67e   : > { %5547 = vmatprep.subr.bf16.mxu0 %v7228_v34  ;;  %5711 = vmatprep.subr.bf16.mxu1 %v7231_v37  ;;  %v7289_v34 = vld [vmem:[%s8628_s18 + $0x408] ss:$16 sps:$4 sm:$0xff]   ;;  %v2007_v37 = vrot.slane %v8825_v5, %v8931_v20 }
 0x67f   : > { %v3914_v23 = vmul.f32 0.2, %v3898_v12  ;;  %vm3906_vm13 = vcmp.gt.f32.partialorder %v3898_v12, 0.0 }
 0x681   : > { %5548 = vmatpush1.bf16.msra.mxu0 %v7226_v52  ;;  %5712 = vmatpush1.bf16.msra.mxu1 %v7229_v53  ;;  %v3922_v27 = vsel %vm3906_vm13, %v3898_v12, %v3914_v23  ;;  %v2011_v53 = vrot.slane %v8825_v5, %v8936_v24  ;;  %v2015_v23 = vrot.slane %v8825_v5, %v8972_v9 }
 0x682   : > { %5549 = vmatprep.subr.bf16.mxu0 %v7234_v57  ;;  %5713 = vmatprep.subr.bf16.mxu1 %v7237_v38  ;;  %v3930_v52 = vpack.c.bf16 %v3922_v27, %v3922_v27  ;;  %v7297_v57 = vld [vmem:[%s8628_s18 + $0x42c] ss:$16 sps:$4 sm:$0xff]   ;;  %v2019_v38 = vrot.slane %v8825_v5, %v8939_v28 }
 0x685   : > { %5550 = vmatpush1.bf16.msra.mxu0 %v7232_v41  ;;  %5714 = vmatpush1.bf16.msra.mxu1 %v7235_v43 }
 0x686   : > { %5551 = vmatprep.subr.bf16.mxu0 %v7240_v4  ;;  %5715 = vmatprep.subr.bf16.mxu1 %v7243_v46  ;;  %v7292_v46 = vld [vmem:[%s8628_s18 + $0x420] ss:$16 sps:$4 sm:$0xff]  }
 0x689   : > { %5552 = vmatpush1.bf16.msra.mxu0 %v7238_v49  ;;  %5716 = vmatpush1.bf16.msra.mxu1 %v7241_v44  ;;  %v7295_v49 = vld [vmem:[%s8628_s18 + $0x428] ss:$16 sps:$4 sm:$0xff]  }
 0x68a   : > { %5553 = vmatprep.subr.bf16.mxu0 %v7246_v61  ;;  %5717 = vmatprep.subr.bf16.mxu1 %v7249_v63 }
 0x68d   : > { %5554 = vmatpush1.bf16.msra.mxu0 %v7244_v0  ;;  %5718 = vmatpush1.bf16.msra.mxu1 %v7247_v30  ;;  %v7300_v0 = vld [vmem:[%s8628_s18 + $0x444] ss:$16 sps:$4 sm:$0xff]   ;;  %v7303_v30 = vld [vmem:[%s8628_s18 + $0x44c] ss:$16 sps:$4 sm:$0xff]  }
 0x68e   : > { %5555 = vmatprep.subr.bf16.mxu0 %v7252_v47  ;;  %5719 = vmatprep.subr.bf16.mxu1 %v7255_v48 }
 0x691   : > { %5556 = vmatpush1.bf16.msra.mxu0 %v7250_v31  ;;  %5720 = vmatpush1.bf16.msra.mxu1 %v7253_v33 }
 0x692   : > { %5557 = vmatprep.subr.bf16.mxu0 %v7258_v32  ;;  %5721 = vmatprep.subr.bf16.mxu1 %v7261_v1 }
 0x695   : > { %5558 = vmatpush1.bf16.msra.mxu0 %v7256_v35  ;;  %5722 = vmatpush1.bf16.msra.mxu1 %v7259_v50 }
 0x696   : > { %5559 = vmatprep.subr.bf16.mxu0 %v7264_v14  ;;  %5723 = vmatprep.subr.bf16.mxu1 %v7267_v36  ;;  %v7298_v14 = vld [vmem:[%s8628_s18 + $0x440] ss:$16 sps:$4 sm:$0xff]   ;;  %v7301_v36 = vld [vmem:[%s8628_s18 + $0x448] ss:$16 sps:$4 sm:$0xff]  }
 0x699   : > { %5560 = vmatpush1.bf16.msra.mxu0 %v7262_v6  ;;  %5724 = vmatpush1.bf16.msra.mxu1 %v7265_v7  ;;  %v7306_v6 = vld [vmem:[%s8628_s18 + $0x464] ss:$16 sps:$4 sm:$0xff]   ;;  %v7309_v7 = vld [vmem:[%s8628_s18 + $0x46c] ss:$16 sps:$4 sm:$0xff]  }
 0x69a   : > { %5561 = vmatprep.subr.bf16.mxu0 %v7270_v8  ;;  %5725 = vmatprep.subr.bf16.mxu1 %v7273_v58 }
 0x69d   : > { %5562 = vmatpush1.bf16.msra.mxu0 %v7268_v54  ;;  %5726 = vmatpush1.bf16.msra.mxu1 %v7271_v10  ;;  %v7304_v10 = vld [vmem:[%s8628_s18 + $0x460] ss:$16 sps:$4 sm:$0xff]  }
 0x69e   : > { %5563 = vmatprep.subr.bf16.mxu0 %v7276_v16  ;;  %5727 = vmatprep.subr.bf16.mxu1 %v7279_v11  ;;  %v7307_v16 = vld [vmem:[%s8628_s18 + $0x468] ss:$16 sps:$4 sm:$0xff]  }
 0x6a1   : > { %5564 = vmatpush1.bf16.msra.mxu0 %v7274_v59  ;;  %5728 = vmatpush1.bf16.msra.mxu1 %v7277_v13  ;;  %v7312_v59 = vld [vmem:[%s8628_s18 + $0x484] ss:$16 sps:$4 sm:$0xff]   ;;  %v7315_v13 = vld [vmem:[%s8628_s18 + $0x48c] ss:$16 sps:$4 sm:$0xff]  }
 0x6a2   : > { %5565 = vmatprep.subr.bf16.mxu0 %v7282_v15  ;;  %5729 = vmatprep.subr.bf16.mxu1 %v7285_v17 }
 0x6a5   : > { %5566 = vmatpush1.bf16.msra.mxu0 %v7280_v18  ;;  %5730 = vmatpush1.bf16.msra.mxu1 %v7283_v19 }
 0x6a6   : > { %5576 = vmatprep.subr.bf16.mxu0 %v7288_v21  ;;  %5740 = vmatprep.subr.bf16.mxu1 %v7291_v22  ;;  %v7310_v21 = vld [vmem:[%s8628_s18 + $0x480] ss:$16 sps:$4 sm:$0xff]   ;;  %v7313_v22 = vld [vmem:[%s8628_s18 + $0x488] ss:$16 sps:$4 sm:$0xff]  }
 0x6a8   : > { %5568 = vmatmul.mubr.bf16.vlgmr.msra.gmra.mrb[16].mxu0 %v3930_v52  ;;  %5732 = vmatmul.mubr.bf16.vlgmr.msra.gmra.mrb[16].mxu1 %v3930_v52 }
 0x6a9   : > { %v3547_v41 = vpop.f32.mrb[12].mxu0  ;;  %5577 = vmatpush1.bf16.msra.mxu0 %v7286_v29  ;;  %5741 = vmatpush1.bf16.msra.mxu1 %v7289_v34  ;;  %v7318_v34 = vld [vmem:[%s8628_s18 + $0x4a4] ss:$16 sps:$4 sm:$0xff]  }
 0x6aa   : > { %v8951_v43 = vadd.f32 %v3547_v41, %v2007_v37  ;;  %v3629_v45 = vpop.f32.mrb[12].mxu1  ;;  %v3549_v4 = vpop.f32.mrb[13].mxu0  ;;  %5578 = vmatprep.subr.bf16.mxu0 %v7294_v56  ;;  %5742 = vmatprep.subr.bf16.mxu1 %v7297_v57  ;;  %v7321_v37 = vld [vmem:[%s8628_s18 + $0x4ac] ss:$16 sps:$4 sm:$0xff]   ;;  %v7319_v41 = vld [vmem:[%s8628_s18 + $0x4a8] ss:$16 sps:$4 sm:$0xff]  }
 0x6ab   : > { %v8955_v44 = vadd.f32 %v3549_v4, %v2011_v53  ;;  %v3631_v61 = vpop.f32.mrb[13].mxu1  ;;  %v3551_v63 = vpop.f32.mrb[14].mxu0  ;;  %v8984_v56 = vadd.f32 %v3629_v45, %v2015_v23  ;;  %v7345_v23 = vld [vmem:[%s8628_s18 + $0x52c] ss:$16 sps:$4 sm:$0xff]  }
 0x6ac   : > { %v3664_v47 = vsel %vm1010_vm3, %v8951_v43, 0.0  ;;  %v8961_v48 = vadd.f32 %v3631_v61, %v2019_v38  ;;  %v3633_v31 = vpop.f32.mrb[14].mxu1  ;;  %v3552_v33 = vpop.f32.mrb[15].mxu0  ;;  %v7316_v38 = vld [vmem:[%s8628_s18 + $0x4a0] ss:$16 sps:$4 sm:$0xff]  }
 0x6ad   : > { %v3665_v32 = vrot.slane %v3664_v47, 4  ;;  %v3671_v1 = vsel %vm1010_vm3, %v8955_v44, 0.0  ;;  %v3634_v2 = vpop.f32.mrb[15].mxu1  ;;  %5579 = vmatpush1.bf16.msra.mxu0 %v7292_v46  ;;  %5743 = vmatpush1.bf16.msra.mxu1 %v7295_v49  ;;  %v7324_v49 = vld [vmem:[%s8628_s18 + $0x4c4] ss:$16 sps:$4 sm:$0xff]  }
 0x6ae   : > { %v3672_v35 = vrot.slane %v3671_v1, 4  ;;  %v3685_v50 = vsel %vm1010_vm3, %v8961_v48, 0.0  ;;  %5580 = vmatprep.subr.bf16.mxu0 %v7300_v0  ;;  %5744 = vmatprep.subr.bf16.mxu1 %v7303_v30  ;;  %v7327_v61 = vld [vmem:[%s8628_s18 + $0x4cc] ss:$16 sps:$4 sm:$0xff]   ;;  %v3678_v0 = vsel %vm1010_vm3, %v8984_v56, 0.0 }
 0x6af   : > { %v3666_v3 = vadd.f32 %v3665_v32, %v3664_v47  ;;  %v3686_v51 = vrot.slane %v3685_v50, 4  ;;  %v7322_v47 = vld [vmem:[%s8628_s18 + $0x4c0] ss:$16 sps:$4 sm:$0xff]   ;;  %v7325_v31 = vld [vmem:[%s8628_s18 + $0x4c8] ss:$16 sps:$4 sm:$0xff]   ;;  %v3679_v2 = vrot.slane %v3678_v0, 4 }
 0x6b0   : > { %v3673_v8 = vadd.f32 %v3672_v35, %v3671_v1  ;;  %v7330_v32 = vld [vmem:[%s8628_s18 + $0x4e4] ss:$16 sps:$4 sm:$0xff]  }
 0x6b1   : > { %v3667_v58 = vrot.slane %v3666_v3, 2  ;;  %v3687_v55 = vadd.f32 %v3686_v51, %v3685_v50  ;;  %5581 = vmatpush1.bf16.msra.mxu0 %v7298_v14  ;;  %5745 = vmatpush1.bf16.msra.mxu1 %v7301_v36  ;;  %v7328_v51 = vld [vmem:[%s8628_s18 + $0x4e0] ss:$16 sps:$4 sm:$0xff]  }
 0x6b2   : > { %v3674_v54 = vrot.slane %v3673_v8, 2  ;;  %5582 = vmatprep.subr.bf16.mxu0 %v7306_v6  ;;  %5746 = vmatprep.subr.bf16.mxu1 %v7309_v7  ;;  %v7331_v6 = vld [vmem:[%s8628_s18 + $0x4e8] ss:$16 sps:$4 sm:$0xff]  }
 0x6b3   : > { %v3668_v11 = vadd.f32 %v3667_v58, %v3666_v3  ;;  %v3688_v12 = vrot.slane %v3687_v55, 2  ;;  %v7339_v58 = vld [vmem:[%s8628_s18 + $0x50c] ss:$16 sps:$4 sm:$0xff]  }
 0x6b4   : > { %v3675_v15 = vadd.f32 %v3674_v54, %v3673_v8  ;;  %v7336_v8 = vld [vmem:[%s8628_s18 + $0x504] ss:$16 sps:$4 sm:$0xff]   ;;  %v3680_v54 = vadd.f32 %v3679_v2, %v3678_v0  ;;  %v7349_v0 = vld [vmem:[%s8628_s18 + $0x548] ss:$16 sps:$4 sm:$0xff]   ;;  %v7363_v2 = vld [vmem:[%s8628_s18 + $0x58c] ss:$16 sps:$4 sm:$0xff]  }
 0x6b5   : > { %v3669_v17 = vrot.slane %v3668_v11, 1  ;;  %v3689_v18 = vadd.f32 %v3688_v12, %v3687_v55  ;;  %5583 = vmatpush1.bf16.msra.mxu0 %v7304_v10  ;;  %5747 = vmatpush1.bf16.msra.mxu1 %v7307_v16 }
 0x6b6   : > { %v3676_v19 = vrot.slane %v3675_v15, 1  ;;  %5584 = vmatprep.subr.bf16.mxu0 %v7312_v59  ;;  %5748 = vmatprep.subr.bf16.mxu1 %v7315_v13  ;;  %v7334_v59 = vld [vmem:[%s8628_s18 + $0x500] ss:$16 sps:$4 sm:$0xff]   ;;  %v7337_v13 = vld [vmem:[%s8628_s18 + $0x508] ss:$16 sps:$4 sm:$0xff]  }
 0x6b7   : > { %v3670_v27 = vadd.f32 %v3669_v17, %v3668_v11  ;;  %v3690_v29 = vrot.slane %v3689_v18, 1  ;;  %v7342_v17 = vld [vmem:[%s8628_s18 + $0x524] ss:$16 sps:$4 sm:$0xff]  }
 0x6b8   : > { %v3677_v52 = vadd.f32 %v3676_v19, %v3675_v15  ;;  %v3681_v19 = vrot.slane %v3680_v54, 2 }
 0x6b9   : > { %v3696_v53 = vmul.f32 0.5, %v3670_v27  ;;  %v3691_v5 = vadd.f32 %v3690_v29, %v3689_v18  ;;  %5585 = vmatpush1.bf16.msra.mxu0 %v7310_v21  ;;  %5749 = vmatpush1.bf16.msra.mxu1 %v7313_v22 }
 0x6ba   : > { %v3697_v57 = vmul.f32 0.5, %v3677_v52  ;;  %5586 = vmatprep.subr.bf16.mxu0 %v7318_v34  ;;  %5750 = vmatprep.subr.bf16.mxu1 %v7321_v37  ;;  %v7340_v34 = vld [vmem:[%s8628_s18 + $0x520] ss:$16 sps:$4 sm:$0xff]   ;;  %v7343_v37 = vld [vmem:[%s8628_s18 + $0x528] ss:$16 sps:$4 sm:$0xff]  }
 0x6bb   : > { %v8989_v4 = vsub.f32 %v8951_v43, %v3696_v53  ;;  %v3699_v46 = vmul.f32 0.5, %v3691_v5  ;;  %v7348_v53 = vld [vmem:[%s8628_s18 + $0x544] ss:$16 sps:$4 sm:$0xff]   ;;  %v7351_v5 = vld [vmem:[%s8628_s18 + $0x54c] ss:$16 sps:$4 sm:$0xff]  }
 0x6bc   : > { %v8994_v45 = vsub.f32 %v8955_v44, %v3697_v57 }
 0x6bd   : > { %v3712_v63 = vmul.f32 %v8989_v4, %v8989_v4  ;;  %v9001_v30 = vsub.f32 %v8961_v48, %v3699_v46  ;;  %5587 = vmatpush1.bf16.msra.mxu0 %v7316_v38  ;;  %5751 = vmatpush1.bf16.msra.mxu1 %v7319_v41  ;;  %v7333_v48 = vld [vmem:[%s8628_s18 + $0x4ec] ss:$16 sps:$4 sm:$0xff]   ;;  %v3682_v38 = vadd.f32 %v3681_v19, %v3680_v54  ;;  %v7373_v19 = vld [vmem:[%s8628_s18 + $0x5c8] ss:$16 sps:$4 sm:$0xff]  }
 0x6be   : > { %v3713_v43 = vmul.f32 %v8994_v45, %v8994_v45  ;;  %5588 = vmatprep.subr.bf16.mxu0 %v7324_v49  ;;  %5752 = vmatprep.subr.bf16.mxu1 %v7327_v61  ;;  %v7346_v49 = vld [vmem:[%s8628_s18 + $0x540] ss:$16 sps:$4 sm:$0xff]   ;;  %v3875_v54 = vrot.slane %v8844_v26, %v8931_v20 }
 0x6bf   : > { %v3744_v44 = vsel %vm1010_vm3, %v3712_v63, 0.0  ;;  %v3715_v33 = vmul.f32 %v9001_v30, %v9001_v30 }
 0x6c0   : > { %v3745_v1 = vrot.slane %v3744_v44, 4  ;;  %v3751_v35 = vsel %vm1010_vm3, %v3713_v43, 0.0 }
 0x6c1   : > { %v3752_v50 = vrot.slane %v3751_v35, 4  ;;  %v3765_v14 = vsel %vm1010_vm3, %v3715_v33, 0.0  ;;  %5589 = vmatpush1.bf16.msra.mxu0 %v7322_v47  ;;  %5753 = vmatpush1.bf16.msra.mxu1 %v7325_v31  ;;  %v7354_v47 = vld [vmem:[%s8628_s18 + $0x564] ss:$16 sps:$4 sm:$0xff]   ;;  %v7357_v31 = vld [vmem:[%s8628_s18 + $0x56c] ss:$16 sps:$4 sm:$0xff]  }
 0x6c2   : > { %v3746_v36 = vadd.f32 %v3745_v1, %v3744_v44  ;;  %v3766_v3 = vrot.slane %v3765_v14, 4  ;;  %5590 = vmatprep.subr.bf16.mxu0 %v7330_v32  ;;  %5754 = vmatprep.subr.bf16.mxu1 %v7333_v48  ;;  %v3683_v44 = vrot.slane %v3682_v38, 1  ;;  %v7352_v32 = vld [vmem:[%s8628_s18 + $0x560] ss:$16 sps:$4 sm:$0xff]   ;;  %v7355_v48 = vld [vmem:[%s8628_s18 + $0x568] ss:$16 sps:$4 sm:$0xff]  }
 0x6c3   : > { %v3753_v7 = vadd.f32 %v3752_v50, %v3751_v35  ;;  %v7360_v1 = vld [vmem:[%s8628_s18 + $0x584] ss:$16 sps:$4 sm:$0xff]   ;;  %v7358_v50 = vld [vmem:[%s8628_s18 + $0x580] ss:$16 sps:$4 sm:$0xff]  }
 0x6c4   : > { %v3747_v55 = vrot.slane %v3746_v36, 2  ;;  %v3767_v10 = vadd.f32 %v3766_v3, %v3765_v14  ;;  %v3684_v35 = vadd.f32 %v3683_v44, %v3682_v38  ;;  %v7361_v14 = vld [vmem:[%s8628_s18 + $0x588] ss:$16 sps:$4 sm:$0xff]   ;;  %v7369_v3 = vld [vmem:[%s8628_s18 + $0x5ac] ss:$16 sps:$4 sm:$0xff]  }
 0x6c5   : > { %v3754_v16 = vrot.slane %v3753_v7, 2  ;;  %5591 = vmatpush1.bf16.msra.mxu0 %v7328_v51  ;;  %5755 = vmatpush1.bf16.msra.mxu1 %v7331_v6  ;;  %v3825_v6 = vrot.slane %v8842_v25, %v8931_v20 }
 0x6c6   : > { %v3748_v11 = vadd.f32 %v3747_v55, %v3746_v36  ;;  %v3768_v12 = vrot.slane %v3767_v10, 2  ;;  %5592 = vmatprep.subr.bf16.mxu0 %v7336_v8  ;;  %5756 = vmatprep.subr.bf16.mxu1 %v7339_v58  ;;  %v7366_v36 = vld [vmem:[%s8628_s18 + $0x5a4] ss:$16 sps:$4 sm:$0xff]   ;;  %v3698_v51 = vmul.f32 0.5, %v3684_v35  ;;  %v7364_v8 = vld [vmem:[%s8628_s18 + $0x5a0] ss:$16 sps:$4 sm:$0xff]  }
 0x6c7   : > { %v3755_v15 = vadd.f32 %v3754_v16, %v3753_v7  ;;  %v7367_v58 = vld [vmem:[%s8628_s18 + $0x5a8] ss:$16 sps:$4 sm:$0xff]   ;;  %v7372_v16 = vld [vmem:[%s8628_s18 + $0x5c4] ss:$16 sps:$4 sm:$0xff]   ;;  %v7394_v35 = vld [vmem:[%s8628_s18 + $0x640] ss:$16 sps:$4 sm:$0xff]  }
 0x6c8   : > { %v3749_v18 = vrot.slane %v3748_v11, 1  ;;  %v3769_v21 = vadd.f32 %v3768_v12, %v3767_v10  ;;  %v3829_v10 = vrot.slane %v8842_v25, %v8936_v24 }
 0x6c9   : > { %v3756_v22 = vrot.slane %v3755_v15, 1  ;;  %5593 = vmatpush1.bf16.msra.mxu0 %v7334_v59  ;;  %5757 = vmatpush1.bf16.msra.mxu1 %v7337_v13  ;;  %v9050_v59 = vsub.f32 %v8984_v56, %v3698_v51  ;;  %v7370_v56 = vld [vmem:[%s8628_s18 + $0x5c0] ss:$16 sps:$4 sm:$0xff]  }
 0x6ca   : > { %v3750_v27 = vadd.f32 %v3749_v18, %v3748_v11  ;;  %v3770_v29 = vrot.slane %v3769_v21, 1  ;;  %5594 = vmatprep.subr.bf16.mxu0 %v7342_v17  ;;  %5758 = vmatprep.subr.bf16.mxu1 %v7345_v23  ;;  %v7375_v11 = vld [vmem:[%s8628_s18 + $0x5cc] ss:$16 sps:$4 sm:$0xff]   ;;  %v3879_v17 = vrot.slane %v8844_v26, %v8936_v24  ;;  %v3887_v18 = vrot.slane %v8844_v26, %v8939_v28  ;;  %v7400_v51 = vld [vmem:[%s8628_s18 + $0x660] ss:$16 sps:$4 sm:$0xff]  }
 0x6cb   : > { %v3757_v52 = vadd.f32 %v3756_v22, %v3755_v15  ;;  %v7381_v22 = vld [vmem:[%s8628_s18 + $0x5ec] ss:$16 sps:$4 sm:$0xff]   ;;  %v3714_v24 = vmul.f32 %v9050_v59, %v9050_v59 }
 0x6cc   : > { %v3776_v57 = vmul.f32 0.5, %v3750_v27  ;;  %v3771_v41 = vadd.f32 %v3770_v29, %v3769_v21  ;;  %v7376_v29 = vld [vmem:[%s8628_s18 + $0x5e0] ss:$16 sps:$4 sm:$0xff]  }
 0x6cd   : > { %v3777_v46 = vmul.f32 0.5, %v3757_v52  ;;  %5595 = vmatpush1.bf16.msra.mxu0 %v7340_v34  ;;  %5759 = vmatpush1.bf16.msra.mxu1 %v7343_v37  ;;  %v7379_v34 = vld [vmem:[%s8628_s18 + $0x5e8] ss:$16 sps:$4 sm:$0xff]   ;;  %v7384_v37 = vld [vmem:[%s8628_s18 + $0x604] ss:$16 sps:$4 sm:$0xff]  }
 0x6ce   : > { %v3784_v61 = vadd.f32 0.8, %v3776_v57  ;;  %v3779_v63 = vmul.f32 0.5, %v3771_v41  ;;  %5596 = vmatprep.subr.bf16.mxu0 %v7348_v53  ;;  %5760 = vmatprep.subr.bf16.mxu1 %v7351_v5  ;;  %v7387_v53 = vld [vmem:[%s8628_s18 + $0x60c] ss:$16 sps:$4 sm:$0xff]   ;;  %v3758_v5 = vsel %vm1010_vm3, %v3714_v24, 0.0 }
 0x6cf   : > { %v3785_v43 = vadd.f32 0.8, %v3777_v46  ;;  %v7435_v24 = vld [vmem:[%s8628_s18 + $0x70c] ss:$16 sps:$4 sm:$0xff]  }
 0x6d0   : > { %7498 = vrsqrt.f32 %v3784_v61  ;;  %v3787_v33 = vadd.f32 0.8, %v3779_v63  ;;  %v7385_v61 = vld [vmem:[%s8628_s18 + $0x608] ss:$16 sps:$4 sm:$0xff]  }
 0x6d1   : > { %7500 = vrsqrt.f32 %v3785_v43  ;;  %5597 = vmatpush1.bf16.msra.mxu0 %v7346_v49  ;;  %5761 = vmatpush1.bf16.msra.mxu1 %v7349_v0  ;;  %v7382_v49 = vld [vmem:[%s8628_s18 + $0x600] ss:$16 sps:$4 sm:$0xff]   ;;  %v3759_v0 = vrot.slane %v3758_v5, 4 }
 0x6d2   : > { %7502 = vrsqrt.f32 %v3787_v33  ;;  %5598 = vmatprep.subr.bf16.mxu0 %v7354_v47  ;;  %5762 = vmatprep.subr.bf16.mxu1 %v7357_v31  ;;  %v7390_v47 = vld [vmem:[%s8628_s18 + $0x624] ss:$16 sps:$4 sm:$0xff]   ;;  %v7393_v31 = vld [vmem:[%s8628_s18 + $0x62c] ss:$16 sps:$4 sm:$0xff]   ;;  %v7388_v33 = vld [vmem:[%s8628_s18 + $0x620] ss:$16 sps:$4 sm:$0xff]  }
 0x6d5   : > { %5599 = vmatpush1.bf16.msra.mxu0 %v7352_v32  ;;  %5763 = vmatpush1.bf16.msra.mxu1 %v7355_v48  ;;  %v7391_v32 = vld [vmem:[%s8628_s18 + $0x628] ss:$16 sps:$4 sm:$0xff]   ;;  %v3760_v48 = vadd.f32 %v3759_v0, %v3758_v5 }
 0x6d6   : > { %5600 = vmatprep.subr.bf16.mxu0 %v7360_v1  ;;  %5764 = vmatprep.subr.bf16.mxu1 %v7363_v2  ;;  %v7396_v1 = vld [vmem:[%s8628_s18 + $0x644] ss:$16 sps:$4 sm:$0xff]   ;;  %v7399_v2 = vld [vmem:[%s8628_s18 + $0x64c] ss:$16 sps:$4 sm:$0xff]   ;;  %v7445_v5 = vld [vmem:[%s8628_s18 + $0x748] ss:$16 sps:$4 sm:$0xff]  }
 0x6d9   : > { %5601 = vmatpush1.bf16.msra.mxu0 %v7358_v50  ;;  %5765 = vmatpush1.bf16.msra.mxu1 %v7361_v14  ;;  %v7397_v50 = vld [vmem:[%s8628_s18 + $0x648] ss:$16 sps:$4 sm:$0xff]   ;;  %v3761_v14 = vrot.slane %v3760_v48, 2 }
 0x6da   : > { %v7499_v7 = vpop.eup %7498  ;;  %5602 = vmatprep.subr.bf16.mxu0 %v7366_v36  ;;  %5766 = vmatprep.subr.bf16.mxu1 %v7369_v3  ;;  %v7402_v36 = vld [vmem:[%s8628_s18 + $0x664] ss:$16 sps:$4 sm:$0xff]   ;;  %v7405_v3 = vld [vmem:[%s8628_s18 + $0x66c] ss:$16 sps:$4 sm:$0xff]  }
 0x6db   : > { %v3800_v55 = vmul.f32 %v7499_v7, %v8989_v4  ;;  %v7501_v12 = vpop.eup %7500  ;;  %v3837_v4 = vrot.slane %v8842_v25, %v8939_v28  ;;  %v3762_v7 = vadd.f32 %v3761_v14, %v3760_v48  ;;  %v7471_v14 = vld [vmem:[%s8628_s18 + $0x7cc] ss:$16 sps:$4 sm:$0xff]  }
 0x6dc   : > { %v7503_v13 = vpop.eup %7502  ;;  %v3801_v15 = vmul.f32 %v7501_v12, %v8994_v45  ;;  %v7378_v45 = vld [vmem:[%s8628_s18 + $0x5e4] ss:$16 sps:$4 sm:$0xff]   ;;  %v7412_v12 = vld [vmem:[%s8628_s18 + $0x6a0] ss:$16 sps:$4 sm:$0xff]  }
 0x6dd   : > { %v3850_v20 = vmul.f32 %v3825_v6, %v3800_v55  ;;  %v3803_v23 = vmul.f32 %v7503_v13, %v9001_v30  ;;  %5603 = vmatpush1.bf16.msra.mxu0 %v7364_v8  ;;  %5767 = vmatpush1.bf16.msra.mxu1 %v7367_v58  ;;  %v7403_v6 = vld [vmem:[%s8628_s18 + $0x668] ss:$16 sps:$4 sm:$0xff]   ;;  %v7408_v8 = vld [vmem:[%s8628_s18 + $0x684] ss:$16 sps:$4 sm:$0xff]   ;;  %v7411_v58 = vld [vmem:[%s8628_s18 + $0x68c] ss:$16 sps:$4 sm:$0xff]  }
 0x6de   : > { %v3851_v21 = vmul.f32 %v3829_v10, %v3801_v15  ;;  %5604 = vmatprep.subr.bf16.mxu0 %v7372_v16  ;;  %5768 = vmatprep.subr.bf16.mxu1 %v7375_v11  ;;  %v7406_v55 = vld [vmem:[%s8628_s18 + $0x680] ss:$16 sps:$4 sm:$0xff]   ;;  %v3763_v10 = vrot.slane %v3762_v7, 1  ;;  %v7414_v16 = vld [vmem:[%s8628_s18 + $0x6a4] ss:$16 sps:$4 sm:$0xff]  }
 0x6df   : > { %v3900_v25 = vadd.f32 %v3875_v54, %v3850_v20  ;;  %v3853_v30 = vmul.f32 %v3837_v4, %v3803_v23  ;;  %v7409_v54 = vld [vmem:[%s8628_s18 + $0x688] ss:$16 sps:$4 sm:$0xff]   ;;  %v7417_v11 = vld [vmem:[%s8628_s18 + $0x6ac] ss:$16 sps:$4 sm:$0xff]   ;;  %v7420_v20 = vld [vmem:[%s8628_s18 + $0x6c4] ss:$16 sps:$4 sm:$0xff]  }
 0x6e0   : > { %v3901_v27 = vadd.f32 %v3879_v17, %v3851_v21  ;;  %v7415_v4 = vld [vmem:[%s8628_s18 + $0x6a8] ss:$16 sps:$4 sm:$0xff]   ;;  %v3764_v13 = vadd.f32 %v3763_v10, %v3762_v7  ;;  %v7423_v15 = vld [vmem:[%s8628_s18 + $0x6cc] ss:$16 sps:$4 sm:$0xff]   ;;  %v7418_v17 = vld [vmem:[%s8628_s18 + $0x6c0] ss:$16 sps:$4 sm:$0xff]  }
 0x6e1   : > { %vm3908_vm14 = vcmp.gt.f32.partialorder %v3900_v25, 0.0  ;;  %v3916_v26 = vmul.f32 0.2, %v3900_v25  ;;  %v3903_v28 = vadd.f32 %v3887_v18, %v3853_v30  ;;  %5605 = vmatpush1.bf16.msra.mxu0 %v7370_v56  ;;  %5769 = vmatpush1.bf16.msra.mxu1 %v7373_v19  ;;  %v7421_v23 = vld [vmem:[%s8628_s18 + $0x6c8] ss:$16 sps:$4 sm:$0xff]  }
 0x6e2   : > { %5606 = vmatprep.subr.bf16.mxu0 %v7378_v45  ;;  %5770 = vmatprep.subr.bf16.mxu1 %v7381_v22  ;;  %vm3909_vm15 = vcmp.gt.f32.partialorder %v3901_v27, 0.0  ;;  %v3917_v52 = vmul.f32 0.2, %v3901_v27  ;;  %v3778_v18 = vmul.f32 0.5, %v3764_v13  ;;  %v7426_v56 = vld [vmem:[%s8628_s18 + $0x6e4] ss:$16 sps:$4 sm:$0xff]  }
 0x6e3   : > { %v3924_v57 = vsel %vm3908_vm14, %v3900_v25, %v3916_v26  ;;  %vm3911_vm0 = vcmp.gt.f32.partialorder %v3903_v28, 0.0  ;;  %v3919_v38 = vmul.f32 0.2, %v3903_v28  ;;  %v7429_v19 = vld [vmem:[%s8628_s18 + $0x6ec] ss:$16 sps:$4 sm:$0xff]  }
 0x6e4   : > { %v3925_v41 = vsel %vm3909_vm15, %v3901_v27, %v3917_v52  ;;  %v3932_v43 = vpack.c.bf16 %v3924_v57, %v3924_v57  ;;  %v7424_v25 = vld [vmem:[%s8628_s18 + $0x6e0] ss:$16 sps:$4 sm:$0xff]   ;;  %v7427_v21 = vld [vmem:[%s8628_s18 + $0x6e8] ss:$16 sps:$4 sm:$0xff]   ;;  %v3786_v45 = vadd.f32 0.8, %v3778_v18 }
 0x6e5   : > { %5607 = vmatpush1.bf16.msra.mxu0 %v7376_v29  ;;  %5771 = vmatpush1.bf16.msra.mxu1 %v7379_v34  ;;  %v3933_v46 = vpack.c.bf16 %v3925_v41, %v3925_v41  ;;  %v3927_v63 = vsel %vm3911_vm0, %v3903_v28, %v3919_v38  ;;  %v7432_v22 = vld [vmem:[%s8628_s18 + $0x704] ss:$16 sps:$4 sm:$0xff]   ;;  %v7430_v30 = vld [vmem:[%s8628_s18 + $0x700] ss:$16 sps:$4 sm:$0xff]   ;;  %v7433_v27 = vld [vmem:[%s8628_s18 + $0x708] ss:$16 sps:$4 sm:$0xff]  }
 0x6e6   : > { %5617 = vmatprep.subr.bf16.mxu0 %v7384_v37  ;;  %5781 = vmatprep.subr.bf16.mxu1 %v7387_v53  ;;  %v3935_v44 = vpack.c.bf16 %v3927_v63, %v3927_v63  ;;  %7504 = vrsqrt.f32 %v3786_v45  ;;  %v7438_v26 = vld [vmem:[%s8628_s18 + $0x724] ss:$16 sps:$4 sm:$0xff]   ;;  %v7441_v28 = vld [vmem:[%s8628_s18 + $0x72c] ss:$16 sps:$4 sm:$0xff]   ;;  %v7436_v29 = vld [vmem:[%s8628_s18 + $0x720] ss:$16 sps:$4 sm:$0xff]  }
 0x6e7   : > { %5608 = vmatprep.mubr.bf16.mxu0 %v3933_v46  ;;  %5772 = vmatprep.mubr.bf16.mxu1 %v3933_v46  ;;  %v7439_v34 = vld [vmem:[%s8628_s18 + $0x728] ss:$16 sps:$4 sm:$0xff]   ;;  %v7444_v37 = vld [vmem:[%s8628_s18 + $0x744] ss:$16 sps:$4 sm:$0xff]   ;;  %v7447_v52 = vld [vmem:[%s8628_s18 + $0x74c] ss:$16 sps:$4 sm:$0xff]  }
 0x6e8   : > { %5609 = vmatmul.mubr.bf16.vlgmr.msra.gmra.mrb[16].mxu0 %v3932_v43  ;;  %5773 = vmatmul.mubr.bf16.vlgmr.msra.gmra.mrb[16].mxu1 %v3932_v43  ;;  %v7442_v53 = vld [vmem:[%s8628_s18 + $0x740] ss:$16 sps:$4 sm:$0xff]   ;;  %v7450_v57 = vld [vmem:[%s8628_s18 + $0x764] ss:$16 sps:$4 sm:$0xff]   ;;  %v7453_v38 = vld [vmem:[%s8628_s18 + $0x76c] ss:$16 sps:$4 sm:$0xff]  }
 0x6e9   : > { %5618 = vmatpush1.bf16.msra.mxu0 %v7382_v49  ;;  %5782 = vmatpush1.bf16.msra.mxu1 %v7385_v61  ;;  %v7448_v46 = vld [vmem:[%s8628_s18 + $0x760] ss:$16 sps:$4 sm:$0xff]   ;;  %v7451_v49 = vld [vmem:[%s8628_s18 + $0x768] ss:$16 sps:$4 sm:$0xff]   ;;  %v7456_v61 = vld [vmem:[%s8628_s18 + $0x784] ss:$16 sps:$4 sm:$0xff]  }
 0x6ea   : > { %5649 = vmatprep.mubr.bf16.mxu0 %v3935_v44  ;;  %5813 = vmatprep.mubr.bf16.mxu1 %v3935_v44  ;;  %v7459_v63 = vld [vmem:[%s8628_s18 + $0x78c] ss:$16 sps:$4 sm:$0xff]   ;;  %v7514_v43 = vld [vmem:[#allocation21] sm:$0xff]  ;;  %v7457_v44 = vld [vmem:[%s8628_s18 + $0x788] ss:$16 sps:$4 sm:$0xff]  }
 0x6eb   : > { %5619 = vmatprep.subr.bf16.mxu0 %v7390_v47  ;;  %5783 = vmatprep.subr.bf16.mxu1 %v7393_v31  ;;  %v3833_v47 = vrot.slane %v7514_v43, %v8972_v9  ;;  %v7454_v31 = vld [vmem:[%s8628_s18 + $0x780] ss:$16 sps:$4 sm:$0xff]  }
 0x6ec   : > { %v4192_v10 = vld [vmem:[%s724_s8] sm:$0xf] }
 0x6ed   : > { %5620 = vmatpush1.bf16.msra.mxu0 %v7388_v33  ;;  %5784 = vmatpush1.bf16.msra.mxu1 %v7391_v32  ;;  %v7462_v33 = vld [vmem:[%s8628_s18 + $0x7a4] ss:$16 sps:$4 sm:$0xff]   ;;  %v7465_v32 = vld [vmem:[%s8628_s18 + $0x7ac] ss:$16 sps:$4 sm:$0xff]  }
 0x6ee   : > { %5621 = vmatprep.subr.bf16.mxu0 %v7396_v1  ;;  %5785 = vmatprep.subr.bf16.mxu1 %v7399_v2  ;;  %v7515_v1 = vld [vmem:[#allocation22] sm:$0xff]  ;;  %v7460_v2 = vld [vmem:[%s8628_s18 + $0x7a0] ss:$16 sps:$4 sm:$0xff]  }
 0x6f0   : > { %v7505_v41 = vpop.eup %7504 }
 0x6f1   : > { %5622 = vmatpush1.bf16.msra.mxu0 %v7394_v35  ;;  %5786 = vmatpush1.bf16.msra.mxu1 %v7397_v50  ;;  %v3802_v0 = vmul.f32 %v7505_v41, %v9050_v59  ;;  %v3883_v59 = vrot.slane %v7515_v1, %v8972_v9  ;;  %v7463_v35 = vld [vmem:[%s8628_s18 + $0x7a8] ss:$16 sps:$4 sm:$0xff]   ;;  %v7468_v50 = vld [vmem:[%s8628_s18 + $0x7c4] ss:$16 sps:$4 sm:$0xff]  }
 0x6f2   : > { %5623 = vmatprep.subr.bf16.mxu0 %v7402_v36  ;;  %5787 = vmatprep.subr.bf16.mxu1 %v7405_v3  ;;  %v7466_v3 = vld [vmem:[%s8628_s18 + $0x7c0] ss:$16 sps:$4 sm:$0xff]   ;;  %v7474_v9 = vld [vmem:[%s8628_s18 + $0x7e4] ss:$16 sps:$4 sm:$0xff]  }
 0x6f3   : > { %v3852_v48 = vmul.f32 %v3833_v47, %v3802_v0 }
 0x6f5   : > { %5624 = vmatpush1.bf16.msra.mxu0 %v7400_v51  ;;  %5788 = vmatpush1.bf16.msra.mxu1 %v7403_v6  ;;  %v3902_v36 = vadd.f32 %v3883_v59, %v3852_v48  ;;  %v7469_v51 = vld [vmem:[%s8628_s18 + $0x7c8] ss:$16 sps:$4 sm:$0xff]   ;;  %v7477_v6 = vld [vmem:[%s8628_s18 + $0x7ec] ss:$16 sps:$4 sm:$0xff]  }
 0x6f6   : > { %5625 = vmatprep.subr.bf16.mxu0 %v7408_v8  ;;  %5789 = vmatprep.subr.bf16.mxu1 %v7411_v58  ;;  %v7472_v8 = vld [vmem:[%s8628_s18 + $0x7e0] ss:$16 sps:$4 sm:$0xff]   ;;  %v7475_v58 = vld [vmem:[%s8628_s18 + $0x7e8] ss:$16 sps:$4 sm:$0xff]  }
 0x6f7   : > { %v3918_v7 = vmul.f32 0.2, %v3902_v36  ;;  %vm3910_vm1 = vcmp.gt.f32.partialorder %v3902_v36, 0.0 }
 0x6f9   : > { %5626 = vmatpush1.bf16.msra.mxu0 %v7406_v55  ;;  %5790 = vmatpush1.bf16.msra.mxu1 %v7409_v54  ;;  %v3926_v55 = vsel %vm3910_vm1, %v3902_v36, %v3918_v7 }
 0x6fa   : > { %5627 = vmatprep.subr.bf16.mxu0 %v7414_v16  ;;  %5791 = vmatprep.subr.bf16.mxu1 %v7417_v11  ;;  %v3934_v54 = vpack.c.bf16 %v3926_v55, %v3926_v55  ;;  %v4197_v16 = vrot.slane %v4192_v10, %v8656_v40  ;;  %v4205_v11 = vrot.slane %v4192_v10, %v8694_v60  ;;  %v8063_v60 = vmov 1983009808  }
 0x6fd   : > { %5628 = vmatpush1.bf16.msra.mxu0 %v7412_v12  ;;  %5792 = vmatpush1.bf16.msra.mxu1 %v7415_v4  ;;  %v4201_v12 = vrot.slane %v4192_v10, %v8659_v42  ;;  %v4209_v4 = vrot.slane %v4192_v10, %v8697_v62  ;;  %v5833_v42 = vunpack.c.l.s4 %v8063_v60 }
 0x6fe   : > { %5629 = vmatprep.subr.bf16.mxu0 %v7420_v20  ;;  %5793 = vmatprep.subr.bf16.mxu1 %v7423_v15 }
 0x6ff   : > { %v5834_v62 = vunpack.c.0.s8 %v5833_v42 }
 0x701   : > { %5630 = vmatpush1.bf16.msra.mxu0 %v7418_v17  ;;  %5794 = vmatpush1.bf16.msra.mxu1 %v7421_v23 }
 0x702   : > { %5631 = vmatprep.subr.bf16.mxu0 %v7426_v56  ;;  %5795 = vmatprep.subr.bf16.mxu1 %v7429_v19 }
 0x705   : > { %5632 = vmatpush1.bf16.msra.mxu0 %v7424_v25  ;;  %5796 = vmatpush1.bf16.msra.mxu1 %v7427_v21 }
 0x706   : > { %5633 = vmatprep.subr.bf16.mxu0 %v7432_v22  ;;  %5797 = vmatprep.subr.bf16.mxu1 %v7435_v24 }
 0x709   : > { %5634 = vmatpush1.bf16.msra.mxu0 %v7430_v30  ;;  %5798 = vmatpush1.bf16.msra.mxu1 %v7433_v27  ;;  %v5837_v30 = vsub.s32 %v5834_v62, %v8653_v39 }
 0x70a   : > { %5635 = vmatprep.subr.bf16.mxu0 %v7438_v26  ;;  %5799 = vmatprep.subr.bf16.mxu1 %v7441_v28 }
 0x70d   : > { %5636 = vmatpush1.bf16.msra.mxu0 %v7436_v29  ;;  %5800 = vmatpush1.bf16.msra.mxu1 %v7439_v34 }
 0x70e   : > { %5637 = vmatprep.subr.bf16.mxu0 %v7444_v37  ;;  %5801 = vmatprep.subr.bf16.mxu1 %v7447_v52 }
 0x711   : > { %5638 = vmatpush1.bf16.msra.mxu0 %v7442_v53  ;;  %5802 = vmatpush1.bf16.msra.mxu1 %v7445_v5 }
 0x712   : > { %5639 = vmatprep.subr.bf16.mxu0 %v7450_v57  ;;  %5803 = vmatprep.subr.bf16.mxu1 %v7453_v38 }
 0x715   : > { %5640 = vmatpush1.bf16.msra.mxu0 %v7448_v46  ;;  %5804 = vmatpush1.bf16.msra.mxu1 %v7451_v49 }
 0x716   : > { %5641 = vmatprep.subr.bf16.mxu0 %v7456_v61  ;;  %5805 = vmatprep.subr.bf16.mxu1 %v7459_v63 }
 0x719   : > { %5642 = vmatpush1.bf16.msra.mxu0 %v7454_v31  ;;  %5806 = vmatpush1.bf16.msra.mxu1 %v7457_v44 }
 0x71a   : > { %5643 = vmatprep.subr.bf16.mxu0 %v7462_v33  ;;  %5807 = vmatprep.subr.bf16.mxu1 %v7465_v32 }
 0x71d   : > { %5644 = vmatpush1.bf16.msra.mxu0 %v7460_v2  ;;  %5808 = vmatpush1.bf16.msra.mxu1 %v7463_v35 }
 0x71e   : > { %5645 = vmatprep.subr.bf16.mxu0 %v7468_v50  ;;  %5809 = vmatprep.subr.bf16.mxu1 %v7471_v14 }
 0x721   : > { %5646 = vmatpush1.bf16.msra.mxu0 %v7466_v3  ;;  %5810 = vmatpush1.bf16.msra.mxu1 %v7469_v51 }
 0x722   : > { %5647 = vmatprep.subr.bf16.mxu0 %v7474_v9  ;;  %5811 = vmatprep.subr.bf16.mxu1 %v7477_v6 }
 0x725   : > { %5648 = vmatpush1.bf16.msra.mxu0 %v7472_v8  ;;  %5812 = vmatpush1.bf16.msra.mxu1 %v7475_v58 }
 0x728   : > { %5650 = vmatmul.mubr.bf16.vlgmr.msra.gmra.mrb[16].mxu0 %v3934_v54  ;;  %5814 = vmatmul.mubr.bf16.vlgmr.msra.gmra.mrb[16].mxu1 %v3934_v54 }
 0x7fb   : > { %v5651_v13 = vpop.f32.mrb[16].mxu0  ;;  %v5815_v20 = vpop.f32.mrb[16].mxu1 }
 0x7fc   : > { %v6731_v15 = vadd.f32 %v5651_v13, %v4197_v16  ;;  %v6733_v17 = vadd.f32 %v5815_v20, %v4205_v11  ;;  %v5653_v23 = vpop.f32.mrb[17].mxu0  ;;  %v5817_v18 = vpop.f32.mrb[17].mxu1 }
 0x7fd   : > { %v6732_v56 = vadd.f32 %v5653_v23, %v4201_v12  ;;  %v6734_v19 = vadd.f32 %v5817_v18, %v4209_v4  ;;  %v5655_v25 = vpop.f32.mrb[18].mxu0  ;;  %v5819_v21 = vpop.f32.mrb[18].mxu1 }
 0x7fe   : > { %7506 = vtanh.f32 %v6731_v15  ;;  %v5656_v45 = vpop.f32.mrb[19].mxu0  ;;  %v5820_v40 = vpop.f32.mrb[19].mxu1 }
 0x7ff   : > { %7508 = vtanh.f32 %v6733_v17 }
 0x800   : > { %7510 = vtanh.f32 %v6732_v56 }
 0x801   : > { %7512 = vtanh.f32 %v6734_v19 }
 0x808   : > { %v7507_v22 = vpop.eup %7506 }
 0x809   : > { %v7509_v24 = vpop.eup %7508 }
 0x80a   : > { %v7511_v27 = vpop.eup %7510 }
 0x80b   : > { %v7513_v26 = vpop.eup %7512  ;;  %v5830_v28 = vcombine.low %v7507_v22, %v7511_v27 }
 0x80c   : > { %v5831_v29 = vcombine.low %v7509_v24, %v7513_v26 }
 0x80d   : > { %v5838_v34 = vrot.slane %v5830_v28, %v5837_v30 }
 0x80e   : > { %v5845_v37 = vrot.slane %v5831_v29, %v5837_v30 }
 0x810   : > { %v5846_v52 = vcombine.low %v5838_v34, %v5845_v37 }
 0x812   : > { %5848 = vst [vmem:[%s786_s22] sm:$0xff] %v5846_v52 }
 0x813 PF: > { %p32_p0 = scmp.ge.s32.totalorder %s8347_s13, 4   ;;  %s9266_s24 = smov %s8026_s25 }
 0x814   : > { %s9267_s25 = smov %s8030_s26  ;;  %s9268_s26 = smov %s8358_s21 }
 0x815   : > { %s9269_s27 = smov %s8347_s13  ;;  %34 = sbr.rel (!%p32_p0) target bundleno = 26 (0x1a), region = 194 }
 0x81c   :  { %5871 = vsyncpa [#allocation3], 1 }
 0x81d   :  { %5873 = vsyncpa [#allocation3 + $0x1], 1 }
 0x81e   :  { %5874 = vsyncpa [#allocation5], 1 }
 0x81f   :  { %5875 = vsyncpa [#allocation8], 1 }
 0x820   :  { %5876 = vsyncpa [#allocation11], 1 }
 0x821   :  { %5877 = vsyncpa [#allocation14], 1 }
 0x822   :  { %5878 = vsyncpa [#allocation17], 1 }
 0x823   :  { %5879 = vsyncpa [#allocation20], 1 }
 0x824   :  { %5880 = vsyncpa [#allocation23], 1 }

</bundles_post_ra>
